<compile_context>
chip_gen: v7x
topology: tpu7x:2x2x1
jax: 0.10.0
libtpu: 0.0.40
codegen_flags: <defaults>
</compile_context>

<pallas_src>
import functools
import math

import jax
import jax.numpy as jnp
from jax import lax
from jax.experimental import pallas as pl
from jax.experimental.pallas import tpu as pltpu

# Make the pure-JAX reference matmuls run at full f32 precision so the
# numerical check against the in-kernel f32 MXU matmuls is meaningful.
jax.config.update("jax_default_matmul_precision", "highest")

LN_EPS = 1e-5  # nn.LayerNorm default


def _layer_norm(x, gamma, beta):
    mu = jnp.mean(x, axis=-1, keepdims=True)
    var = jnp.mean(jnp.square(x - mu), axis=-1, keepdims=True)
    return (x - mu) * lax.rsqrt(var + LN_EPS) * gamma + beta


def _gelu_tanh(x):
    # tanh-approximate GELU; keeps transcendentals on the EUP.
    # TODO(synk): nn.GELU() default is the exact erf variant (difference < 1e-3 abs).
    c = math.sqrt(2.0 / math.pi)
    return 0.5 * x * (1.0 + jnp.tanh(c * (x + 0.044715 * x * x * x)))


# ----------------------------------------------------------------------------
# Kernel 1: pre-LN multi-head self-attention + out-projection + residual.
# One grid step per batch element; per-head Q/K/V projections read static
# column windows of the weight refs so no value relayout is needed in-kernel.
# ----------------------------------------------------------------------------
def _msa_kernel(num_heads,
                x_ref, g1_ref, b1_ref,
                wq_ref, bq_ref, wk_ref, bk_ref, wv_ref, bv_ref,
                wo_ref, bo_ref,
                y_ref, aw_ref):
    x = x_ref[0]                                      # (S, E) f32
    s, e = x.shape
    dh = e // num_heads
    scale = 1.0 / math.sqrt(dh)

    xn = _layer_norm(x, g1_ref[...], b1_ref[...])     # (S, E)

    out_acc = jnp.zeros((s, e), jnp.float32)
    aw_acc = jnp.zeros((s, s), jnp.float32)

    # TODO(synk): optional attention mask path not implemented (test calls forward with mask=None).
    for h in range(num_heads):
        sl = slice(h * dh, (h + 1) * dh)              # static per-head column window
        qh = jnp.dot(xn, wq_ref[:, sl], preferred_element_type=jnp.float32) + bq_ref[:, sl]
        kh = jnp.dot(xn, wk_ref[:, sl], preferred_element_type=jnp.float32) + bk_ref[:, sl]
        vh = jnp.dot(xn, wv_ref[:, sl], preferred_element_type=jnp.float32) + bv_ref[:, sl]

        # scores = qh @ kh.T  (contract on the head dim, no explicit transpose)
        sc = lax.dot_general(qh, kh, (((1,), (1,)), ((), ())),
                             preferred_element_type=jnp.float32) * scale   # (S, S)
        sc = sc - jnp.max(sc, axis=-1, keepdims=True)
        p = jnp.exp(sc)
        p = p / jnp.sum(p, axis=-1, keepdims=True)
        aw_acc = aw_acc + p

        ctx_h = jnp.dot(p, vh, preferred_element_type=jnp.float32)          # (S, Dh)
        # concat_h(ctx_h) @ Wo  ==  sum_h ctx_h @ Wo[h*Dh:(h+1)*Dh, :]  (avoids in-kernel concat)
        out_acc = out_acc + jnp.dot(ctx_h, wo_ref[sl, :],
                                    preferred_element_type=jnp.float32)

    attn = out_acc + bo_ref[...]                      # (S, E)
    y_ref[0] = (attn + x).astype(y_ref.dtype)         # residual with the pre-LN input
    aw_ref[0] = (aw_acc * (1.0 / num_heads)).astype(aw_ref.dtype)


# ----------------------------------------------------------------------------
# Kernel 2: pre-LN MLP (Linear -> GELU -> Linear) + residual, tiled over rows.
# ----------------------------------------------------------------------------
def _mlp_kernel(y_ref, g2_ref, b2_ref, w1_ref, bb1_ref, w2_ref, bb2_ref, o_ref):
    y = y_ref[...]                                    # (TM, E) residual stream rows
    yn = _layer_norm(y, g2_ref[...], b2_ref[...])
    # TODO(synk): dropout layers are inference-mode identity; training dropout would use pltpu.prng_*.
    h = jnp.dot(yn, w1_ref[...], preferred_element_type=jnp.float32) + bb1_ref[...]
    h = _gelu_tanh(h)
    o = jnp.dot(h, w2_ref[...], preferred_element_type=jnp.float32) + bb2_ref[...]
    o_ref[...] = (o + y).astype(o_ref.dtype)


# ----------------------------------------------------------------------------
# Wrapper
# ----------------------------------------------------------------------------
def transformer_encoder_block_pallas(x, params, *, num_heads, row_tile=8):
    B, S, E = x.shape
    F = params["w1"].shape[1]
    assert E % num_heads == 0

    msa_cost = pl.CostEstimate(
        flops=int(2 * B * S * E * 4 * E + 4 * B * S * S * E),
        transcendentals=int(B * num_heads * S * S),
        bytes_accessed=int(4 * (2 * B * S * E + B * S * S + 4 * E * E + 6 * E)),
    )

    y, attn_w = pl.pallas_call(
        functools.partial(_msa_kernel, num_heads),
        grid=(B,),
        in_specs=[
            pl.BlockSpec((1, S, E), lambda b: (b, 0, 0)),   # x
            pl.BlockSpec((1, E), lambda b: (0, 0)),         # ln1 gamma
            pl.BlockSpec((1, E), lambda b: (0, 0)),         # ln1 beta
            pl.BlockSpec((E, E), lambda b: (0, 0)),         # Wq^T
            pl.BlockSpec((1, E), lambda b: (0, 0)),         # bq
            pl.BlockSpec((E, E), lambda b: (0, 0)),         # Wk^T
            pl.BlockSpec((1, E), lambda b: (0, 0)),         # bk
            pl.BlockSpec((E, E), lambda b: (0, 0)),         # Wv^T
            pl.BlockSpec((1, E), lambda b: (0, 0)),         # bv
            pl.BlockSpec((E, E), lambda b: (0, 0)),         # Wo^T
            pl.BlockSpec((1, E), lambda b: (0, 0)),         # bo
        ],
        out_specs=(
            pl.BlockSpec((1, S, E), lambda b: (b, 0, 0)),   # attn_output + x
            pl.BlockSpec((1, S, S), lambda b: (b, 0, 0)),   # head-averaged attention weights
        ),
        out_shape=(
            jax.ShapeDtypeStruct((B, S, E), x.dtype),
            jax.ShapeDtypeStruct((B, S, S), jnp.float32),
        ),
        compiler_params=pltpu.CompilerParams(dimension_semantics=("parallel",)),
        cost_estimate=msa_cost,
    )(x, params["ln1_g"], params["ln1_b"],
      params["w_q"], params["b_q"], params["w_k"], params["b_k"],
      params["w_v"], params["b_v"], params["w_o"], params["b_o"])

    # MLP operates row-wise on the flattened (B*S, E) residual stream.
    M = B * S
    tm = min(row_tile, M)
    assert M % tm == 0, "B*S must be divisible by row_tile"
    y2 = y.reshape(M, E)

    mlp_cost = pl.CostEstimate(
        flops=int(4 * M * E * F),
        transcendentals=int(M * F),
        bytes_accessed=int(4 * (2 * M * E + 2 * E * F + F + 3 * E)),
    )

    out = pl.pallas_call(
        _mlp_kernel,
        grid=(M // tm,),
        in_specs=[
            pl.BlockSpec((tm, E), lambda i: (i, 0)),        # residual stream rows
            pl.BlockSpec((1, E), lambda i: (0, 0)),         # ln2 gamma
            pl.BlockSpec((1, E), lambda i: (0, 0)),         # ln2 beta
            pl.BlockSpec((E, F), lambda i: (0, 0)),         # W1^T
            pl.BlockSpec((1, F), lambda i: (0, 0)),         # b1
            pl.BlockSpec((F, E), lambda i: (0, 0)),         # W2^T
            pl.BlockSpec((1, E), lambda i: (0, 0)),         # b2
        ],
        out_specs=pl.BlockSpec((tm, E), lambda i: (i, 0)),
        out_shape=jax.ShapeDtypeStruct((M, E), x.dtype),
        compiler_params=pltpu.CompilerParams(dimension_semantics=("parallel",)),
        cost_estimate=mlp_cost,
    )(y2, params["ln2_g"], params["ln2_b"],
      params["w1"], params["b1"], params["w2"], params["b2"])

    return out.reshape(B, S, E), attn_w


# ----------------------------------------------------------------------------
# Pure-JAX reference (same math, used for the in-script correctness check)
# ----------------------------------------------------------------------------
def transformer_encoder_block_ref(x, params, *, num_heads):
    B, S, E = x.shape
    H = num_heads
    Dh = E // H

    xn = _layer_norm(x, params["ln1_g"], params["ln1_b"])
    q = xn @ params["w_q"] + params["b_q"]
    k = xn @ params["w_k"] + params["b_k"]
    v = xn @ params["w_v"] + params["b_v"]

    def heads(t):
        return t.reshape(B, S, H, Dh).transpose(0, 2, 1, 3)      # (B, H, S, Dh)

    qh, kh, vh = heads(q), heads(k), heads(v)
    sc = jnp.einsum("bhqd,bhkd->bhqk", qh, kh) / math.sqrt(Dh)
    p = jax.nn.softmax(sc, axis=-1)
    ctx = jnp.einsum("bhqk,bhkd->bhqd", p, vh).transpose(0, 2, 1, 3).reshape(B, S, E)
    attn = ctx @ params["w_o"] + params["b_o"]
    attn_w = jnp.mean(p, axis=1)                                 # averaged over heads (PyTorch default)

    y = attn + x
    yn = _layer_norm(y, params["ln2_g"], params["ln2_b"])
    h = _gelu_tanh(yn @ params["w1"] + params["b1"])
    o = h @ params["w2"] + params["b2"]
    return o + y, attn_w


if __name__ == "__main__":
    B, S, E, H = 2, 8, 32, 4          # batch=2, seq(patches)=8, embed=32, heads=4
    F = 4 * E                          # mlp_size = 4 * embedding_dim

    key = jax.random.PRNGKey(0)
    ks = jax.random.split(key, 16)

    def w(k, shape, fan_in):
        return jax.random.normal(k, shape, dtype=jnp.float32) / math.sqrt(fan_in)

    params = {
        "ln1_g": 1.0 + 0.1 * jax.random.normal(ks[0], (1, E), jnp.float32),
        "ln1_b": 0.1 * jax.random.normal(ks[1], (1, E), jnp.float32),
        "w_q": w(ks[2], (E, E), E), "b_q": 0.02 * jax.random.normal(ks[3], (1, E), jnp.float32),
        "w_k": w(ks[4], (E, E), E), "b_k": 0.02 * jax.random.normal(ks[5], (1, E), jnp.float32),
        "w_v": w(ks[6], (E, E), E), "b_v": 0.02 * jax.random.normal(ks[7], (1, E), jnp.float32),
        "w_o": w(ks[8], (E, E), E), "b_o": 0.02 * jax.random.normal(ks[9], (1, E), jnp.float32),
        "ln2_g": 1.0 + 0.1 * jax.random.normal(ks[10], (1, E), jnp.float32),
        "ln2_b": 0.1 * jax.random.normal(ks[11], (1, E), jnp.float32),
        "w1": w(ks[12], (E, F), E), "b1": 0.02 * jax.random.normal(ks[13], (1, F), jnp.float32),
        "w2": w(ks[14], (F, E), F), "b2": 0.02 * jax.random.normal(ks[15], (1, E), jnp.float32),
    }

    x = jax.random.normal(jax.random.PRNGKey(1), (B, S, E), dtype=jnp.float32)

    out, attn_w = transformer_encoder_block_pallas(x, params, num_heads=H)
    out = jax.block_until_ready(out)
    attn_w = jax.block_until_ready(attn_w)

    ref_out, ref_aw = transformer_encoder_block_ref(x, params, num_heads=H)

    assert out.shape == (B, S, E) and attn_w.shape == (B, S, S)
    assert jnp.allclose(out, ref_out, rtol=1e-3, atol=1e-3), \
        float(jnp.max(jnp.abs(out - ref_out)))
    assert jnp.allclose(attn_w, ref_aw, rtol=1e-3, atol=1e-3), \
        float(jnp.max(jnp.abs(attn_w - ref_aw)))

    print("KERNEL_OK")
</pallas_src>

<mosaic_0001>
module attributes {stable_mosaic.version = 11 : i64} {
  func.func @_msa_kernel(%arg0: i32, %arg1: memref<1x8x32xf32, #tpu.memory_space<vmem>>, %arg2: memref<1x32xf32, #tpu.memory_space<vmem>>, %arg3: memref<1x32xf32, #tpu.memory_space<vmem>>, %arg4: memref<32x32xf32, #tpu.memory_space<vmem>>, %arg5: memref<1x32xf32, #tpu.memory_space<vmem>>, %arg6: memref<32x32xf32, #tpu.memory_space<vmem>>, %arg7: memref<1x32xf32, #tpu.memory_space<vmem>>, %arg8: memref<32x32xf32, #tpu.memory_space<vmem>>, %arg9: memref<1x32xf32, #tpu.memory_space<vmem>>, %arg10: memref<32x32xf32, #tpu.memory_space<vmem>>, %arg11: memref<1x32xf32, #tpu.memory_space<vmem>>, %arg12: memref<1x8x32xf32, #tpu.memory_space<vmem>>, %arg13: memref<1x8x8xf32, #tpu.memory_space<vmem>>) attributes {dimension_semantics = [#tpu.dimension_semantics<parallel>], iteration_bounds = array<i64: 2>, scalar_prefetch = 0 : i64, scratch_operands = 0 : i64, tpu.core_type = #tpu.core_type<tc>, window_params = [{transform_indices = @transform_0, window_bounds = array<i64: 1, 8, 32>}, {pipeline_mode = #tpu.pipeline_mode<synchronous>, transform_indices = @transform_1, window_bounds = array<i64: 1, 32>}, {pipeline_mode = #tpu.pipeline_mode<synchronous>, transform_indices = @transform_2, window_bounds = array<i64: 1, 32>}, {pipeline_mode = #tpu.pipeline_mode<synchronous>, transform_indices = @transform_3, window_bounds = array<i64: 32, 32>}, {pipeline_mode = #tpu.pipeline_mode<synchronous>, transform_indices = @transform_4, window_bounds = array<i64: 1, 32>}, {pipeline_mode = #tpu.pipeline_mode<synchronous>, transform_indices = @transform_5, window_bounds = array<i64: 32, 32>}, {pipeline_mode = #tpu.pipeline_mode<synchronous>, transform_indices = @transform_6, window_bounds = array<i64: 1, 32>}, {pipeline_mode = #tpu.pipeline_mode<synchronous>, transform_indices = @transform_7, window_bounds = array<i64: 32, 32>}, {pipeline_mode = #tpu.pipeline_mode<synchronous>, transform_indices = @transform_8, window_bounds = array<i64: 1, 32>}, {pipeline_mode = #tpu.pipeline_mode<synchronous>, transform_indices = @transform_9, window_bounds = array<i64: 32, 32>}, {pipeline_mode = #tpu.pipeline_mode<synchronous>, transform_indices = @transform_10, window_bounds = array<i64: 1, 32>}, {transform_indices = @transform_11, window_bounds = array<i64: 1, 8, 32>}, {transform_indices = @transform_12, window_bounds = array<i64: 1, 8, 8>}]} {
    %c0 = arith.constant 0 : index
    %c0_0 = arith.constant 0 : index
    %c0_1 = arith.constant 0 : index
    %0 = vector.load %arg1[%c0, %c0_0, %c0_1] : memref<1x8x32xf32, #tpu.memory_space<vmem>>, vector<1x8x32xf32>
    %1 = vector.shape_cast %0 : vector<1x8x32xf32> to vector<8x32xf32>
    %c0_2 = arith.constant 0 : index
    %c0_3 = arith.constant 0 : index
    %2 = vector.load %arg2[%c0_2, %c0_3] : memref<1x32xf32, #tpu.memory_space<vmem>>, vector<1x32xf32>
    %c0_4 = arith.constant 0 : index
    %c0_5 = arith.constant 0 : index
    %3 = vector.load %arg3[%c0_4, %c0_5] : memref<1x32xf32, #tpu.memory_space<vmem>>, vector<1x32xf32>
    %cst = arith.constant dense<0.000000e+00> : vector<8xf32>
    %4 = vector.multi_reduction <add>, %1, %cst [1] : vector<8x32xf32> to vector<8xf32>
    %5 = vector.shape_cast %4 : vector<8xf32> to vector<8x1xf32>
    %cst_6 = arith.constant 3.200000e+01 : f32
    %6 = vector.broadcast %cst_6 : f32 to vector<8x1xf32>
    %7 = arith.divf %5, %6 : vector<8x1xf32>
    %8 = vector.broadcast %7 : vector<8x1xf32> to vector<8x32xf32>
    %9 = arith.subf %1, %8 : vector<8x32xf32>
    %10 = arith.mulf %9, %9 : vector<8x32xf32>
    %cst_7 = arith.constant dense<0.000000e+00> : vector<8xf32>
    %11 = vector.multi_reduction <add>, %10, %cst_7 [1] : vector<8x32xf32> to vector<8xf32>
    %12 = vector.shape_cast %11 : vector<8xf32> to vector<8x1xf32>
    %cst_8 = arith.constant 3.200000e+01 : f32
    %13 = vector.broadcast %cst_8 : f32 to vector<8x1xf32>
    %14 = arith.divf %12, %13 : vector<8x1xf32>
    %15 = vector.broadcast %7 : vector<8x1xf32> to vector<8x32xf32>
    %16 = arith.subf %1, %15 : vector<8x32xf32>
    %cst_9 = arith.constant 9.99999974E-6 : f32
    %17 = vector.broadcast %cst_9 : f32 to vector<8x1xf32>
    %18 = arith.addf %14, %17 : vector<8x1xf32>
    %19 = math.rsqrt %18 : vector<8x1xf32>
    %20 = vector.broadcast %19 : vector<8x1xf32> to vector<8x32xf32>
    %21 = arith.mulf %16, %20 : vector<8x32xf32>
    %22 = vector.broadcast %2 : vector<1x32xf32> to vector<8x32xf32>
    %23 = arith.mulf %21, %22 : vector<8x32xf32>
    %24 = vector.broadcast %3 : vector<1x32xf32> to vector<8x32xf32>
    %25 = arith.addf %23, %24 : vector<8x32xf32>
    %cst_10 = arith.constant 0.000000e+00 : f32
    %26 = vector.broadcast %cst_10 : f32 to vector<8x32xf32>
    %cst_11 = arith.constant 0.000000e+00 : f32
    %27 = vector.broadcast %cst_11 : f32 to vector<8x8xf32>
    %c0_12 = arith.constant 0 : index
    %c0_13 = arith.constant 0 : index
    %28 = vector.load %arg4[%c0_12, %c0_13] : memref<32x32xf32, #tpu.memory_space<vmem>>, vector<32x8xf32>
    %cst_14 = arith.constant dense<0.000000e+00> : vector<8x8xf32>
    %29 = tpu.matmul %25, %28, %cst_14 {dimension_numbers = #tpu.dot_dimension_numbers<[1], [0], [0], [1], [0, 0, 1, 1], [], []>, precision = #tpu.contract_precision<fp32>} : vector<8x32xf32>, vector<32x8xf32>, vector<8x8xf32> -> vector<8x8xf32>
    %c0_15 = arith.constant 0 : index
    %c0_16 = arith.constant 0 : index
    %30 = vector.load %arg5[%c0_15, %c0_16] : memref<1x32xf32, #tpu.memory_space<vmem>>, vector<1x8xf32>
    %31 = vector.broadcast %30 : vector<1x8xf32> to vector<8x8xf32>
    %32 = arith.addf %29, %31 : vector<8x8xf32>
    %c0_17 = arith.constant 0 : index
    %c0_18 = arith.constant 0 : index
    %33 = vector.load %arg6[%c0_17, %c0_18] : memref<32x32xf32, #tpu.memory_space<vmem>>, vector<32x8xf32>
    %cst_19 = arith.constant dense<0.000000e+00> : vector<8x8xf32>
    %34 = tpu.matmul %25, %33, %cst_19 {dimension_numbers = #tpu.dot_dimension_numbers<[1], [0], [0], [1], [0, 0, 1, 1], [], []>, precision = #tpu.contract_precision<fp32>} : vector<8x32xf32>, vector<32x8xf32>, vector<8x8xf32> -> vector<8x8xf32>
    %c0_20 = arith.constant 0 : index
    %c0_21 = arith.constant 0 : index
    %35 = vector.load %arg7[%c0_20, %c0_21] : memref<1x32xf32, #tpu.memory_space<vmem>>, vector<1x8xf32>
    %36 = vector.broadcast %35 : vector<1x8xf32> to vector<8x8xf32>
    %37 = arith.addf %34, %36 : vector<8x8xf32>
    %c0_22 = arith.constant 0 : index
    %c0_23 = arith.constant 0 : index
    %38 = vector.load %arg8[%c0_22, %c0_23] : memref<32x32xf32, #tpu.memory_space<vmem>>, vector<32x8xf32>
    %cst_24 = arith.constant dense<0.000000e+00> : vector<8x8xf32>
    %39 = tpu.matmul %25, %38, %cst_24 {dimension_numbers = #tpu.dot_dimension_numbers<[1], [0], [0], [1], [0, 0, 1, 1], [], []>, precision = #tpu.contract_precision<fp32>} : vector<8x32xf32>, vector<32x8xf32>, vector<8x8xf32> -> vector<8x8xf32>
    %c0_25 = arith.constant 0 : index
    %c0_26 = arith.constant 0 : index
    %40 = vector.load %arg9[%c0_25, %c0_26] : memref<1x32xf32, #tpu.memory_space<vmem>>, vector<1x8xf32>
    %41 = vector.broadcast %40 : vector<1x8xf32> to vector<8x8xf32>
    %42 = arith.addf %39, %41 : vector<8x8xf32>
    %cst_27 = arith.constant dense<0.000000e+00> : vector<8x8xf32>
    %43 = tpu.matmul %32, %37, %cst_27 {dimension_numbers = #tpu.dot_dimension_numbers<[1], [1], [0], [0], [0, 0, 1, 0], [], []>, precision = #tpu.contract_precision<fp32>} : vector<8x8xf32>, vector<8x8xf32>, vector<8x8xf32> -> vector<8x8xf32>
    %cst_28 = arith.constant 0.353553385 : f32
    %44 = vector.broadcast %cst_28 : f32 to vector<8x8xf32>
    %45 = arith.mulf %43, %44 : vector<8x8xf32>
    %cst_29 = arith.constant dense<0xFF800000> : vector<8xf32>
    %46 = vector.multi_reduction <maximumf>, %45, %cst_29 [1] : vector<8x8xf32> to vector<8xf32>
    %47 = vector.shape_cast %46 : vector<8xf32> to vector<8x1xf32>
    %48 = vector.broadcast %47 : vector<8x1xf32> to vector<8x8xf32>
    %49 = arith.subf %45, %48 : vector<8x8xf32>
    %50 = math.exp %49 : vector<8x8xf32>
    %cst_30 = arith.constant dense<0.000000e+00> : vector<8xf32>
    %51 = vector.multi_reduction <add>, %50, %cst_30 [1] : vector<8x8xf32> to vector<8xf32>
    %52 = vector.shape_cast %51 : vector<8xf32> to vector<8x1xf32>
    %53 = vector.broadcast %52 : vector<8x1xf32> to vector<8x8xf32>
    %54 = arith.divf %50, %53 : vector<8x8xf32>
    %55 = arith.addf %27, %54 : vector<8x8xf32>
    %cst_31 = arith.constant dense<0.000000e+00> : vector<8x8xf32>
    %56 = tpu.matmul %54, %42, %cst_31 {dimension_numbers = #tpu.dot_dimension_numbers<[1], [0], [0], [1], [0, 0, 1, 1], [], []>, precision = #tpu.contract_precision<fp32>} : vector<8x8xf32>, vector<8x8xf32>, vector<8x8xf32> -> vector<8x8xf32>
    %c0_32 = arith.constant 0 : index
    %c0_33 = arith.constant 0 : index
    %57 = vector.load %arg10[%c0_32, %c0_33] : memref<32x32xf32, #tpu.memory_space<vmem>>, vector<8x32xf32>
    %cst_34 = arith.constant dense<0.000000e+00> : vector<8x32xf32>
    %58 = tpu.matmul %56, %57, %cst_34 {dimension_numbers = #tpu.dot_dimension_numbers<[1], [0], [0], [1], [0, 0, 1, 1], [], []>, precision = #tpu.contract_precision<fp32>} : vector<8x8xf32>, vector<8x32xf32>, vector<8x32xf32> -> vector<8x32xf32>
    %59 = arith.addf %26, %58 : vector<8x32xf32>
    %c0_35 = arith.constant 0 : index
    %c8 = arith.constant 8 : index
    %60 = vector.load %arg4[%c0_35, %c8] : memref<32x32xf32, #tpu.memory_space<vmem>>, vector<32x8xf32>
    %cst_36 = arith.constant dense<0.000000e+00> : vector<8x8xf32>
    %61 = tpu.matmul %25, %60, %cst_36 {dimension_numbers = #tpu.dot_dimension_numbers<[1], [0], [0], [1], [0, 0, 1, 1], [], []>, precision = #tpu.contract_precision<fp32>} : vector<8x32xf32>, vector<32x8xf32>, vector<8x8xf32> -> vector<8x8xf32>
    %c0_37 = arith.constant 0 : index
    %c8_38 = arith.constant 8 : index
    %62 = vector.load %arg5[%c0_37, %c8_38] : memref<1x32xf32, #tpu.memory_space<vmem>>, vector<1x8xf32>
    %63 = vector.broadcast %62 : vector<1x8xf32> to vector<8x8xf32>
    %64 = arith.addf %61, %63 : vector<8x8xf32>
    %c0_39 = arith.constant 0 : index
    %c8_40 = arith.constant 8 : index
    %65 = vector.load %arg6[%c0_39, %c8_40] : memref<32x32xf32, #tpu.memory_space<vmem>>, vector<32x8xf32>
    %cst_41 = arith.constant dense<0.000000e+00> : vector<8x8xf32>
    %66 = tpu.matmul %25, %65, %cst_41 {dimension_numbers = #tpu.dot_dimension_numbers<[1], [0], [0], [1], [0, 0, 1, 1], [], []>, precision = #tpu.contract_precision<fp32>} : vector<8x32xf32>, vector<32x8xf32>, vector<8x8xf32> -> vector<8x8xf32>
    %c0_42 = arith.constant 0 : index
    %c8_43 = arith.constant 8 : index
    %67 = vector.load %arg7[%c0_42, %c8_43] : memref<1x32xf32, #tpu.memory_space<vmem>>, vector<1x8xf32>
    %68 = vector.broadcast %67 : vector<1x8xf32> to vector<8x8xf32>
    %69 = arith.addf %66, %68 : vector<8x8xf32>
    %c0_44 = arith.constant 0 : index
    %c8_45 = arith.constant 8 : index
    %70 = vector.load %arg8[%c0_44, %c8_45] : memref<32x32xf32, #tpu.memory_space<vmem>>, vector<32x8xf32>
    %cst_46 = arith.constant dense<0.000000e+00> : vector<8x8xf32>
    %71 = tpu.matmul %25, %70, %cst_46 {dimension_numbers = #tpu.dot_dimension_numbers<[1], [0], [0], [1], [0, 0, 1, 1], [], []>, precision = #tpu.contract_precision<fp32>} : vector<8x32xf32>, vector<32x8xf32>, vector<8x8xf32> -> vector<8x8xf32>
    %c0_47 = arith.constant 0 : index
    %c8_48 = arith.constant 8 : index
    %72 = vector.load %arg9[%c0_47, %c8_48] : memref<1x32xf32, #tpu.memory_space<vmem>>, vector<1x8xf32>
    %73 = vector.broadcast %72 : vector<1x8xf32> to vector<8x8xf32>
    %74 = arith.addf %71, %73 : vector<8x8xf32>
    %cst_49 = arith.constant dense<0.000000e+00> : vector<8x8xf32>
    %75 = tpu.matmul %64, %69, %cst_49 {dimension_numbers = #tpu.dot_dimension_numbers<[1], [1], [0], [0], [0, 0, 1, 0], [], []>, precision = #tpu.contract_precision<fp32>} : vector<8x8xf32>, vector<8x8xf32>, vector<8x8xf32> -> vector<8x8xf32>
    %cst_50 = arith.constant 0.353553385 : f32
    %76 = vector.broadcast %cst_50 : f32 to vector<8x8xf32>
    %77 = arith.mulf %75, %76 : vector<8x8xf32>
    %cst_51 = arith.constant dense<0xFF800000> : vector<8xf32>
    %78 = vector.multi_reduction <maximumf>, %77, %cst_51 [1] : vector<8x8xf32> to vector<8xf32>
    %79 = vector.shape_cast %78 : vector<8xf32> to vector<8x1xf32>
    %80 = vector.broadcast %79 : vector<8x1xf32> to vector<8x8xf32>
    %81 = arith.subf %77, %80 : vector<8x8xf32>
    %82 = math.exp %81 : vector<8x8xf32>
    %cst_52 = arith.constant dense<0.000000e+00> : vector<8xf32>
    %83 = vector.multi_reduction <add>, %82, %cst_52 [1] : vector<8x8xf32> to vector<8xf32>
    %84 = vector.shape_cast %83 : vector<8xf32> to vector<8x1xf32>
    %85 = vector.broadcast %84 : vector<8x1xf32> to vector<8x8xf32>
    %86 = arith.divf %82, %85 : vector<8x8xf32>
    %87 = arith.addf %55, %86 : vector<8x8xf32>
    %cst_53 = arith.constant dense<0.000000e+00> : vector<8x8xf32>
    %88 = tpu.matmul %86, %74, %cst_53 {dimension_numbers = #tpu.dot_dimension_numbers<[1], [0], [0], [1], [0, 0, 1, 1], [], []>, precision = #tpu.contract_precision<fp32>} : vector<8x8xf32>, vector<8x8xf32>, vector<8x8xf32> -> vector<8x8xf32>
    %c8_54 = arith.constant 8 : index
    %c0_55 = arith.constant 0 : index
    %89 = vector.load %arg10[%c8_54, %c0_55] : memref<32x32xf32, #tpu.memory_space<vmem>>, vector<8x32xf32>
    %cst_56 = arith.constant dense<0.000000e+00> : vector<8x32xf32>
    %90 = tpu.matmul %88, %89, %cst_56 {dimension_numbers = #tpu.dot_dimension_numbers<[1], [0], [0], [1], [0, 0, 1, 1], [], []>, precision = #tpu.contract_precision<fp32>} : vector<8x8xf32>, vector<8x32xf32>, vector<8x32xf32> -> vector<8x32xf32>
    %91 = arith.addf %59, %90 : vector<8x32xf32>
    %c0_57 = arith.constant 0 : index
    %c16 = arith.constant 16 : index
    %92 = vector.load %arg4[%c0_57, %c16] : memref<32x32xf32, #tpu.memory_space<vmem>>, vector<32x8xf32>
    %cst_58 = arith.constant dense<0.000000e+00> : vector<8x8xf32>
    %93 = tpu.matmul %25, %92, %cst_58 {dimension_numbers = #tpu.dot_dimension_numbers<[1], [0], [0], [1], [0, 0, 1, 1], [], []>, precision = #tpu.contract_precision<fp32>} : vector<8x32xf32>, vector<32x8xf32>, vector<8x8xf32> -> vector<8x8xf32>
    %c0_59 = arith.constant 0 : index
    %c16_60 = arith.constant 16 : index
    %94 = vector.load %arg5[%c0_59, %c16_60] : memref<1x32xf32, #tpu.memory_space<vmem>>, vector<1x8xf32>
    %95 = vector.broadcast %94 : vector<1x8xf32> to vector<8x8xf32>
    %96 = arith.addf %93, %95 : vector<8x8xf32>
    %c0_61 = arith.constant 0 : index
    %c16_62 = arith.constant 16 : index
    %97 = vector.load %arg6[%c0_61, %c16_62] : memref<32x32xf32, #tpu.memory_space<vmem>>, vector<32x8xf32>
    %cst_63 = arith.constant dense<0.000000e+00> : vector<8x8xf32>
    %98 = tpu.matmul %25, %97, %cst_63 {dimension_numbers = #tpu.dot_dimension_numbers<[1], [0], [0], [1], [0, 0, 1, 1], [], []>, precision = #tpu.contract_precision<fp32>} : vector<8x32xf32>, vector<32x8xf32>, vector<8x8xf32> -> vector<8x8xf32>
    %c0_64 = arith.constant 0 : index
    %c16_65 = arith.constant 16 : index
    %99 = vector.load %arg7[%c0_64, %c16_65] : memref<1x32xf32, #tpu.memory_space<vmem>>, vector<1x8xf32>
    %100 = vector.broadcast %99 : vector<1x8xf32> to vector<8x8xf32>
    %101 = arith.addf %98, %100 : vector<8x8xf32>
    %c0_66 = arith.constant 0 : index
    %c16_67 = arith.constant 16 : index
    %102 = vector.load %arg8[%c0_66, %c16_67] : memref<32x32xf32, #tpu.memory_space<vmem>>, vector<32x8xf32>
    %cst_68 = arith.constant dense<0.000000e+00> : vector<8x8xf32>
    %103 = tpu.matmul %25, %102, %cst_68 {dimension_numbers = #tpu.dot_dimension_numbers<[1], [0], [0], [1], [0, 0, 1, 1], [], []>, precision = #tpu.contract_precision<fp32>} : vector<8x32xf32>, vector<32x8xf32>, vector<8x8xf32> -> vector<8x8xf32>
    %c0_69 = arith.constant 0 : index
    %c16_70 = arith.constant 16 : index
    %104 = vector.load %arg9[%c0_69, %c16_70] : memref<1x32xf32, #tpu.memory_space<vmem>>, vector<1x8xf32>
    %105 = vector.broadcast %104 : vector<1x8xf32> to vector<8x8xf32>
    %106 = arith.addf %103, %105 : vector<8x8xf32>
    %cst_71 = arith.constant dense<0.000000e+00> : vector<8x8xf32>
    %107 = tpu.matmul %96, %101, %cst_71 {dimension_numbers = #tpu.dot_dimension_numbers<[1], [1], [0], [0], [0, 0, 1, 0], [], []>, precision = #tpu.contract_precision<fp32>} : vector<8x8xf32>, vector<8x8xf32>, vector<8x8xf32> -> vector<8x8xf32>
    %cst_72 = arith.constant 0.353553385 : f32
    %108 = vector.broadcast %cst_72 : f32 to vector<8x8xf32>
    %109 = arith.mulf %107, %108 : vector<8x8xf32>
    %cst_73 = arith.constant dense<0xFF800000> : vector<8xf32>
    %110 = vector.multi_reduction <maximumf>, %109, %cst_73 [1] : vector<8x8xf32> to vector<8xf32>
    %111 = vector.shape_cast %110 : vector<8xf32> to vector<8x1xf32>
    %112 = vector.broadcast %111 : vector<8x1xf32> to vector<8x8xf32>
    %113 = arith.subf %109, %112 : vector<8x8xf32>
    %114 = math.exp %113 : vector<8x8xf32>
    %cst_74 = arith.constant dense<0.000000e+00> : vector<8xf32>
    %115 = vector.multi_reduction <add>, %114, %cst_74 [1] : vector<8x8xf32> to vector<8xf32>
    %116 = vector.shape_cast %115 : vector<8xf32> to vector<8x1xf32>
    %117 = vector.broadcast %116 : vector<8x1xf32> to vector<8x8xf32>
    %118 = arith.divf %114, %117 : vector<8x8xf32>
    %119 = arith.addf %87, %118 : vector<8x8xf32>
    %cst_75 = arith.constant dense<0.000000e+00> : vector<8x8xf32>
    %120 = tpu.matmul %118, %106, %cst_75 {dimension_numbers = #tpu.dot_dimension_numbers<[1], [0], [0], [1], [0, 0, 1, 1], [], []>, precision = #tpu.contract_precision<fp32>} : vector<8x8xf32>, vector<8x8xf32>, vector<8x8xf32> -> vector<8x8xf32>
    %c16_76 = arith.constant 16 : index
    %c0_77 = arith.constant 0 : index
    %121 = vector.load %arg10[%c16_76, %c0_77] : memref<32x32xf32, #tpu.memory_space<vmem>>, vector<8x32xf32>
    %cst_78 = arith.constant dense<0.000000e+00> : vector<8x32xf32>
    %122 = tpu.matmul %120, %121, %cst_78 {dimension_numbers = #tpu.dot_dimension_numbers<[1], [0], [0], [1], [0, 0, 1, 1], [], []>, precision = #tpu.contract_precision<fp32>} : vector<8x8xf32>, vector<8x32xf32>, vector<8x32xf32> -> vector<8x32xf32>
    %123 = arith.addf %91, %122 : vector<8x32xf32>
    %c0_79 = arith.constant 0 : index
    %c24 = arith.constant 24 : index
    %124 = vector.load %arg4[%c0_79, %c24] : memref<32x32xf32, #tpu.memory_space<vmem>>, vector<32x8xf32>
    %cst_80 = arith.constant dense<0.000000e+00> : vector<8x8xf32>
    %125 = tpu.matmul %25, %124, %cst_80 {dimension_numbers = #tpu.dot_dimension_numbers<[1], [0], [0], [1], [0, 0, 1, 1], [], []>, precision = #tpu.contract_precision<fp32>} : vector<8x32xf32>, vector<32x8xf32>, vector<8x8xf32> -> vector<8x8xf32>
    %c0_81 = arith.constant 0 : index
    %c24_82 = arith.constant 24 : index
    %126 = vector.load %arg5[%c0_81, %c24_82] : memref<1x32xf32, #tpu.memory_space<vmem>>, vector<1x8xf32>
    %127 = vector.broadcast %126 : vector<1x8xf32> to vector<8x8xf32>
    %128 = arith.addf %125, %127 : vector<8x8xf32>
    %c0_83 = arith.constant 0 : index
    %c24_84 = arith.constant 24 : index
    %129 = vector.load %arg6[%c0_83, %c24_84] : memref<32x32xf32, #tpu.memory_space<vmem>>, vector<32x8xf32>
    %cst_85 = arith.constant dense<0.000000e+00> : vector<8x8xf32>
    %130 = tpu.matmul %25, %129, %cst_85 {dimension_numbers = #tpu.dot_dimension_numbers<[1], [0], [0], [1], [0, 0, 1, 1], [], []>, precision = #tpu.contract_precision<fp32>} : vector<8x32xf32>, vector<32x8xf32>, vector<8x8xf32> -> vector<8x8xf32>
    %c0_86 = arith.constant 0 : index
    %c24_87 = arith.constant 24 : index
    %131 = vector.load %arg7[%c0_86, %c24_87] : memref<1x32xf32, #tpu.memory_space<vmem>>, vector<1x8xf32>
    %132 = vector.broadcast %131 : vector<1x8xf32> to vector<8x8xf32>
    %133 = arith.addf %130, %132 : vector<8x8xf32>
    %c0_88 = arith.constant 0 : index
    %c24_89 = arith.constant 24 : index
    %134 = vector.load %arg8[%c0_88, %c24_89] : memref<32x32xf32, #tpu.memory_space<vmem>>, vector<32x8xf32>
    %cst_90 = arith.constant dense<0.000000e+00> : vector<8x8xf32>
    %135 = tpu.matmul %25, %134, %cst_90 {dimension_numbers = #tpu.dot_dimension_numbers<[1], [0], [0], [1], [0, 0, 1, 1], [], []>, precision = #tpu.contract_precision<fp32>} : vector<8x32xf32>, vector<32x8xf32>, vector<8x8xf32> -> vector<8x8xf32>
    %c0_91 = arith.constant 0 : index
    %c24_92 = arith.constant 24 : index
    %136 = vector.load %arg9[%c0_91, %c24_92] : memref<1x32xf32, #tpu.memory_space<vmem>>, vector<1x8xf32>
    %137 = vector.broadcast %136 : vector<1x8xf32> to vector<8x8xf32>
    %138 = arith.addf %135, %137 : vector<8x8xf32>
    %cst_93 = arith.constant dense<0.000000e+00> : vector<8x8xf32>
    %139 = tpu.matmul %128, %133, %cst_93 {dimension_numbers = #tpu.dot_dimension_numbers<[1], [1], [0], [0], [0, 0, 1, 0], [], []>, precision = #tpu.contract_precision<fp32>} : vector<8x8xf32>, vector<8x8xf32>, vector<8x8xf32> -> vector<8x8xf32>
    %cst_94 = arith.constant 0.353553385 : f32
    %140 = vector.broadcast %cst_94 : f32 to vector<8x8xf32>
    %141 = arith.mulf %139, %140 : vector<8x8xf32>
    %cst_95 = arith.constant dense<0xFF800000> : vector<8xf32>
    %142 = vector.multi_reduction <maximumf>, %141, %cst_95 [1] : vector<8x8xf32> to vector<8xf32>
    %143 = vector.shape_cast %142 : vector<8xf32> to vector<8x1xf32>
    %144 = vector.broadcast %143 : vector<8x1xf32> to vector<8x8xf32>
    %145 = arith.subf %141, %144 : vector<8x8xf32>
    %146 = math.exp %145 : vector<8x8xf32>
    %cst_96 = arith.constant dense<0.000000e+00> : vector<8xf32>
    %147 = vector.multi_reduction <add>, %146, %cst_96 [1] : vector<8x8xf32> to vector<8xf32>
    %148 = vector.shape_cast %147 : vector<8xf32> to vector<8x1xf32>
    %149 = vector.broadcast %148 : vector<8x1xf32> to vector<8x8xf32>
    %150 = arith.divf %146, %149 : vector<8x8xf32>
    %151 = arith.addf %119, %150 : vector<8x8xf32>
    %cst_97 = arith.constant dense<0.000000e+00> : vector<8x8xf32>
    %152 = tpu.matmul %150, %138, %cst_97 {dimension_numbers = #tpu.dot_dimension_numbers<[1], [0], [0], [1], [0, 0, 1, 1], [], []>, precision = #tpu.contract_precision<fp32>} : vector<8x8xf32>, vector<8x8xf32>, vector<8x8xf32> -> vector<8x8xf32>
    %c24_98 = arith.constant 24 : index
    %c0_99 = arith.constant 0 : index
    %153 = vector.load %arg10[%c24_98, %c0_99] : memref<32x32xf32, #tpu.memory_space<vmem>>, vector<8x32xf32>
    %cst_100 = arith.constant dense<0.000000e+00> : vector<8x32xf32>
    %154 = tpu.matmul %152, %153, %cst_100 {dimension_numbers = #tpu.dot_dimension_numbers<[1], [0], [0], [1], [0, 0, 1, 1], [], []>, precision = #tpu.contract_precision<fp32>} : vector<8x8xf32>, vector<8x32xf32>, vector<8x32xf32> -> vector<8x32xf32>
    %155 = arith.addf %123, %154 : vector<8x32xf32>
    %c0_101 = arith.constant 0 : index
    %c0_102 = arith.constant 0 : index
    %156 = vector.load %arg11[%c0_101, %c0_102] : memref<1x32xf32, #tpu.memory_space<vmem>>, vector<1x32xf32>
    %157 = vector.broadcast %156 : vector<1x32xf32> to vector<8x32xf32>
    %158 = arith.addf %155, %157 : vector<8x32xf32>
    %159 = arith.addf %158, %1 : vector<8x32xf32>
    %c0_103 = arith.constant 0 : index
    %c0_104 = arith.constant 0 : index
    %c0_105 = arith.constant 0 : index
    %160 = vector.load %arg12[%c0_103, %c0_104, %c0_105] : memref<1x8x32xf32, #tpu.memory_space<vmem>>, vector<1x8x32xf32>
    %161 = vector.shape_cast %160 : vector<1x8x32xf32> to vector<8x32xf32>
    %162 = vector.shape_cast %159 : vector<8x32xf32> to vector<1x8x32xf32>
    tpu.vector_store %arg12[%c0_103, %c0_104, %c0_105], %162 {strides = array<i32>} : memref<1x8x32xf32, #tpu.memory_space<vmem>>, vector<1x8x32xf32>,
    %cst_106 = arith.constant 2.500000e-01 : f32
    %163 = vector.broadcast %cst_106 : f32 to vector<8x8xf32>
    %164 = arith.mulf %151, %163 : vector<8x8xf32>
    %c0_107 = arith.constant 0 : index
    %c0_108 = arith.constant 0 : index
    %c0_109 = arith.constant 0 : index
    %165 = vector.load %arg13[%c0_107, %c0_108, %c0_109] : memref<1x8x8xf32, #tpu.memory_space<vmem>>, vector<1x8x8xf32>
    %166 = vector.shape_cast %165 : vector<1x8x8xf32> to vector<8x8xf32>
    %167 = vector.shape_cast %164 : vector<8x8xf32> to vector<1x8x8xf32>
    tpu.vector_store %arg13[%c0_107, %c0_108, %c0_109], %167 {strides = array<i32>} : memref<1x8x8xf32, #tpu.memory_space<vmem>>, vector<1x8x8xf32>,
    return
  }
  func.func @transform_0(%arg0: i32) -> (i32, i32, i32) {
    %c0_i32 = arith.constant 0 : i32
    %c0_i32_0 = arith.constant 0 : i32
    %c0_i32_1 = arith.constant 0 : i32
    return %arg0, %c0_i32, %c0_i32_0 : i32, i32, i32
  }
  func.func @transform_1(%arg0: i32) -> (i32, i32) {
    %c0_i32 = arith.constant 0 : i32
    %c0_i32_0 = arith.constant 0 : i32
    %c0_i32_1 = arith.constant 0 : i32
    return %c0_i32, %c0_i32_0 : i32, i32
  }
  func.func @transform_2(%arg0: i32) -> (i32, i32) {
    %c0_i32 = arith.constant 0 : i32
    %c0_i32_0 = arith.constant 0 : i32
    %c0_i32_1 = arith.constant 0 : i32
    return %c0_i32, %c0_i32_0 : i32, i32
  }
  func.func @transform_3(%arg0: i32) -> (i32, i32) {
    %c0_i32 = arith.constant 0 : i32
    %c0_i32_0 = arith.constant 0 : i32
    %c0_i32_1 = arith.constant 0 : i32
    return %c0_i32, %c0_i32_0 : i32, i32
  }
  func.func @transform_4(%arg0: i32) -> (i32, i32) {
    %c0_i32 = arith.constant 0 : i32
    %c0_i32_0 = arith.constant 0 : i32
    %c0_i32_1 = arith.constant 0 : i32
    return %c0_i32, %c0_i32_0 : i32, i32
  }
  func.func @transform_5(%arg0: i32) -> (i32, i32) {
    %c0_i32 = arith.constant 0 : i32
    %c0_i32_0 = arith.constant 0 : i32
    %c0_i32_1 = arith.constant 0 : i32
    return %c0_i32, %c0_i32_0 : i32, i32
  }
  func.func @transform_6(%arg0: i32) -> (i32, i32) {
    %c0_i32 = arith.constant 0 : i32
    %c0_i32_0 = arith.constant 0 : i32
    %c0_i32_1 = arith.constant 0 : i32
    return %c0_i32, %c0_i32_0 : i32, i32
  }
  func.func @transform_7(%arg0: i32) -> (i32, i32) {
    %c0_i32 = arith.constant 0 : i32
    %c0_i32_0 = arith.constant 0 : i32
    %c0_i32_1 = arith.constant 0 : i32
    return %c0_i32, %c0_i32_0 : i32, i32
  }
  func.func @transform_8(%arg0: i32) -> (i32, i32) {
    %c0_i32 = arith.constant 0 : i32
    %c0_i32_0 = arith.constant 0 : i32
    %c0_i32_1 = arith.constant 0 : i32
    return %c0_i32, %c0_i32_0 : i32, i32
  }
  func.func @transform_9(%arg0: i32) -> (i32, i32) {
    %c0_i32 = arith.constant 0 : i32
    %c0_i32_0 = arith.constant 0 : i32
    %c0_i32_1 = arith.constant 0 : i32
    return %c0_i32, %c0_i32_0 : i32, i32
  }
  func.func @transform_10(%arg0: i32) -> (i32, i32) {
    %c0_i32 = arith.constant 0 : i32
    %c0_i32_0 = arith.constant 0 : i32
    %c0_i32_1 = arith.constant 0 : i32
    return %c0_i32, %c0_i32_0 : i32, i32
  }
  func.func @transform_11(%arg0: i32) -> (i32, i32, i32) {
    %c0_i32 = arith.constant 0 : i32
    %c0_i32_0 = arith.constant 0 : i32
    %c0_i32_1 = arith.constant 0 : i32
    return %arg0, %c0_i32, %c0_i32_0 : i32, i32, i32
  }
  func.func @transform_12(%arg0: i32) -> (i32, i32, i32) {
    %c0_i32 = arith.constant 0 : i32
    %c0_i32_0 = arith.constant 0 : i32
    %c0_i32_1 = arith.constant 0 : i32
    return %arg0, %c0_i32, %c0_i32_0 : i32, i32, i32
  }
}

</mosaic_0001>

<bundles_post_ra>
// kernel: tpu_custom_call.1
= control target key start
LH: loop header
LB: loop body
LE: loop exit
PB: predicated region body
PF: predicated region fallthrough
CT: control target
= control target key end

     0   :  { %s16804_s0 = inlined_call_operand.hbm [shape: f32[2,8,32], index: 0, kind: input, shape index: {}]   ;;  %s16805_s1 = inlined_call_operand.vmem [shape: f32[1,32], index: 1, kind: input, shape index: {}]   ;;  %s16806_s2 = inlined_call_operand.vmem [shape: f32[1,32], index: 2, kind: input, shape index: {}]   ;;  %s16807_s3 = inlined_call_operand.hbm [shape: f32[32,32], index: 3, kind: input, shape index: {}]   ;;  %s16808_s4 = inlined_call_operand.hbm [shape: f32[1,32], index: 4, kind: input, shape index: {}]   ;;  %s16809_s5 = inlined_call_operand.hbm [shape: f32[32,32], index: 5, kind: input, shape index: {}]   ;;  %s16810_s6 = inlined_call_operand.hbm [shape: f32[1,32], index: 6, kind: input, shape index: {}]   ;;  %s16811_s7 = inlined_call_operand.hbm [shape: f32[32,32], index: 7, kind: input, shape index: {}]   ;;  %s16812_s8 = inlined_call_operand.hbm [shape: f32[1,32], index: 8, kind: input, shape index: {}]   ;;  %s16813_s9 = inlined_call_operand.vmem [shape: f32[32,32], index: 9, kind: input, shape index: {}]   ;;  %s16814_s10 = inlined_call_operand.vmem [shape: f32[1,32], index: 10, kind: input, shape index: {}]   ;;  %s16815_s11 = inlined_call_operand.hbm [shape: f32[2,8,32], index: 11, kind: output, shape index: {0}]   ;;  %s16816_s12 = inlined_call_operand.hbm [shape: f32[2,8,8], index: 12, kind: output, shape index: {1}]  }
   0x1   :  { %16825 = sst [smem:[#allocation23_spill]] %s16804_s0 }
   0x2   :  { %16826 = sst [smem:[#allocation24_spill]] %s16807_s3 }
   0x3   :  { %16827 = sst [smem:[#allocation25_spill]] %s16813_s9 }
   0x4   :  { %16828 = sst [smem:[#allocation26_spill]] %s16814_s10 }
   0x5   :  { %16829 = sst [smem:[#allocation27_spill]] %s16815_s11 }
   0x6   :  { %16830 = sst [smem:[#allocation28_spill]] %s16816_s12 }
   0x7   :  { %18 = vsyncpa [#allocation3], 0 }
   0x8   :  { %20 = vsyncpa [#allocation3 + $0x1], 0 }
   0x9   :  { %21 = vsyncpa [#allocation6], 0 }
   0xa   :  { %22 = vsyncpa [#allocation9], 0 }
   0xb   :  { %23 = vsyncpa [#allocation12], 0 }
   0xc   :  { %24 = vsyncpa [#allocation4], 0 }
   0xd   :  { %26 = vsyncpa [#allocation4 + $0x1], 0 }
   0xe   :  { %27 = vsyncpa [#allocation16], 0 }
   0xf   :  { %29 = vsyncpa [#allocation16 + $0x1], 0  ;;  %s15097_s21 = smov 0   ;;  %s15099_s22 = smov 0  }
  0x10   :  { %s15101_s23 = smov 0   ;;  %s15103_s24 = smov 0  }
  0x11 LB: > { %s15015_s25 = smov [#allocation5]   ;;  %s15118_s27 = sadd.s32 4294967295, %s15013_s24   ;;  %s15013_s24 = sphi %s15103_s24, %s16861_s24   ;;  %s15009_s23 = sphi %s15101_s23, %s16860_s23   ;;  %s15005_s22 = sphi %s15099_s22, %s16859_s22   ;;  %s15001_s21 = sphi %s15097_s21, %s16858_s21  }
  0x12   : > { %s346_s26 = sshll.u32 %s15015_s25, 4  ;;  %p12219_p0 = scmp.ge.s32.totalorder %s15013_s24, 1  ;;  %s15123_s26 = int_to_ptr.vmem [resolvable:$true] %s346_s26 }
  0x13   : > { %p16820_p1 = scmp.eq.s32.totalorder %s15118_s27, 0  ;;  %p328_p2 = scmp.lt.s32.totalorder %s15013_s24, 3 }
  0x14   : > { %s15016_s29 = smov [#allocation8]   ;;  %s15017_s14 = smov [#allocation11]  }
  0x15   : > { %p15125_p3 = pnand %p12219_p0, %p328_p2  ;;  %s370_s30 = sshll.u32 %s15016_s29, 4  ;;  %s15138_s30 = int_to_ptr.vmem [resolvable:$true] %s370_s30 }
  0x16   : > { %s394_s15 = sshll.u32 %s15017_s14, 4  ;;  %s16833_s3 = sld [smem:[#allocation24_spill]]  ;;  %s15140_s15 = int_to_ptr.vmem [resolvable:$true] %s394_s15 }
  0x17   : > { %s16831_s28 = scalar_select %p15125_p3, 1, 0 }
  0x18   : > { %p14581_p5 = pneg %p15125_p3 }
  0x1a   : > { %p15134_p6 = pnand %p14581_p5, %p16820_p1 }
  0x1c   : > { %s14705_s18 = scalar_lea.hbm %s16833_s3, 512  ;;  %p15150_p8 = pneg %p15134_p6 }
  0x1d   : > { %p14706_p7 = scmp.ne.s32.totalorder %s16833_s3, %s14705_s18  ;;  %p14712_p11 = scmp.lt.u32.totalorder %s14705_s18, %s16833_s3 }
  0x1f   : > { %p14708_p9 = pnand %p15150_p8, %p14706_p7 }
  0x21   : > { %p14709_p10 = pneg %p14708_p9 }
  0x23   : > { %p14714_p12 = pnand %p14712_p11, %p14709_p10 }
  0x25   : > { %14717 = shalt.err (!%p14714_p12)
}
  0x26   : > { %s14718_s16 = scalar_lea.vmem %s15123_s26, 512  ;;  %p14726_p5 = scmp.lt.s32.totalorder %s15123_s26, %s15123_s26 }
  0x27   : > { %p14719_p13 = scmp.ne.s32.totalorder %s15123_s26, %s14718_s16  ;;  %p14727_p4 = scmp.lt.s32.totalorder %s14718_s16, %s14718_s16 }
  0x29   : > { %p14721_p0 = pnand %p14719_p13, %p15150_p8  ;;  %p14728_p7 = por %p14727_p4, %p14726_p5 }
  0x2b   : > { %p14722_p2 = pneg %p14721_p0 }
  0x2d   : > { %p14729_p9 = pnand %p14728_p7, %p14722_p2 }
  0x2f   : > { %14732 = shalt.err (!%p14729_p9)
}
  0x30   : > { %s15018_s17 = smov 128   ;;  %s15019_s18 = smov 8  }
  0x31   : > { %14584 = dma.hbm_to_vmem [thread:$0]  (!%p15134_p6), %s16833_s3, 512, %s15123_s26, [#allocation6], %s15018_s17, %s15018_s17, %s15019_s18  }
  0x32   : > { %s14733_s16 = scalar_lea.hbm %s16809_s5, 512 }
  0x33   : > { %p14734_p4 = scmp.ne.s32.totalorder %s16809_s5, %s14733_s16  ;;  %p14740_p12 = scmp.lt.u32.totalorder %s14733_s16, %s16809_s5 }
  0x35   : > { %p14736_p10 = pnand %p14734_p4, %p15150_p8 }
  0x37   : > { %p14737_p11 = pneg %p14736_p10 }
  0x39   : > { %p14742_p13 = pnand %p14740_p12, %p14737_p11 }
  0x3b   : > { %14745 = shalt.err (!%p14742_p13)
}
  0x3c   : > { %s14746_s26 = scalar_lea.vmem %s15138_s30, 512  ;;  %p14754_p7 = scmp.lt.s32.totalorder %s15138_s30, %s15138_s30 }
  0x3d   : > { %p14747_p0 = scmp.ne.s32.totalorder %s15138_s30, %s14746_s26  ;;  %p14755_p9 = scmp.lt.s32.totalorder %s14746_s26, %s14746_s26 }
  0x3f   : > { %p14749_p2 = pnand %p14747_p0, %p15150_p8  ;;  %p14756_p4 = por %p14755_p9, %p14754_p7 }
  0x41   : > { %p14750_p5 = pneg %p14749_p2 }
  0x43   : > { %p14757_p10 = pnand %p14756_p4, %p14750_p5 }
  0x45   : > { %14760 = shalt.err (!%p14757_p10)
}
  0x46   : > { %14590 = dma.hbm_to_vmem [thread:$0]  (!%p15134_p6), %s16809_s5, 512, %s15138_s30, [#allocation9], %s15018_s17, %s15018_s17, %s15019_s18  }
  0x47   : > { %s14761_s19 = scalar_lea.hbm %s16811_s7, 512 }
  0x48   : > { %p14762_p11 = scmp.ne.s32.totalorder %s16811_s7, %s14761_s19  ;;  %p14768_p0 = scmp.lt.u32.totalorder %s14761_s19, %s16811_s7 }
  0x4a   : > { %p14764_p12 = pnand %p14762_p11, %p15150_p8 }
  0x4c   : > { %p14765_p13 = pneg %p14764_p12 }
  0x4e   : > { %p14770_p2 = pnand %p14768_p0, %p14765_p13 }
  0x50   : > { %14773 = shalt.err (!%p14770_p2)
}
  0x51   : > { %s14774_s30 = scalar_lea.vmem %s15140_s15, 512  ;;  %p14782_p4 = scmp.lt.s32.totalorder %s15140_s15, %s15140_s15 }
  0x52   : > { %p14775_p5 = scmp.ne.s32.totalorder %s15140_s15, %s14774_s30  ;;  %p14783_p10 = scmp.lt.s32.totalorder %s14774_s30, %s14774_s30 }
  0x54   : > { %p14777_p7 = pnand %p14775_p5, %p15150_p8  ;;  %p14784_p11 = por %p14783_p10, %p14782_p4 }
  0x56   : > { %p14778_p9 = pneg %p14777_p7 }
  0x58   : > { %p14785_p12 = pnand %p14784_p11, %p14778_p9 }
  0x5a   : > { %14788 = shalt.err (!%p14785_p12)
}
  0x5b   : > { %14596 = dma.hbm_to_vmem [thread:$0]  (!%p15134_p6), %s16811_s7, 512, %s15140_s15, [#allocation12], %s15018_s17, %s15018_s17, %s15019_s18  }
  0x5c   : > { %s15020_s10 = smov [#allocation7]   ;;  %s15021_s12 = smov [#allocation10]  }
  0x5d   : > { %s360_s11 = sshll.u32 %s15020_s10, 4  ;;  %s384_s19 = sshll.u32 %s15021_s12, 4  ;;  %s361_s11 = int_to_ptr.vmem [resolvable:$true] %s360_s11  ;;  %s385_s19 = int_to_ptr.vmem [resolvable:$true] %s384_s19 }
  0x5e   : > { %s14789_s14 = scalar_lea.hbm %s16808_s4, 16 }
  0x5f   : > { %p14790_p13 = scmp.ne.s32.totalorder %s16808_s4, %s14789_s14  ;;  %p14796_p5 = scmp.lt.u32.totalorder %s14789_s14, %s16808_s4 }
  0x61   : > { %p14792_p0 = pnand %p14790_p13, %p15150_p8 }
  0x63   : > { %p14793_p2 = pneg %p14792_p0 }
  0x65   : > { %p14798_p7 = pnand %p14796_p5, %p14793_p2 }
  0x67   : > { %14801 = shalt.err (!%p14798_p7)
}
  0x68   : > { %s14802_s15 = scalar_lea.vmem %s361_s11, 16  ;;  %s14809_s17 = scalar_lea.vmem %s361_s11, 32 }
  0x69   : > { %p14803_p9 = scmp.ne.s32.totalorder %s361_s11, %s14802_s15  ;;  %p14810_p11 = scmp.lt.s32.totalorder %s361_s11, %s361_s11 }
  0x6a   : > { %p14811_p12 = scmp.lt.s32.totalorder %s14809_s17, %s14802_s15 }
  0x6b   : > { %p14805_p4 = pnand %p14803_p9, %p15150_p8 }
  0x6c   : > { %p14812_p1 = por %p14811_p12, %p14810_p11 }
  0x6d   : > { %p14806_p10 = pneg %p14805_p4 }
  0x6f   : > { %p14813_p3 = pnand %p14812_p1, %p14806_p10 }
  0x71   : > { %14816 = shalt.err (!%p14813_p3)
}
  0x72   : > { %14587 = dma.hbm_to_vmem [thread:$0]  (!%p15134_p6), %s16808_s4, 16, %s361_s11, [#allocation6]  }
  0x73   : > { %s14817_s12 = scalar_lea.hbm %s16810_s6, 16 }
  0x74   : > { %p14818_p13 = scmp.ne.s32.totalorder %s16810_s6, %s14817_s12  ;;  %p14824_p3 = scmp.lt.u32.totalorder %s14817_s12, %s16810_s6 }
  0x76   : > { %p14820_p0 = pnand %p14818_p13, %p15150_p8 }
  0x78   : > { %p14821_p1 = pneg %p14820_p0 }
  0x7a   : > { %p14826_p2 = pnand %p14824_p3, %p14821_p1 }
  0x7c   : > { %14829 = shalt.err (!%p14826_p2)
}
  0x7d   : > { %s14830_s30 = scalar_lea.vmem %s385_s19, 16  ;;  %s14837_s11 = scalar_lea.vmem %s385_s19, 32 }
  0x7e   : > { %p14831_p5 = scmp.ne.s32.totalorder %s385_s19, %s14830_s30  ;;  %p14838_p4 = scmp.lt.s32.totalorder %s385_s19, %s385_s19 }
  0x7f   : > { %p14839_p10 = scmp.lt.s32.totalorder %s14837_s11, %s14830_s30 }
  0x80   : > { %p14833_p7 = pnand %p14831_p5, %p15150_p8 }
  0x81   : > { %p14840_p11 = por %p14839_p10, %p14838_p4 }
  0x82   : > { %p14834_p9 = pneg %p14833_p7 }
  0x84   : > { %p14841_p12 = pnand %p14840_p11, %p14834_p9 }
  0x86   : > { %14844 = shalt.err (!%p14841_p12)
}
  0x87   : > { %14593 = dma.hbm_to_vmem [thread:$0]  (!%p15134_p6), %s16810_s6, 16, %s385_s19, [#allocation9]  }
  0x88   : > { %s15022_s17 = smov [#allocation13]   ;;  %s14845_s10 = scalar_lea.hbm %s16812_s8, 16 }
  0x89   : > { %s408_s18 = sshll.u32 %s15022_s17, 4  ;;  %p14846_p13 = scmp.ne.s32.totalorder %s16812_s8, %s14845_s10  ;;  %s409_s18 = int_to_ptr.vmem [resolvable:$true] %s408_s18 }
  0x8a   : > { %p14852_p3 = scmp.lt.u32.totalorder %s14845_s10, %s16812_s8 }
  0x8b   : > { %p14848_p0 = pnand %p14846_p13, %p15150_p8 }
  0x8d   : > { %p14849_p1 = pneg %p14848_p0 }
  0x8f   : > { %p14854_p2 = pnand %p14852_p3, %p14849_p1 }
  0x91   : > { %14857 = shalt.err (!%p14854_p2)
}
  0x92   : > { %s14858_s19 = scalar_lea.vmem %s409_s18, 16  ;;  %s14865_s16 = scalar_lea.vmem %s409_s18, 32 }
  0x93   : > { %p14859_p5 = scmp.ne.s32.totalorder %s409_s18, %s14858_s19  ;;  %p14866_p4 = scmp.lt.s32.totalorder %s409_s18, %s409_s18 }
  0x94   : > { %p14867_p10 = scmp.lt.s32.totalorder %s14865_s16, %s14858_s19 }
  0x95   : > { %p14861_p7 = pnand %p14859_p5, %p15150_p8 }
  0x96   : > { %p14868_p11 = por %p14867_p10, %p14866_p4 }
  0x97   : > { %p14862_p9 = pneg %p14861_p7 }
  0x99   : > { %p14869_p12 = pnand %p14868_p11, %p14862_p9 }
  0x9b   : > { %14872 = shalt.err (!%p14869_p12)
}
  0x9c   : > { %14599 = dma.hbm_to_vmem [thread:$0]  (!%p15134_p6), %s16812_s8, 16, %s409_s18, [#allocation12]  }
  0x9d   : > { %s12218_s25 = sadd.s32 4294967294, %s15013_s24   ;;  %s15282_s13 = sadd.s32 1, %s15013_s24  }
  0x9e   : > { %s39_s26 = ssub.s32 %s15013_s24, %s15282_s13  ;;  %s42_s15 = sadd.s32 1, %s15009_s23 }
  0x9f   : > { %p40_p8 = scmp.eq.s32.totalorder %s39_s26, 0  ;;  %p49_p13 = scmp.ne.s32.totalorder %s15009_s23, %s15005_s22 }
  0xa0   : > { %p50_p0 = scmp.eq.s32.totalorder %s15013_s24, 0  ;;  %p55_p1 = scmp.ne.s32.totalorder %s15005_s22, %s15001_s21 }
  0xa1   : > { %s15293_s17 = scalar_select %p40_p8, %s15009_s23, %s42_s15  }
  0xa2   : > { %p15295_p3 = por %p50_p0, %p49_p13  ;;  %p16836_p2 = scmp.eq.s32.totalorder %s15118_s27, 0 }
  0xa3   : > { %p289_p5 = scmp.eq.s32.totalorder %s15118_s27, 1  ;;  %p295_p7 = scmp.eq.s32.totalorder %s12218_s25, 1 }
  0xa4   : > { %p15301_p6 = por %p16836_p2, %p55_p1  ;;  %p14617_p9 = scmp.lt.s32.totalorder %s15013_s24, 2 }
  0xa5   : > { %s425_s3 = sand.u32 1, %s15009_s23   ;;  %p15308_p4 = por %p289_p5, %p49_p13 }
  0xa6   : > { %p15312_p10 = por %p295_p7, %p55_p1  ;;  %s12227_s20 = sshll.u32 %s425_s3, 3 }
  0xa7   : > { %s16838_s10 = scalar_select %p15308_p4, 1, 0 }
  0xa8   : > { %s16839_s12 = scalar_select %p15312_p10, 1, 0 }
  0xa9   : > { %s12228_s29 = sshll.u32 %s15013_s24, 7  ;;  %s16840_s0 = sld [smem:[#allocation23_spill]] }
  0xaa   : > { %s429_s30 = scalar_lea.vmem [#allocation2], %s12227_s20  ;;  %p15326_p11 = pnand %p14617_p9, %p15295_p3 }
  0xab   : > { %s436_s11 = sshll.u32 %s429_s30, 4  ;;  %s426_s26 = scalar_lea.sflag [#allocation3], %s425_s3  ;;  %s15322_s11 = int_to_ptr.vmem [resolvable:$true] %s436_s11 }
  0xac   : > { %p14875_p8 = pneg %p15326_p11 }
  0xaf   : > { %s15320_s16 = scalar_lea.hbm %s16840_s0, %s12228_s29  ;;  %s14878_s14 = scalar_lea.hbm %s16840_s0, 256 }
  0xb0   : > { %s14873_s15 = scalar_lea.hbm %s15320_s16, 128  ;;  %p14879_p1 = scmp.lt.u32.totalorder %s15320_s16, %s16840_s0 }
  0xb1   : > { %p14874_p12 = scmp.ne.s32.totalorder %s15320_s16, %s14873_s15  ;;  %p14880_p3 = scmp.lt.u32.totalorder %s14878_s14, %s14873_s15 }
  0xb2   : > { %p14882_p5 = scmp.lt.u32.totalorder %s14873_s15, %s15320_s16 }
  0xb3   : > { %p14876_p13 = pnand %p14875_p8, %p14874_p12  ;;  %p14881_p2 = por %p14880_p3, %p14879_p1 }
  0xb5   : > { %p14877_p0 = pneg %p14876_p13  ;;  %p14883_p7 = por %p14882_p5, %p14881_p2 }
  0xb7   : > { %p14884_p9 = pnand %p14883_p7, %p14877_p0 }
  0xb9   : > { %14887 = shalt.err (!%p14884_p9)
}
  0xba   : > { %s14888_s3 = scalar_lea.vmem %s15322_s11, 128  ;;  %s15023_s30 = smov [#allocation2]  }
  0xbb   : > { %p14889_p12 = scmp.ne.s32.totalorder %s15322_s11, %s14888_s3  ;;  %s14893_s20 = sshll.u32 %s15023_s30, 4  ;;  %s14894_s20 = int_to_ptr.vmem [resolvable:$false] %s14893_s20 }
  0xbc   : > { %s14895_s29 = scalar_lea.vmem %s14894_s20, 256  ;;  %p14896_p4 = scmp.lt.s32.totalorder %s15322_s11, %s14894_s20 }
  0xbd   : > { %p14891_p13 = pnand %p14889_p12, %p14875_p8  ;;  %p14897_p1 = scmp.lt.s32.totalorder %s14895_s29, %s14888_s3 }
  0xbf   : > { %p14892_p10 = pneg %p14891_p13  ;;  %p14898_p3 = por %p14897_p1, %p14896_p4 }
  0xc1   : > { %p14899_p2 = pnand %p14898_p3, %p14892_p10 }
  0xc3   : > { %14902 = shalt.err (!%p14899_p2)
}
  0xc4   : > { %14603 = dma.hbm_to_vmem [thread:$0]  (!%p15326_p11), %s15320_s16, 128, %s15322_s11, %s426_s26  }
  0xc5   : > { %p16842_p0 = scmp.ne.s32.totalorder %s16831_s28, 0 }
  0xc6   : > { %s15358_s15 = sand.u32 (!%p16842_p0), 1, %s15005_s22  }
  0xc7   : > { %445 = sbr.rel (%p16842_p0) target bundleno = 5037 (0x13ad), region = 64  ;;  %s15361_s14 = sshll.u32 (!%p16842_p0), %s15358_s15, 3 }
  0xc8   : > { %s448_s9 = scalar_lea.sflag (!%p16842_p0), [#allocation3], %s15358_s15  ;;  %s16823_s19 = scalar_lea.vmem (!%p16842_p0), [#allocation2], %s15361_s14 }
  0xce   : > { %14976 = dma.done.wait (%p15301_p6), %s448_s9, 128  }
  0xcf   : > { %14978 = vsyncadd (%p15301_p6), %s448_s9, 4294967168  ;;  %p16843_p4 = scmp.eq.s32.totalorder %s15118_s27, 0 }
  0xd1   : > { %14980 = dma.done.wait (%p16843_p4), [#allocation6], 528   ;;  %p16844_p10 = pmov %p16843_p4 }
  0xd2   : > { %p16845_p11 = pmov %p16843_p4 }
  0xd3   : > { %14982 = vsyncadd (%p16844_p10), [#allocation6], 4294966768 }
  0xd4   : > { %14984 = dma.done.wait (%p16845_p11), [#allocation9], 528   ;;  %p16846_p8 = pmov %p16843_p4 }
  0xd5   : > { %p16847_p5 = pmov %p16843_p4 }
  0xd6   : > { %14986 = vsyncadd (%p16846_p8), [#allocation9], 4294966768 }
  0xd7   : > { %14988 = dma.done.wait (%p16847_p5), [#allocation12], 528   ;;  %p16848_p7 = pmov %p16843_p4 }
  0xd8   : > { %vm524_vm0 = vcmask 261120   ;;  %v521_v0 = vld [vmem:[%s16823_s19] sm:$0xff]  ;;  %v15389_v7 = vld [vmem:[#allocation5] sm:$0xff]  ;;  %v15391_v8 = vld [vmem:[#allocation5 + $0x8] sm:$0xff]  ;;  %v15024_v18 = vmov 0.0|0.0   ;;  %vm15025_vm1 = vmmov 0  }
  0xd9   : > { %14990 = vsyncadd (%p16848_p7), [#allocation12], 4294966768  ;;  %v525_v1 = vsel %vm524_vm0, %v521_v0, 0.0  ;;  %v568_v9 = vand.u32 4294901760, %v15389_v7  ;;  %v571_v10 = vand.u32 4294901760, %v15391_v8  ;;  %v15395_v11 = vld [vmem:[#allocation8] sm:$0xff]  ;;  %13907 = vmatprep.subr.bf16.mxu0 %v15024_v18  ;;  %13943 = vmatprep.subr.bf16.mxu1 %v15024_v18 }
  0xda   : > { %526 = vadd.xlane.f32.xlu0 %v525_v1  ;;  %v15397_v12 = vld [vmem:[#allocation8 + $0x8] sm:$0xff]  ;;  %v1064_v13 = vand.u32 4294901760, %v15395_v11  ;;  %v15421_v23 = vld [vmem:[#allocation5 + $0x18] sm:$0xff]  ;;  %v15026_v38 = vmov 0.0   ;;  %vm2044_vm2 = vcmask 64512   ;;  %s15027_s25 = smov 120  }
  0xdb   : > { %v1067_v14 = vand.u32 4294901760, %v15397_v12  ;;  %v15401_v15 = vpack.c.bf16 %v571_v10, %v568_v9  ;;  %v15404_v16 = vsub.f32 %v15389_v7, %v568_v9  ;;  %v15407_v17 = vsub.f32 %v15391_v8, %v571_v10  ;;  %v15419_v22 = vld [vmem:[#allocation5 + $0x10] sm:$0xff]  ;;  %v15428_v27 = vld [vmem:[#allocation8 + $0x18] sm:$0xff]  ;;  %12763 = vmatprep.mubr.msk.f32.mxu0 %vm15025_vm1, %v15026_v38  ;;  %12829 = vmatprep.mubr.msk.f32.mxu1 %vm15025_vm1, %v15026_v38  ;;  %s15028_s26 = smov 112   ;;  %s16849_s20 = sld [smem:[#allocation25_spill]] }
  0xdc   : > { %v15414_v20 = vsub.f32 %v15395_v11, %v1064_v13  ;;  %v574_v24 = vand.u32 4294901760, %v15419_v22  ;;  %v577_v25 = vand.u32 4294901760, %v15421_v23  ;;  %v15426_v26 = vld [vmem:[#allocation8 + $0x10] sm:$0xff]  ;;  %v1073_v31 = vand.u32 4294901760, %v15428_v27  ;;  %s15029_s28 = smov 104   ;;  %s520_s11 = scalar_lea.vmem [#allocation15], %s15361_s14 }
  0xdd   : > { %v15411_v19 = vpack.c.bf16 %v1067_v14, %v1064_v13  ;;  %v15417_v21 = vsub.f32 %v15397_v12, %v1067_v14  ;;  %13909 = vmatpush3.bf16.msra.mxu0 %v15401_v15  ;;  %v649_v28 = vand.u32 4294901760, %v15404_v16  ;;  %v656_v29 = vand.u32 4294901760, %v15407_v17  ;;  %s16824_s3 = sshll.u32 %s15118_s27, 7  ;;  %s16850_s9 = sld [smem:[#allocation28_spill]] }
  0xde   : > { %13910 = vmatprep.subr.bf16.mxu0 %v15024_v18  ;;  %v1070_v30 = vand.u32 4294901760, %v15426_v26  ;;  %v15436_v32 = vpack.c.bf16 %v577_v25, %v574_v24  ;;  %v15439_v33 = vsub.f32 %v15419_v22, %v574_v24  ;;  %v15442_v34 = vsub.f32 %v15421_v23, %v577_v25  ;;  %s12059_s18 = sshll.u32 %s520_s11, 4  ;;  %s12033_s16 = scalar_lea.sflag [#allocation16], %s15358_s15  ;;  %s12060_s18 = int_to_ptr.vmem [resolvable:$true] %s12059_s18 }
  0xdf   : > { %13945 = vmatpush3.bf16.msra.mxu1 %v15411_v19  ;;  %v15451_v37 = vsub.f32 %v15428_v27, %v1073_v31  ;;  %v650_v39 = vsub.f32 %v15404_v16, %v649_v28  ;;  %v657_v40 = vsub.f32 %v15407_v17, %v656_v29  ;;  %v1145_v41 = vand.u32 4294901760, %v15414_v20  ;;  %p16851_p9 = scmp.ne.s32.totalorder %s16838_s10, 0 }
  0xe0   : > { %13946 = vmatprep.subr.bf16.mxu1 %v15024_v18  ;;  %v15445_v35 = vpack.c.bf16 %v1073_v31, %v1070_v30  ;;  %v15448_v36 = vsub.f32 %v15426_v26, %v1070_v30  ;;  %v1152_v42 = vand.u32 4294901760, %v15417_v21  ;;  %v663_v43 = vand.u32 4294901760, %v15439_v33 }
  0xe1   : > { %13912 = vmatpush3.bf16.msra.mxu0 %v15436_v32  ;;  %v670_v44 = vand.u32 4294901760, %v15442_v34  ;;  %v651_v45 = vand.u32 4294901760, %v650_v39  ;;  %v658_v46 = vand.u32 4294901760, %v657_v40  ;;  %v1146_v47 = vsub.f32 %v15414_v20, %v1145_v41  ;;  %v15543_v39 = vld [vmem:[#allocation11 + $0x8] sm:$0xff] }
  0xe2   : > { %13913 = vmatprep.subr.bf16.mxu0 %v15024_v18  ;;  %v1153_v48 = vsub.f32 %v15417_v21, %v1152_v42  ;;  %v664_v49 = vsub.f32 %v15439_v33, %v663_v43  ;;  %v1159_v51 = vand.u32 4294901760, %v15448_v36  ;;  %v1166_v52 = vand.u32 4294901760, %v15451_v37 }
  0xe3   : > { %13948 = vmatpush3.bf16.msra.mxu1 %v15445_v35  ;;  %v671_v50 = vsub.f32 %v15442_v34, %v670_v44  ;;  %v13914_v53 = vpack.c.bf16 %v658_v46, %v651_v45  ;;  %v1147_v54 = vand.u32 4294901760, %v1146_v47  ;;  %v13920_v1 = vpack.c.bf16 %v15407_v17, %v15404_v16  ;;  %v12239_v17 = vld [vmem:[%s16805_s1] ss:$0 sm:$0xff] }
  0xe4   : > { %13949 = vmatprep.subr.bf16.mxu1 %v15024_v18  ;;  %v1154_v55 = vand.u32 4294901760, %v1153_v48  ;;  %v665_v56 = vand.u32 4294901760, %v664_v49  ;;  %v1160_v58 = vsub.f32 %v15448_v36, %v1159_v51  ;;  %v1167_v59 = vsub.f32 %v15451_v37, %v1166_v52 }
  0xe5   : > { %v672_v57 = vand.u32 4294901760, %v671_v50  ;;  %v13968_v9 = vpack.c.bf16 %v1152_v42, %v1145_v41  ;;  %v15483_v10 = vpack.c.bf16 %v670_v44, %v663_v43  ;;  %v15485_v13 = vpack.c.bf16 %v1166_v52, %v1159_v51  ;;  %v15551_v42 = vld [vmem:[#allocation11 + $0x10] sm:$0xff]  ;;  %v15553_v43 = vld [vmem:[#allocation11 + $0x18] sm:$0xff] }
  0xe6   : > { %v13950_v60 = vpack.c.bf16 %v1154_v55, %v1147_v54  ;;  %v1161_v62 = vand.u32 4294901760, %v1160_v58  ;;  %v1168_v63 = vand.u32 4294901760, %v1167_v59  ;;  %v1563_v41 = vand.u32 4294901760, %v15543_v39 }
  0xe7   : > { %v13917_v61 = vpack.c.bf16 %v672_v57, %v665_v56  ;;  %v1566_v46 = vand.u32 4294901760, %v15551_v42  ;;  %v1569_v47 = vand.u32 4294901760, %v15553_v43 }
  0xe8   : > { %v15565_v45 = vsub.f32 %v15543_v39, %v1563_v41 }
  0xe9   : > { %v1654_v48 = vsub.f32 %v15551_v42, %v1566_v46  ;;  %v1661_v49 = vsub.f32 %v15553_v43, %v1569_v47  ;;  %v13983_v55 = vpack.c.bf16 %v1569_v47, %v1566_v46 }
  0xea   : > { %v1648_v51 = vand.u32 4294901760, %v15565_v45 }
  0xeb   : > { %v1662_v54 = vand.u32 4294901760, %v1661_v49 }
  0xec   : > { %v1649_v52 = vsub.f32 %v15565_v45, %v1648_v51 }
  0xed   : > { %v1663_v57 = vsub.f32 %v1661_v49, %v1662_v54 }
 0x167   : > { %v527_v2 = vpop.xlane.xlu0 %526 }
 0x168   : > { %v529_v3 = vmul.f32 0.03125, %v527_v2  ;;  %v13956_v2 = vpack.c.bf16 %v15417_v21, %v15414_v20  ;;  %v12240_v21 = vld [vmem:[%s16806_s2] ss:$0 sm:$0xff] }
 0x16a   : > { %v15384_v4 = vsub.f32 %v521_v0, %v529_v3  ;;  %v13953_v0 = vpack.c.bf16 %v1168_v63, %v1161_v62  ;;  %v13923_v3 = vpack.c.bf16 %v15442_v34, %v15439_v33  ;;  %v13995_v63 = vpack.c.bf16 %v1661_v49, %v1654_v48 }
 0x16c   : > { %v531_v5 = vmul.f32 %v15384_v4, %v15384_v4 }
 0x16e   : > { %v532_v6 = vsel %vm524_vm0, %v531_v5, 0.0  ;;  %v13959_v5 = vpack.c.bf16 %v15451_v37, %v15448_v36  ;;  %v15541_v37 = vld [vmem:[#allocation11] sm:$0xff] }
 0x16f   : > { %533 = vadd.xlane.f32.xlu0 %v532_v6  ;;  %v13932_v6 = vpack.c.bf16 %v656_v29, %v649_v28  ;;  %v1560_v40 = vand.u32 4294901760, %v15541_v37 }
 0x171   : > { %v15562_v44 = vsub.f32 %v15541_v37, %v1560_v40 }
 0x173   : > { %v1641_v50 = vand.u32 4294901760, %v15562_v44  ;;  %v13992_v62 = vpack.c.bf16 %v15565_v45, %v15562_v44 }
 0x185   : > { %2964 = vrot.lane.b32.xlu0 %v15389_v7, %s15027_s25 }
 0x189   : > { %3468 = vrot.lane.b32.xlu0 %v15395_v11, %s15027_s25 }
 0x18d   : > { %3472 = vrot.lane.b32.xlu0 %v15426_v26, %s15027_s25 }
 0x1fc   : > { %v534_v14 = vpop.xlane.xlu0 %533 }
 0x1fd   : > { %v535_v24 = vmul.f32 0.03125, %v534_v14 }
 0x1ff   : > { %v536_v25 = vadd.f32 1e-05, %v535_v24 }
 0x201   : > { %14671 = vrsqrt.f32 %v536_v25 }
 0x20b   : > { %v14672_v16 = vpop.eup %14671 }
 0x20c   : > { %v538_v20 = vmul.f32 %v14672_v16, %v15384_v4 }
 0x20e   : > { %v545_v28 = vmul.f32 %v12239_v17, %v538_v20 }
 0x210   : > { %v552_v29 = vadd.f32 %v12240_v21, %v545_v28 }
 0x212   : > { %v565_v30 = vsel %vm524_vm0, %v552_v29, 0 }
 0x213   : > { %v15495_v31 = vand.u32 4294901760, %v565_v30 }
 0x215   : > { %v15498_v33 = vsub.f32 %v565_v30, %v15495_v31 }
 0x217   : > { %v15501_v34 = vand.u32 4294901760, %v15498_v33 }
 0x219   : > { %v639_v36 = vsub.f32 %v15498_v33, %v15501_v34 }
 0x21b   : > { %v15505_v4 = vand.u32 4294901760, %v639_v36 }
 0x21d   : > { %12764 = vmatmul.mubr.f32.vlgmr.msra.gmra.mrb[0].mxu0 %v15505_v4  ;;  %12830 = vmatmul.mubr.f32.vlgmr.msra.gmra.mrb[0].mxu1 %v15505_v4 }
 0x21e   : > { %13915 = vmatpush3.bf16.msra.mxu0 %v13914_v53  ;;  %13951 = vmatpush3.bf16.msra.mxu1 %v13950_v60  ;;  %v1655_v53 = vand.u32 4294901760, %v1654_v48  ;;  %v1664_v60 = vand.u32 4294901760, %v1663_v57 }
 0x21f   : > { %13916 = vmatprep.subr.bf16.mxu0 %v15024_v18  ;;  %13952 = vmatprep.subr.bf16.mxu1 %v15024_v18 }
 0x220   : > { %12774 = vmatprep.mubr.msk.f32.mxu0 %vm15025_vm1, %v15026_v38  ;;  %12840 = vmatprep.mubr.msk.f32.mxu1 %vm15025_vm1, %v15026_v38  ;;  %v1656_v56 = vsub.f32 %v1654_v48, %v1655_v53 }
 0x222   : > { %13918 = vmatpush3.bf16.msra.mxu0 %v13917_v61  ;;  %13954 = vmatpush3.bf16.msra.mxu1 %v13953_v0  ;;  %v1657_v59 = vand.u32 4294901760, %v1656_v56  ;;  %v14004_v0 = vpack.c.bf16 %v1648_v51, %v1641_v50 }
 0x223   : > { %13919 = vmatprep.subr.bf16.mxu0 %v15024_v18  ;;  %13955 = vmatprep.subr.bf16.mxu1 %v15024_v18 }
 0x224   : > { %v13989_v61 = vpack.c.bf16 %v1664_v60, %v1657_v59 }
 0x225   : > { %12775 = vmatmul.mubr.f32.vlgmr.msra.gmra.mrb[0].mxu0 %v15495_v31  ;;  %12841 = vmatmul.mubr.f32.vlgmr.msra.gmra.mrb[0].mxu1 %v15495_v31 }
 0x226   : > { %13921 = vmatpush3.bf16.msra.mxu0 %v13920_v1  ;;  %13957 = vmatpush3.bf16.msra.mxu1 %v13956_v2  ;;  %v14007_v1 = vpack.c.bf16 %v1662_v54, %v1655_v53  ;;  %v15629_v2 = vld [vmem:[#allocation7] ss:$0 sm:$0xff] }
 0x227   : > { %13922 = vmatprep.subr.bf16.mxu0 %v15024_v18  ;;  %13958 = vmatprep.subr.bf16.mxu1 %v15024_v18 }
 0x228   : > { %12785 = vmatprep.mubr.msk.f32.mxu0 %vm15025_vm1, %v15026_v38  ;;  %12851 = vmatprep.mubr.msk.f32.mxu1 %vm15025_vm1, %v15026_v38 }
 0x229   : > { %2976 = vrot.lane.b32.xlu0 %v15629_v2, %s15027_s25 }
 0x22a   : > { %13924 = vmatpush3.bf16.msra.mxu0 %v13923_v3  ;;  %13960 = vmatpush3.bf16.msra.mxu1 %v13959_v5  ;;  %v15631_v3 = vld [vmem:[#allocation10] ss:$0 sm:$0xff] }
 0x22b   : > { %13925 = vmatprep.subr.bf16.mxu0 %v15024_v18  ;;  %13961 = vmatprep.subr.bf16.mxu1 %v15024_v18 }
 0x22d   : > { %12786 = vmatmul.mubr.f32.vlgmr.msra.gmra.mrb[0].mxu0 %v15498_v33  ;;  %12852 = vmatmul.mubr.f32.vlgmr.msra.gmra.mrb[0].mxu1 %v15498_v33 }
 0x22e   : > { %13927 = vmatpush3.bf16.msra.mxu0 %v15401_v15  ;;  %13963 = vmatpush3.bf16.msra.mxu1 %v15411_v19 }
 0x22f   : > { %13928 = vmatprep.subr.bf16.mxu0 %v15024_v18  ;;  %13964 = vmatprep.subr.bf16.mxu1 %v15024_v18 }
 0x230   : > { %12796 = vmatprep.mubr.msk.f32.mxu0 %vm15025_vm1, %v15026_v38  ;;  %12862 = vmatprep.mubr.msk.f32.mxu1 %vm15025_vm1, %v15026_v38 }
 0x231   : > { %3972 = vrot.lane.b32.xlu0 %v15541_v37, %s15027_s25 }
 0x232   : > { %13930 = vmatpush3.bf16.msra.mxu0 %v15436_v32  ;;  %13966 = vmatpush3.bf16.msra.mxu1 %v15445_v35 }
 0x233   : > { %13931 = vmatprep.subr.bf16.mxu0 %v15024_v18  ;;  %13967 = vmatprep.subr.bf16.mxu1 %v15024_v18 }
 0x235   : > { %12797 = vmatmul.mubr.f32.vlgmr.msra.gmra.mrb[0].mxu0 %v15501_v34  ;;  %12863 = vmatmul.mubr.f32.vlgmr.msra.gmra.mrb[0].mxu1 %v15501_v34 }
 0x236   : > { %13933 = vmatpush3.bf16.msra.mxu0 %v13932_v6  ;;  %13969 = vmatpush3.bf16.msra.mxu1 %v13968_v9 }
 0x237   : > { %13934 = vmatprep.subr.bf16.mxu0 %v15024_v18  ;;  %13970 = vmatprep.subr.bf16.mxu1 %v15024_v18 }
 0x238   : > { %12807 = vmatprep.mubr.msk.f32.mxu0 %vm15025_vm1, %v15026_v38  ;;  %12873 = vmatprep.mubr.msk.f32.mxu1 %vm15025_vm1, %v15026_v38 }
 0x239   : > { %3976 = vrot.lane.b32.xlu0 %v15551_v42, %s15027_s25 }
 0x23a   : > { %13936 = vmatpush3.bf16.msra.mxu0 %v15483_v10  ;;  %13972 = vmatpush3.bf16.msra.mxu1 %v15485_v13 }
 0x23b   : > { %13937 = vmatprep.subr.bf16.mxu0 %v15024_v18  ;;  %13973 = vmatprep.subr.bf16.mxu1 %v15024_v18 }
 0x23d   : > { %12808 = vmatmul.mubr.f32.vlgmr.msra.gmra.mrb[0].mxu0 %v15495_v31  ;;  %12874 = vmatmul.mubr.f32.vlgmr.msra.gmra.mrb[0].mxu1 %v15495_v31 }
 0x23e   : > { %13939 = vmatpush3.bf16.msra.mxu0 %v15401_v15  ;;  %13975 = vmatpush3.bf16.msra.mxu1 %v15411_v19  ;;  %v13980_v15 = vpack.c.bf16 %v1563_v41, %v1560_v40  ;;  %v1642_v19 = vsub.f32 %v15562_v44, %v1641_v50  ;;  %v15650_v44 = vld [vmem:[#allocation13] ss:$0 sm:$0xff] }
 0x23f   : > { %13940 = vmatprep.subr.bf16.mxu0 %v15024_v18  ;;  %13976 = vmatprep.subr.bf16.mxu1 %v15024_v18 }
 0x240   : > { %12818 = vmatprep.mubr.msk.f32.mxu0 %vm15025_vm1, %v15026_v38  ;;  %12884 = vmatprep.mubr.msk.f32.mxu1 %vm15025_vm1, %v15026_v38 }
 0x242   : > { %13942 = vmatpush3.bf16.msra.mxu0 %v15436_v32  ;;  %13978 = vmatpush3.bf16.msra.mxu1 %v15445_v35  ;;  %v1643_v32 = vand.u32 4294901760, %v1642_v19  ;;  %v1650_v35 = vand.u32 4294901760, %v1649_v52 }
 0x243   : > { %13979 = vmatprep.subr.bf16.mxu0 %v15024_v18  ;;  %12953 = vmatprep.subr.mxu1 %v15026_v38 }
 0x244   : > { %v13986_v58 = vpack.c.bf16 %v1650_v35, %v1643_v32 }
 0x245   : > { %12819 = vmatmul.mubr.f32.vlgmr.msra.gmra.mrb[0].mxu0 %v15495_v31  ;;  %12885 = vmatmul.mubr.f32.vlgmr.msra.gmra.mrb[0].mxu1 %v15495_v31 }
 0x246   : > { %13981 = vmatpush3.bf16.msra.mxu0 %v13980_v15  ;;  %12895 = vmatprep.mubr.msk.f32.mxu0 %vm15025_vm1, %v15026_v38 }
 0x247   : > { %13982 = vmatprep.subr.bf16.mxu0 %v15024_v18  ;;  %12955 = vmatprep.mubr.msk.f32.mxu1 %vm15025_vm1, %v15026_v38 }
 0x24a   : > { %13984 = vmatpush3.bf16.msra.mxu0 %v13983_v55 }
 0x24b   : > { %13985 = vmatprep.subr.bf16.mxu0 %v15024_v18 }
 0x24d   : > { %12896 = vmatmul.mubr.f32.vlgmr.msra.gmra.mrb[2].mxu0 %v15505_v4 }
 0x24e   : > { %13987 = vmatpush3.bf16.msra.mxu0 %v13986_v58  ;;  %12906 = vmatprep.mubr.msk.f32.mxu0 %vm15025_vm1, %v15026_v38 }
 0x24f   : > { %13988 = vmatprep.subr.bf16.mxu0 %v15024_v18 }
 0x252   : > { %13990 = vmatpush3.bf16.msra.mxu0 %v13989_v61 }
 0x253   : > { %13991 = vmatprep.subr.bf16.mxu0 %v15024_v18 }
 0x255   : > { %12907 = vmatmul.mubr.f32.vlgmr.msra.gmra.mrb[2].mxu0 %v15495_v31 }
 0x256   : > { %13993 = vmatpush3.bf16.msra.mxu0 %v13992_v62  ;;  %12917 = vmatprep.mubr.msk.f32.mxu0 %vm15025_vm1, %v15026_v38 }
 0x257   : > { %13994 = vmatprep.subr.bf16.mxu0 %v15024_v18 }
 0x25a   : > { %13996 = vmatpush3.bf16.msra.mxu0 %v13995_v63 }
 0x25b   : > { %13997 = vmatprep.subr.bf16.mxu0 %v15024_v18 }
 0x25d   : > { %12918 = vmatmul.mubr.f32.vlgmr.msra.gmra.mrb[2].mxu0 %v15498_v33 }
 0x25e   : > { %13999 = vmatpush3.bf16.msra.mxu0 %v13980_v15  ;;  %12928 = vmatprep.mubr.msk.f32.mxu0 %vm15025_vm1, %v15026_v38 }
 0x25f   : > { %14000 = vmatprep.subr.bf16.mxu0 %v15024_v18 }
 0x262   : > { %14002 = vmatpush3.bf16.msra.mxu0 %v13983_v55 }
 0x263   : > { %14003 = vmatprep.subr.bf16.mxu0 %v15024_v18 }
 0x265   : > { %12929 = vmatmul.mubr.f32.vlgmr.msra.gmra.mrb[2].mxu0 %v15501_v34 }
 0x266   : > { %14005 = vmatpush3.bf16.msra.mxu0 %v14004_v0  ;;  %12939 = vmatprep.mubr.msk.f32.mxu0 %vm15025_vm1, %v15026_v38 }
 0x267   : > { %14006 = vmatprep.subr.bf16.mxu0 %v15024_v18 }
 0x26a   : > { %14008 = vmatpush3.bf16.msra.mxu0 %v14007_v1 }
 0x26b   : > { %14009 = vmatprep.subr.bf16.mxu0 %v15024_v18 }
 0x26d   : > { %12940 = vmatmul.mubr.f32.vlgmr.msra.gmra.mrb[2].mxu0 %v15495_v31 }
 0x26e   : > { %14011 = vmatpush3.bf16.msra.mxu0 %v13980_v15  ;;  %12950 = vmatprep.mubr.msk.f32.mxu0 %vm15025_vm1, %v15026_v38 }
 0x26f   : > { %14012 = vmatprep.subr.bf16.mxu0 %v15024_v18 }
 0x272   : > { %14014 = vmatpush3.bf16.msra.mxu0 %v13983_v55 }
 0x273   : > { %14015 = vmatprep.subr.bf16.mxu0 %v15024_v18 }
 0x275   : > { %12951 = vmatmul.mubr.f32.vlgmr.msra.gmra.mrb[2].mxu0 %v15495_v31 }
 0x276   : > { %13021 = vmatprep.mubr.msk.f32.mxu0 %vm15025_vm1, %v15026_v38 }
 0x318   : > { %v1048_v5 = vpop.f32.mrb[0].mxu0  ;;  %v1544_v6 = vpop.f32.mrb[0].mxu1 }
 0x319   : > { %v14339_v9 = vadd.f32 %v15629_v2, %v1048_v5  ;;  %v14340_v10 = vadd.f32 %v15631_v3, %v1544_v6  ;;  %v12820_v13 = vpop.f32.mrb[1].mxu0  ;;  %v12886_v14 = vpop.f32.mrb[1].mxu1 }
 0x31b   : > { %v2046_v24 = vsel %vm2044_vm2, %v14339_v9, 0  ;;  %v2049_v25 = vsel %vm2044_vm2, %v14340_v10, 0 }
 0x31c   : > { %v2117_v16 = vand.u32 4294901760, %v2046_v24  ;;  %v2052_v17 = vand.u32 4294901760, %v2049_v25 }
 0x31e   : > { %v2118_v20 = vsub.f32 %v2046_v24, %v2117_v16  ;;  %v2129_v21 = vsub.f32 %v2049_v25, %v2052_v17  ;;  %12954 = vmatpush3.xpose.msra.mxu1 %v2052_v17 }
 0x31f   : > { %12958 = vmatprep.subr.mxu1 %v15026_v38 }
 0x320   : > { %v2119_v28 = vand.u32 4294901760, %v2118_v20  ;;  %v2130_v29 = vand.u32 4294901760, %v2129_v21 }
 0x322   : > { %v2120_v30 = vsub.f32 %v2118_v20, %v2119_v28  ;;  %v2131_v36 = vsub.f32 %v2129_v21, %v2130_v29 }
 0x324   : > { %v2121_v40 = vand.u32 4294901760, %v2120_v30  ;;  %v2132_v41 = vand.u32 4294901760, %v2131_v36 }
 0x326   : > { %12956 = vmatmul.mubr.f32.vlgmr.msra.gmra.mrb[2].mxu1 %v2121_v40 }
 0x327   : > { %12959 = vmatpush3.xpose.msra.mxu1 %v2132_v41  ;;  %12960 = vmatprep.mubr.msk.f32.mxu1 %vm15025_vm1, %v15026_v38 }
 0x328   : > { %12963 = vmatprep.subr.mxu1 %v15026_v38 }
 0x32e   : > { %12961 = vmatmul.mubr.f32.vlgmr.msra.gmra.mrb[2].mxu1 %v2117_v16 }
 0x32f   : > { %12964 = vmatpush3.xpose.msra.mxu1 %v2129_v21  ;;  %12965 = vmatprep.mubr.msk.f32.mxu1 %vm15025_vm1, %v15026_v38 }
 0x330   : > { %12968 = vmatprep.subr.mxu1 %v15026_v38 }
 0x336   : > { %12966 = vmatmul.mubr.f32.vlgmr.msra.gmra.mrb[2].mxu1 %v2118_v20 }
 0x337   : > { %12969 = vmatpush3.xpose.msra.mxu1 %v2052_v17  ;;  %12970 = vmatprep.mubr.msk.f32.mxu1 %vm15025_vm1, %v15026_v38 }
 0x338   : > { %12973 = vmatprep.subr.mxu1 %v15026_v38 }
 0x33e   : > { %12971 = vmatmul.mubr.f32.vlgmr.msra.gmra.mrb[2].mxu1 %v2119_v28 }
 0x33f   : > { %12974 = vmatpush3.xpose.msra.mxu1 %v2130_v29  ;;  %12975 = vmatprep.mubr.msk.f32.mxu1 %vm15025_vm1, %v15026_v38 }
 0x340   : > { %12978 = vmatprep.subr.mxu1 %v15026_v38 }
 0x346   : > { %12976 = vmatmul.mubr.f32.vlgmr.msra.gmra.mrb[2].mxu1 %v2117_v16 }
 0x347   : > { %12979 = vmatpush3.xpose.msra.mxu1 %v2052_v17  ;;  %12980 = vmatprep.mubr.msk.f32.mxu1 %vm15025_vm1, %v15026_v38 }
 0x348   : > { %v2040_v45 = vpop.f32.mrb[2].mxu0  ;;  %12983 = vmatprep.subr.mxu1 %v15026_v38 }
 0x349   : > { %v14341_v46 = vadd.f32 %v15650_v44, %v2040_v45  ;;  %v12952_v47 = vpop.f32.mrb[3].mxu0 }
 0x34b   : > { %v15656_v48 = vand.u32 4294901760, %v14341_v46 }
 0x34d   : > { %v15711_v62 = vsub.f32 %v14341_v46, %v15656_v48 }
 0x34e   : > { %12981 = vmatmul.mubr.f32.vlgmr.msra.gmra.mrb[2].mxu1 %v2117_v16 }
 0x34f   : > { %12984 = vmatpush3.msra.mxu1 %v15656_v48  ;;  %12985 = vmatprep.mubr.msk.f32.mxu1 %vm15025_vm1, %v15026_v38  ;;  %v2592_v16 = vand.u32 4294901760, %v15711_v62 }
 0x350   : > { %12988 = vmatprep.subr.mxu1 %v15026_v38 }
 0x351   : > { %v2593_v36 = vsub.f32 %v15711_v62, %v2592_v16 }
 0x421   : > { %v2493_v49 = vpop.f32.mrb[2].mxu1 }
 0x422   : > { %v2497_v50 = vmul.f32 0.35355338, %v2493_v49  ;;  %v12982_v51 = vpop.f32.mrb[3].mxu1 }
 0x423   : > { %v2594_v51 = vand.u32 4294901760, %v2593_v36 }
 0x424   : > { %v2498_v15 = vsel %vm2044_vm2, %v2497_v50, -inf }
 0x425   : > { %2499 = vmax.xlane.f32.xlu1 %v2498_v15 }
 0x4b2   : > { %v2500_v19 = vpop.xlane.xlu1 %2499 }
 0x4b3   : > { %v2501_v52 = vsub.f32 %v2497_v50, %v2500_v19 }
 0x4b5   : > { %v2502_v53 = vmul.f32 1.442695, %v2501_v52 }
 0x4b7   : > { %14673 = vpow2.f32 %v2502_v53 }
 0x4c1   : > { %v14674_v7 = vpop.eup %14673 }
 0x4c2   : > { %v2504_v54 = vsel %vm2044_vm2, %v14674_v7, 0.0 }
 0x4c3   : > { %2505 = vadd.xlane.f32.xlu1 %v2504_v54 }
 0x4d4   : > { %2966 = vrot.lane.b32.xlu1 %v15391_v8, %s15027_s25  ;;  %v2965_v8 = vpop.permute.xlu0 %2964 }
 0x4d5   : > { %v2980_v11 = vand.u32 4294901760, %v2965_v8 }
 0x4d8   : > { %2968 = vrot.lane.b32.xlu1 %v15419_v22, %s15027_s25  ;;  %v15738_v41 = vpop.permute.xlu0 %3468 }
 0x4dc   : > { %2970 = vrot.lane.b32.xlu1 %v15421_v23, %s15027_s25  ;;  %v15692_v23 = vsub.f32 %v2965_v8, %v2980_v11  ;;  %v15749_v15 = vpop.permute.xlu0 %3472 }
 0x4de   : > { %v3061_v55 = vand.u32 4294901760, %v15692_v23 }
 0x4e0   : > { %3470 = vrot.lane.b32.xlu1 %v15397_v12, %s15027_s25  ;;  %v3062_v58 = vsub.f32 %v15692_v23, %v3061_v55  ;;  %v15759_v53 = vpop.permute.xlu0 %2976 }
 0x4e2   : > { %v3063_v6 = vand.u32 4294901760, %v3062_v58  ;;  %v3484_v58 = vand.u32 4294901760, %v15738_v41 }
 0x4e4   : > { %3474 = vrot.lane.b32.xlu1 %v15428_v27, %s15027_s25  ;;  %v3973_v54 = vpop.permute.xlu0 %3972 }
 0x4e8   : > { %3480 = vrot.lane.b32.xlu1 %v15631_v3, %s15027_s25 }
 0x4ec   : > { %3974 = vrot.lane.b32.xlu1 %v15543_v39, %s15027_s25 }
 0x4f0   : > { %3978 = vrot.lane.b32.xlu1 %v15553_v43, %s15027_s25 }
 0x550   : > { %v2506_v22 = vpop.xlane.xlu1 %2505 }
 0x551   : > { %14675 = vrcp.f32 %v2506_v22  ;;  %v3988_v22 = vand.u32 4294901760, %v3973_v54 }
 0x554   : > { %v2967_v26 = vpop.permute.xlu1 %2966 }
 0x555   : > { %v2983_v12 = vand.u32 4294901760, %v2967_v26 }
 0x557   : > { %v15695_v27 = vsub.f32 %v2967_v26, %v2983_v12  ;;  %v15697_v32 = vpack.c.bf16 %v2983_v12, %v2980_v11  ;;  %v3977_v12 = vpop.permute.xlu0 %3976 }
 0x558   : > { %v2969_v35 = vpop.permute.xlu1 %2968 }
 0x559   : > { %v3068_v56 = vand.u32 4294901760, %v15695_v27  ;;  %v2986_v57 = vand.u32 4294901760, %v2969_v35  ;;  %14017 = vmatpush3.bf16.msra.mxu0 %v15697_v32  ;;  %v14028_v50 = vpack.c.bf16 %v15695_v27, %v15692_v23 }
 0x55a   : > { %14018 = vmatprep.subr.bf16.mxu0 %v15024_v18 }
 0x55b   : > { %v14676_v59 = vpop.eup %14675  ;;  %v3069_v60 = vsub.f32 %v15695_v27, %v3068_v56  ;;  %v15708_v61 = vsub.f32 %v2969_v35, %v2986_v57  ;;  %v14040_v11 = vpack.c.bf16 %v3068_v56, %v3061_v55  ;;  %v15791_v27 = vsub.f32 %v3973_v54, %v3988_v22 }
 0x55c   : > { %v15713_v63 = vmul.f32 %v14676_v59, %v14674_v7  ;;  %v2971_v0 = vpop.permute.xlu1 %2970  ;;  %v3994_v35 = vand.u32 4294901760, %v3977_v12 }
 0x55d   : > { %v3070_v1 = vand.u32 4294901760, %v3069_v60  ;;  %v3075_v5 = vand.u32 4294901760, %v15708_v61  ;;  %v2989_v9 = vand.u32 4294901760, %v2971_v0  ;;  %v4069_v60 = vand.u32 4294901760, %v15791_v27 }
 0x55e   : > { %v2511_v10 = vsel %vm2044_vm2, %v15713_v63, 0 }
 0x55f   : > { %v3076_v13 = vsub.f32 %v15708_v61, %v3075_v5  ;;  %v15721_v14 = vpack.c.bf16 %v2989_v9, %v2986_v57  ;;  %v3081_v24 = vsub.f32 %v2971_v0, %v2989_v9  ;;  %v15723_v25 = vand.u32 4294901760, %v2511_v10 }
 0x560   : > { %v14022_v20 = vpack.c.bf16 %v3070_v1, %v3063_v6  ;;  %v15742_v46 = vpop.permute.xlu1 %3470  ;;  %v15815_v1 = vsub.f32 %v15738_v41, %v3484_v58  ;;  %v3490_v6 = vand.u32 4294901760, %v15749_v15 }
 0x561   : > { %v3082_v17 = vand.u32 4294901760, %v3081_v24  ;;  %14020 = vmatpush3.bf16.msra.mxu0 %v15721_v14  ;;  %v15729_v21 = vsub.f32 %v2511_v10, %v15723_v25  ;;  %v3077_v28 = vand.u32 4294901760, %v3076_v13  ;;  %v14031_v52 = vpack.c.bf16 %v3081_v24, %v15708_v61 }
 0x562   : > { %14021 = vmatprep.subr.bf16.mxu0 %v15024_v18  ;;  %v3487_v59 = vand.u32 4294901760, %v15742_v46  ;;  %v15805_v61 = vsub.f32 %v3977_v12, %v3994_v35 }
 0x563   : > { %v3083_v29 = vsub.f32 %v3081_v24, %v3082_v17  ;;  %v2581_v30 = vand.u32 4294901760, %v15729_v21  ;;  %v14043_v23 = vpack.c.bf16 %v3082_v17, %v3075_v5  ;;  %v3565_v17 = vand.u32 4294901760, %v15815_v1 }
 0x564   : > { %13022 = vmatmul.mubr.f32.vlgmr.msra.gmra.mrb[4].mxu0 %v15505_v4  ;;  %v15753_v19 = vpop.permute.xlu1 %3474  ;;  %v15818_v5 = vsub.f32 %v15742_v46, %v3487_v59  ;;  %v4083_v9 = vand.u32 4294901760, %v15805_v61 }
 0x565   : > { %v3084_v40 = vand.u32 4294901760, %v3083_v29  ;;  %14023 = vmatpush3.bf16.msra.mxu0 %v14022_v20  ;;  %13032 = vmatprep.mubr.msk.f32.mxu0 %vm15025_vm1, %v15026_v38  ;;  %v2582_v45 = vsub.f32 %v15729_v21, %v2581_v30  ;;  %v3493_v10 = vand.u32 4294901760, %v15753_v19  ;;  %v3566_v41 = vsub.f32 %v15815_v1, %v3565_v17 }
 0x566   : > { %14024 = vmatprep.subr.bf16.mxu0 %v15024_v18  ;;  %v3572_v20 = vand.u32 4294901760, %v15818_v5 }
 0x567   : > { %v14025_v47 = vpack.c.bf16 %v3084_v40, %v3077_v28  ;;  %v2583_v49 = vand.u32 4294901760, %v2582_v45  ;;  %v15849_v29 = vsub.f32 %v15753_v19, %v3493_v10  ;;  %v15860_v40 = vpack.c.bf16 %v3487_v59, %v3484_v58 }
 0x568   : > { %v15763_v7 = vpop.permute.xlu1 %3480  ;;  %v3567_v19 = vand.u32 4294901760, %v3566_v41 }
 0x569   : > { %14026 = vmatpush3.bf16.msra.mxu0 %v14025_v47  ;;  %12986 = vmatmul.mubr.f32.vlgmr.msra.gmra.mrb[4].mxu1 %v2583_v49  ;;  %v3573_v47 = vsub.f32 %v15818_v5, %v3572_v20  ;;  %v3586_v49 = vand.u32 4294901760, %v15849_v29 }
 0x56a   : > { %14027 = vmatprep.subr.bf16.mxu0 %v15024_v18  ;;  %12989 = vmatpush3.msra.mxu1 %v2594_v51 }
 0x56b   : > { %12990 = vmatprep.mubr.msk.f32.mxu1 %vm15025_vm1, %v15026_v38  ;;  %12993 = vmatprep.subr.mxu1 %v15026_v38  ;;  %v3587_v54 = vsub.f32 %v15849_v29, %v3586_v49 }
 0x56c   : > { %13033 = vmatmul.mubr.f32.vlgmr.msra.gmra.mrb[4].mxu0 %v15495_v31  ;;  %v3975_v8 = vpop.permute.xlu1 %3974 }
 0x56d   : > { %14029 = vmatpush3.bf16.msra.mxu0 %v14028_v50  ;;  %13043 = vmatprep.mubr.msk.f32.mxu0 %vm15025_vm1, %v15026_v38  ;;  %v3991_v26 = vand.u32 4294901760, %v3975_v8 }
 0x56e   : > { %14030 = vmatprep.subr.bf16.mxu0 %v15024_v18 }
 0x56f   : > { %v15793_v56 = vsub.f32 %v3975_v8, %v3991_v26  ;;  %v15829_v24 = vpack.c.bf16 %v3991_v26, %v3988_v22 }
 0x570   : > { %v3979_v55 = vpop.permute.xlu1 %3978 }
 0x571   : > { %14032 = vmatpush3.bf16.msra.mxu0 %v14031_v52  ;;  %12991 = vmatmul.mubr.f32.vlgmr.msra.gmra.mrb[4].mxu1 %v15723_v25  ;;  %v3997_v57 = vand.u32 4294901760, %v3979_v55  ;;  %v4076_v0 = vand.u32 4294901760, %v15793_v56  ;;  %v3574_v52 = vand.u32 4294901760, %v3573_v47 }
 0x572   : > { %14033 = vmatprep.subr.bf16.mxu0 %v15024_v18  ;;  %12994 = vmatpush3.msra.mxu1 %v15711_v62 }
 0x573   : > { %12995 = vmatprep.mubr.msk.f32.mxu1 %vm15025_vm1, %v15026_v38  ;;  %12998 = vmatprep.subr.mxu1 %v15026_v38  ;;  %v15811_v62 = vsub.f32 %v3979_v55, %v3997_v57  ;;  %v4077_v13 = vsub.f32 %v15793_v56, %v4076_v0  ;;  %v15854_v36 = vpack.c.bf16 %v3997_v57, %v3994_v35 }
 0x574   : > { %13044 = vmatmul.mubr.f32.vlgmr.msra.gmra.mrb[4].mxu0 %v15498_v33  ;;  %v14058_v26 = vpack.c.bf16 %v3574_v52, %v3567_v19  ;;  %v14064_v35 = vpack.c.bf16 %v15818_v5, %v15815_v1  ;;  %v14112_v58 = vpack.c.bf16 %v4076_v0, %v4069_v60  ;;  %v16004_v52 = vld [vmem:[#allocation5 + $0x8] sm:$0xff] }
 0x575   : > { %14035 = vmatpush3.bf16.msra.mxu0 %v15697_v32  ;;  %13054 = vmatprep.mubr.msk.f32.mxu0 %vm15025_vm1, %v15026_v38  ;;  %v14103_v12 = vpack.c.bf16 %v15811_v62, %v15805_v61 }
 0x576   : > { %14036 = vmatprep.subr.bf16.mxu0 %v15024_v18 }
 0x579   : > { %14038 = vmatpush3.bf16.msra.mxu0 %v15721_v14  ;;  %12996 = vmatmul.mubr.f32.vlgmr.msra.gmra.mrb[4].mxu1 %v15729_v21  ;;  %v15841_v21 = vsub.f32 %v15749_v15, %v3490_v6  ;;  %v15873_v15 = vpack.c.bf16 %v3493_v10, %v3490_v6 }
 0x57a   : > { %14039 = vmatprep.subr.bf16.mxu0 %v15024_v18  ;;  %12999 = vmatpush3.msra.mxu1 %v15656_v48 }
 0x57b   : > { %13000 = vmatprep.mubr.msk.f32.mxu1 %vm15025_vm1, %v15026_v38  ;;  %13003 = vmatprep.subr.mxu1 %v15026_v38  ;;  %v3579_v45 = vand.u32 4294901760, %v15841_v21  ;;  %v14067_v57 = vpack.c.bf16 %v15849_v29, %v15841_v21 }
 0x57c   : > { %13055 = vmatmul.mubr.f32.vlgmr.msra.gmra.mrb[4].mxu0 %v15501_v34 }
 0x57d   : > { %14041 = vmatpush3.bf16.msra.mxu0 %v14040_v11  ;;  %13065 = vmatprep.mubr.msk.f32.mxu0 %vm15025_vm1, %v15026_v38  ;;  %v3588_v11 = vand.u32 4294901760, %v3587_v54  ;;  %v14079_v59 = vpack.c.bf16 %v3586_v49, %v3579_v45  ;;  %v16012_v54 = vld [vmem:[#allocation5 + $0x18] sm:$0xff] }
 0x57e   : > { %14042 = vmatprep.subr.bf16.mxu0 %v15024_v18 }
 0x581   : > { %14044 = vmatpush3.bf16.msra.mxu0 %v14043_v23  ;;  %13001 = vmatmul.mubr.f32.vlgmr.msra.gmra.mrb[4].mxu1 %v2581_v30  ;;  %v14100_v23 = vpack.c.bf16 %v15793_v56, %v15791_v27  ;;  %v14076_v56 = vpack.c.bf16 %v3572_v20, %v3565_v17 }
 0x582   : > { %14045 = vmatprep.subr.bf16.mxu0 %v15024_v18  ;;  %13004 = vmatpush3.msra.mxu1 %v2592_v16  ;;  %v4090_v16 = vand.u32 4294901760, %v15811_v62 }
 0x583   : > { %13005 = vmatprep.mubr.msk.f32.mxu1 %vm15025_vm1, %v15026_v38  ;;  %13008 = vmatprep.subr.mxu1 %v15026_v38 }
 0x584   : > { %13066 = vmatmul.mubr.f32.vlgmr.msra.gmra.mrb[4].mxu0 %v15495_v31  ;;  %v4091_v30 = vsub.f32 %v15811_v62, %v4090_v16 }
 0x585   : > { %14047 = vmatpush3.bf16.msra.mxu0 %v15697_v32  ;;  %13076 = vmatprep.mubr.msk.f32.mxu0 %vm15025_vm1, %v15026_v38  ;;  %v4070_v32 = vsub.f32 %v15791_v27, %v4069_v60  ;;  %v14115_v27 = vpack.c.bf16 %v4090_v16, %v4083_v9 }
 0x586   : > { %14048 = vmatprep.subr.bf16.mxu0 %v15024_v18  ;;  %v4092_v50 = vand.u32 4294901760, %v4091_v30 }
 0x587   : > { %v4071_v28 = vand.u32 4294901760, %v4070_v32 }
 0x589   : > { %14050 = vmatpush3.bf16.msra.mxu0 %v15721_v14  ;;  %13006 = vmatmul.mubr.f32.vlgmr.msra.gmra.mrb[4].mxu1 %v15723_v25  ;;  %v4084_v14 = vsub.f32 %v15805_v61, %v4083_v9 }
 0x58a   : > { %14087 = vmatprep.subr.bf16.mxu0 %v15024_v18  ;;  %13009 = vmatpush3.msra.mxu1 %v15656_v48  ;;  %v4078_v48 = vand.u32 4294901760, %v4077_v13 }
 0x58b   : > { %13010 = vmatprep.mubr.msk.f32.mxu1 %vm15025_vm1, %v15026_v38  ;;  %14051 = vmatprep.subr.bf16.mxu1 %v15024_v18  ;;  %v4085_v46 = vand.u32 4294901760, %v4084_v14 }
 0x58c   : > { %13077 = vmatmul.mubr.f32.vlgmr.msra.gmra.mrb[4].mxu0 %v15495_v31  ;;  %v14094_v51 = vpack.c.bf16 %v4078_v48, %v4071_v28 }
 0x58d   : > { %14089 = vmatpush3.bf16.msra.mxu0 %v15829_v24  ;;  %13153 = vmatprep.mubr.msk.f32.mxu0 %vm15025_vm1, %v15026_v38  ;;  %v14097_v8 = vpack.c.bf16 %v4092_v50, %v4085_v46 }
 0x58e   : > { %14090 = vmatprep.subr.bf16.mxu0 %v15024_v18 }
 0x591   : > { %14092 = vmatpush3.bf16.msra.mxu0 %v15854_v36  ;;  %13011 = vmatmul.mubr.f32.vlgmr.msra.gmra.mrb[4].mxu1 %v15723_v25  ;;  %v3580_v25 = vsub.f32 %v15841_v21, %v3579_v45 }
 0x592   : > { %14093 = vmatprep.subr.bf16.mxu0 %v15024_v18  ;;  %14053 = vmatpush3.bf16.msra.mxu1 %v15860_v40 }
 0x593   : > { %13087 = vmatprep.mubr.msk.f32.mxu1 %vm15025_vm1, %v15026_v38  ;;  %14054 = vmatprep.subr.bf16.mxu1 %v15024_v18  ;;  %v3581_v22 = vand.u32 4294901760, %v3580_v25  ;;  %v16016_v25 = vld [vmem:[#allocation5 + $0x10] sm:$0xff] }
 0x594   : > { %13154 = vmatmul.mubr.f32.vlgmr.msra.gmra.mrb[6].mxu0 %v15505_v4 }
 0x595   : > { %14095 = vmatpush3.bf16.msra.mxu0 %v14094_v51  ;;  %13164 = vmatprep.mubr.msk.f32.mxu0 %vm15025_vm1, %v15026_v38  ;;  %v14061_v55 = vpack.c.bf16 %v3588_v11, %v3581_v22  ;;  %v16024_v11 = vld [vmem:[#allocation8] sm:$0xff]  ;;  %v16028_v22 = vld [vmem:[#allocation8 + $0x18] sm:$0xff] }
 0x596   : > { %14096 = vmatprep.subr.bf16.mxu0 %v15024_v18  ;;  %14056 = vmatpush3.bf16.msra.mxu1 %v15873_v15 }
 0x597   : > { %14057 = vmatprep.subr.bf16.mxu1 %v15024_v18 }
 0x599   : > { %14098 = vmatpush3.bf16.msra.mxu0 %v14097_v8  ;;  %13088 = vmatmul.mubr.f32.vlgmr.msra.gmra.mrb[6].mxu1 %v15505_v4  ;;  %v16020_v8 = vld [vmem:[#allocation8 + $0x8] sm:$0xff] }
 0x59a   : > { %14099 = vmatprep.subr.bf16.mxu0 %v15024_v18  ;;  %14059 = vmatpush3.bf16.msra.mxu1 %v14058_v26 }
 0x59b   : > { %13098 = vmatprep.mubr.msk.f32.mxu1 %vm15025_vm1, %v15026_v38  ;;  %14060 = vmatprep.subr.bf16.mxu1 %v15024_v18 }
 0x59c   : > { %13165 = vmatmul.mubr.f32.vlgmr.msra.gmra.mrb[6].mxu0 %v15495_v31 }
 0x59d   : > { %14101 = vmatpush3.bf16.msra.mxu0 %v14100_v23  ;;  %13175 = vmatprep.mubr.msk.f32.mxu0 %vm15025_vm1, %v15026_v38  ;;  %v16032_v23 = vld [vmem:[#allocation8 + $0x10] sm:$0xff] }
 0x59e   : > { %14102 = vmatprep.subr.bf16.mxu0 %v15024_v18  ;;  %14062 = vmatpush3.bf16.msra.mxu1 %v14061_v55 }
 0x59f   : > { %14063 = vmatprep.subr.bf16.mxu1 %v15024_v18 }
 0x5a1   : > { %14104 = vmatpush3.bf16.msra.mxu0 %v14103_v12  ;;  %13099 = vmatmul.mubr.f32.vlgmr.msra.gmra.mrb[6].mxu1 %v15495_v31 }
 0x5a2   : > { %14105 = vmatprep.subr.bf16.mxu0 %v15024_v18  ;;  %14065 = vmatpush3.bf16.msra.mxu1 %v14064_v35 }
 0x5a3   : > { %13109 = vmatprep.mubr.msk.f32.mxu1 %vm15025_vm1, %v15026_v38  ;;  %14066 = vmatprep.subr.bf16.mxu1 %v15024_v18 }
 0x5a4   : > { %13176 = vmatmul.mubr.f32.vlgmr.msra.gmra.mrb[6].mxu0 %v15498_v33 }
 0x5a5   : > { %14107 = vmatpush3.bf16.msra.mxu0 %v15829_v24  ;;  %13186 = vmatprep.mubr.msk.f32.mxu0 %vm15025_vm1, %v15026_v38 }
 0x5a6   : > { %14108 = vmatprep.subr.bf16.mxu0 %v15024_v18  ;;  %14068 = vmatpush3.bf16.msra.mxu1 %v14067_v57 }
 0x5a7   : > { %14069 = vmatprep.subr.bf16.mxu1 %v15024_v18 }
 0x5a9   : > { %14110 = vmatpush3.bf16.msra.mxu0 %v15854_v36  ;;  %13110 = vmatmul.mubr.f32.vlgmr.msra.gmra.mrb[6].mxu1 %v15498_v33 }
 0x5aa   : > { %14111 = vmatprep.subr.bf16.mxu0 %v15024_v18  ;;  %14071 = vmatpush3.bf16.msra.mxu1 %v15860_v40 }
 0x5ab   : > { %13120 = vmatprep.mubr.msk.f32.mxu1 %vm15025_vm1, %v15026_v38  ;;  %14072 = vmatprep.subr.bf16.mxu1 %v15024_v18 }
 0x5ac   : > { %13187 = vmatmul.mubr.f32.vlgmr.msra.gmra.mrb[6].mxu0 %v15501_v34 }
 0x5ad   : > { %14113 = vmatpush3.bf16.msra.mxu0 %v14112_v58  ;;  %13197 = vmatprep.mubr.msk.f32.mxu0 %vm15025_vm1, %v15026_v38 }
 0x5ae   : > { %14114 = vmatprep.subr.bf16.mxu0 %v15024_v18  ;;  %14074 = vmatpush3.bf16.msra.mxu1 %v15873_v15 }
 0x5af   : > { %14075 = vmatprep.subr.bf16.mxu1 %v15024_v18 }
 0x5b1   : > { %14116 = vmatpush3.bf16.msra.mxu0 %v14115_v27  ;;  %13121 = vmatmul.mubr.f32.vlgmr.msra.gmra.mrb[6].mxu1 %v15501_v34 }
 0x5b2   : > { %14117 = vmatprep.subr.bf16.mxu0 %v15024_v18  ;;  %14077 = vmatpush3.bf16.msra.mxu1 %v14076_v56 }
 0x5b3   : > { %13131 = vmatprep.mubr.msk.f32.mxu1 %vm15025_vm1, %v15026_v38  ;;  %14078 = vmatprep.subr.bf16.mxu1 %v15024_v18 }
 0x5b4   : > { %13198 = vmatmul.mubr.f32.vlgmr.msra.gmra.mrb[6].mxu0 %v15495_v31 }
 0x5b5   : > { %14119 = vmatpush3.bf16.msra.mxu0 %v15829_v24  ;;  %13208 = vmatprep.mubr.msk.f32.mxu0 %vm15025_vm1, %v15026_v38 }
 0x5b6   : > { %14120 = vmatprep.subr.bf16.mxu0 %v15024_v18  ;;  %14080 = vmatpush3.bf16.msra.mxu1 %v14079_v59 }
 0x5b7   : > { %14081 = vmatprep.subr.bf16.mxu1 %v15024_v18 }
 0x5b9   : > { %14122 = vmatpush3.bf16.msra.mxu0 %v15854_v36  ;;  %13132 = vmatmul.mubr.f32.vlgmr.msra.gmra.mrb[6].mxu1 %v15495_v31 }
 0x5ba   : > { %13271 = vmatprep.subr.mxu0 %v15026_v38  ;;  %14083 = vmatpush3.bf16.msra.mxu1 %v15860_v40 }
 0x5bb   : > { %13142 = vmatprep.mubr.msk.f32.mxu1 %vm15025_vm1, %v15026_v38  ;;  %14084 = vmatprep.subr.bf16.mxu1 %v15024_v18 }
 0x5bc   : > { %13209 = vmatmul.mubr.f32.vlgmr.msra.gmra.mrb[6].mxu0 %v15495_v31 }
 0x5bd   : > { %13273 = vmatprep.mubr.msk.f32.mxu0 %vm15025_vm1, %v15026_v38 }
 0x5be   : > { %14086 = vmatpush3.bf16.msra.mxu1 %v15873_v15 }
 0x5bf   : > { %13211 = vmatprep.subr.mxu1 %v15026_v38 }
 0x5c1   : > { %13143 = vmatmul.mubr.f32.vlgmr.msra.gmra.mrb[6].mxu1 %v15495_v31 }
 0x5c2   : > { %13213 = vmatprep.mubr.msk.f32.mxu1 %vm15025_vm1, %v15026_v38 }
 0x65f   : > { %v3460_v60 = vpop.f32.mrb[4].mxu0 }
 0x660   : > { %v13078_v61 = vpop.f32.mrb[5].mxu0  ;;  %v14342_v1 = vadd.f32 %v3460_v60, %v15759_v53 }
 0x662   : > { %v4473_v5 = vsel %vm2044_vm2, %v14342_v1, 0 }
 0x663   : > { %v4544_v6 = vand.u32 4294901760, %v4473_v5 }
 0x664   : > { %v15975_v0 = vpop.f32.mrb[4].mxu1 }
 0x665   : > { %v13012_v62 = vpop.f32.mrb[5].mxu1  ;;  %v4545_v9 = vsub.f32 %v4473_v5, %v4544_v6  ;;  %v2959_v5 = vld [vmem:[%s16849_s20] sm:$0xff] }
 0x667   : > { %v4546_v13 = vand.u32 4294901760, %v4545_v9 }
 0x669   : > { %v4547_v21 = vsub.f32 %v4545_v9, %v4546_v13 }
 0x66b   : > { %v4548_v29 = vand.u32 4294901760, %v4547_v21 }
 0x68f   : > { %v4468_v32 = vpop.f32.mrb[6].mxu0 }
 0x690   : > { %v13210_v10 = vpop.f32.mrb[7].mxu0 }
 0x694   : > { %v3964_v24 = vpop.f32.mrb[6].mxu1 }
 0x695   : > { %v14343_v16 = vadd.f32 %v3964_v24, %v15763_v7  ;;  %v13144_v17 = vpop.f32.mrb[7].mxu1 }
 0x697   : > { %v4476_v20 = vsel %vm2044_vm2, %v14343_v16, 0 }
 0x698   : > { %v4479_v28 = vand.u32 4294901760, %v4476_v20 }
 0x69a   : > { %v4556_v14 = vsub.f32 %v4476_v20, %v4479_v28  ;;  %13212 = vmatpush3.xpose.msra.mxu1 %v4479_v28 }
 0x69b   : > { %13216 = vmatprep.subr.mxu1 %v15026_v38 }
 0x69c   : > { %v4557_v53 = vand.u32 4294901760, %v4556_v14 }
 0x69d   : > { %13214 = vmatmul.mubr.f32.vlgmr.msra.gmra.mrb[8].mxu1 %v4548_v29 }
 0x69e   : > { %v4558_v48 = vsub.f32 %v4556_v14, %v4557_v53  ;;  %13218 = vmatprep.mubr.msk.f32.mxu1 %vm15025_vm1, %v15026_v38 }
 0x6a0   : > { %v4559_v30 = vand.u32 4294901760, %v4558_v48 }
 0x6a2   : > { %13217 = vmatpush3.xpose.msra.mxu1 %v4559_v30 }
 0x6a3   : > { %13221 = vmatprep.subr.mxu1 %v15026_v38 }
 0x6a5   : > { %13219 = vmatmul.mubr.f32.vlgmr.msra.gmra.mrb[8].mxu1 %v4544_v6 }
 0x6a6   : > { %13222 = vmatpush3.xpose.msra.mxu1 %v4556_v14  ;;  %13223 = vmatprep.mubr.msk.f32.mxu1 %vm15025_vm1, %v15026_v38  ;;  %v5837_v14 = vsel %vm2044_vm2, %v15975_v0, 0 }
 0x6a7   : > { %13226 = vmatprep.subr.mxu1 %v15026_v38  ;;  %v16096_v30 = vand.u32 4294901760, %v5837_v14 }
 0x6ad   : > { %13224 = vmatmul.mubr.f32.vlgmr.msra.gmra.mrb[8].mxu1 %v4545_v9  ;;  %v16081_v9 = vand.u32 4294901760, %v2959_v5 }
 0x6ae   : > { %13227 = vmatpush3.xpose.msra.mxu1 %v4479_v28  ;;  %13228 = vmatprep.mubr.msk.f32.mxu1 %vm15025_vm1, %v15026_v38 }
 0x6af   : > { %13231 = vmatprep.subr.mxu1 %v15026_v38 }
 0x6b5   : > { %13229 = vmatmul.mubr.f32.vlgmr.msra.gmra.mrb[8].mxu1 %v4546_v13  ;;  %v16086_v13 = vsub.f32 %v2959_v5, %v16081_v9 }
 0x6b6   : > { %13232 = vmatpush3.xpose.msra.mxu1 %v4557_v53  ;;  %13233 = vmatprep.mubr.msk.f32.mxu1 %vm15025_vm1, %v15026_v38 }
 0x6b7   : > { %13236 = vmatprep.subr.mxu1 %v15026_v38 }
 0x6bd   : > { %13234 = vmatmul.mubr.f32.vlgmr.msra.gmra.mrb[8].mxu1 %v4544_v6 }
 0x6be   : > { %13237 = vmatpush3.xpose.msra.mxu1 %v4479_v28  ;;  %13238 = vmatprep.mubr.msk.f32.mxu1 %vm15025_vm1, %v15026_v38  ;;  %v5918_v28 = vand.u32 4294901760, %v16086_v13 }
 0x6bf   : > { %13241 = vmatprep.subr.mxu1 %v15026_v38 }
 0x6c5   : > { %13239 = vmatmul.mubr.f32.vlgmr.msra.gmra.mrb[8].mxu1 %v4544_v6 }
 0x6c6   : > { %13243 = vmatprep.mubr.msk.f32.mxu1 %vm15025_vm1, %v15026_v38 }
 0x798   : > { %v4920_v7 = vpop.f32.mrb[8].mxu1 }
 0x799   : > { %v4924_v36 = vmul.f32 0.35355338, %v4920_v7  ;;  %v13240_v40 = vpop.f32.mrb[9].mxu1 }
 0x79b   : > { %v4925_v41 = vsel %vm2044_vm2, %v4924_v36, -inf }
 0x79c   : > { %4926 = vmax.xlane.f32.xlu0 %v4925_v41 }
 0x7b2   : > { %3984 = vrot.lane.b32.xlu0 %v15650_v44, %s15027_s25  ;;  %v16008_v44 = vld [vmem:[#allocation5] sm:$0xff]  ;;  %s14903_s25 = scalar_lea.vmem %s12060_s18, 128 }
 0x7b3   : > { %p14904_p6 = scmp.ne.s32.totalorder %s12060_s18, %s14903_s25 }
 0x7b5   : > { %p14905_p12 = pnand %p14904_p6, %p16851_p9 }
 0x7b6   : > { %6287 = vrot.lane.b32.xlu0 %v16004_v52, %s15028_s26 }
 0x7b7   : > { %p14906_p13 = pneg %p14905_p12 }
 0x7ba   : > { %6291 = vrot.lane.b32.xlu0 %v16012_v54, %s15028_s26 }
 0x7be   : > { %6787 = vrot.lane.b32.xlu0 %v16020_v8, %s15028_s26 }
 0x7c2   : > { %6791 = vrot.lane.b32.xlu0 %v16028_v22, %s15028_s26 }
 0x7c6   : > { %6797 = vrot.lane.b32.xlu0 %v15631_v3, %s15028_s26 }
 0x7ca   : > { %7287 = vrot.lane.b32.xlu0 %v15543_v39, %s15028_s26 }
 0x7ce   : > { %7291 = vrot.lane.b32.xlu0 %v15553_v43, %s15028_s26 }
 0x829   : > { %v4927_v45 = vpop.xlane.xlu0 %4926 }
 0x82a   : > { %v4928_v46 = vsub.f32 %v4924_v36, %v4927_v45  ;;  %v5919_v36 = vsub.f32 %v16086_v13, %v5918_v28  ;;  %v16105_v45 = vsub.f32 %v5837_v14, %v16096_v30 }
 0x82c   : > { %v4929_v47 = vmul.f32 1.442695, %v4928_v46 }
 0x82d   : > { %v3985_v49 = vpop.permute.xlu0 %3984 }
 0x82e   : > { %14677 = vpow2.f32 %v4929_v47  ;;  %v14344_v50 = vadd.f32 %v4468_v32, %v3985_v49  ;;  %v5920_v47 = vand.u32 4294901760, %v5919_v36 }
 0x830   : > { %v4941_v51 = vand.u32 4294901760, %v14344_v50 }
 0x831   : > { %v16079_v32 = vpop.permute.xlu0 %6287 }
 0x832   : > { %13242 = vmatpush3.msra.mxu1 %v4941_v51  ;;  %v5018_v55 = vsub.f32 %v14344_v50, %v4941_v51 }
 0x833   : > { %13246 = vmatprep.subr.mxu1 %v15026_v38 }
 0x834   : > { %v5019_v39 = vand.u32 4294901760, %v5018_v55 }
 0x835   : > { %v16088_v24 = vpop.permute.xlu0 %6291 }
 0x836   : > { %v6310_v5 = vand.u32 4294901760, %v16088_v24 }
 0x838   : > { %v14678_v15 = vpop.eup %14677 }
 0x839   : > { %v4931_v19 = vsel %vm2044_vm2, %v14678_v15, 0.0  ;;  %v6788_v48 = vpop.permute.xlu0 %6787 }
 0x83a   : > { %4932 = vadd.xlane.f32.xlu1 %v4931_v19  ;;  %v6804_v41 = vand.u32 4294901760, %v6788_v48 }
 0x83d   : > { %v6792_v50 = vpop.permute.xlu0 %6791 }
 0x84b   : > { %6285 = vrot.lane.b32.xlu1 %v16008_v44, %s15028_s26 }
 0x84f   : > { %6289 = vrot.lane.b32.xlu1 %v16016_v25, %s15028_s26 }
 0x853   : > { %6785 = vrot.lane.b32.xlu1 %v16024_v11, %s15028_s26 }
 0x857   : > { %6789 = vrot.lane.b32.xlu1 %v16032_v23, %s15028_s26 }
 0x85b   : > { %6297 = vrot.lane.b32.xlu1 %v15629_v2, %s15028_s26 }
 0x85f   : > { %7285 = vrot.lane.b32.xlu1 %v15541_v37, %s15028_s26  ;;  %v5020_v37 = vsub.f32 %v5018_v55, %v5019_v39 }
 0x861   : > { %v5021_v43 = vand.u32 4294901760, %v5020_v37  ;;  %v6304_v37 = vand.u32 4294901760, %v16079_v32 }
 0x863   : > { %7289 = vrot.lane.b32.xlu1 %v15551_v42, %s15028_s26  ;;  %v5386_v42 = vld [vmem:[%s16849_s20 + $0x8] sm:$0xff] }
 0x864   : > { %v5391_v59 = vand.u32 4294901760, %v5386_v42 }
 0x866   : > { %v5468_v60 = vsub.f32 %v5386_v42, %v5391_v59  ;;  %13272 = vmatpush3.msra.mxu0 %v5391_v59 }
 0x867   : > { %13281 = vmatprep.subr.mxu0 %v15026_v38 }
 0x868   : > { %v5469_v61 = vand.u32 4294901760, %v5468_v60 }
 0x86a   : > { %v5470_v62 = vsub.f32 %v5468_v60, %v5469_v61 }
 0x86c   : > { %v5471_v1 = vand.u32 4294901760, %v5470_v62  ;;  %v16156_v62 = vsub.f32 %v16079_v32, %v6304_v37 }
 0x8c7   : > { %v4933_v26 = vpop.xlane.xlu1 %4932 }
 0x8c8   : > { %14679 = vrcp.f32 %v4933_v26  ;;  %v6810_v26 = vand.u32 4294901760, %v6792_v50 }
 0x8cb   : > { %v16077_v6 = vpop.permute.xlu1 %6285 }
 0x8cf   : > { %v16083_v10 = vpop.permute.xlu1 %6289 }
 0x8d2   : > { %v14680_v12 = vpop.eup %14679 }
 0x8d3   : > { %v16048_v3 = vmul.f32 %v14680_v12, %v14678_v15  ;;  %v6786_v53 = vpop.permute.xlu1 %6785  ;;  %v16112_v15 = vsub.f32 %v6788_v48, %v6804_v41  ;;  %v5907_v12 = vand.u32 4294901760, %v16105_v45 }
 0x8d4   : > { %v6801_v0 = vand.u32 4294901760, %v6786_v53 }
 0x8d5   : > { %v4938_v2 = vsel %vm2044_vm2, %v16048_v3, 0 }
 0x8d6   : > { %v5006_v35 = vand.u32 4294901760, %v4938_v2 }
 0x8d7   : > { %v6790_v49 = vpop.permute.xlu1 %6789 }
 0x8d8   : > { %v5007_v57 = vsub.f32 %v4938_v2, %v5006_v35  ;;  %v6807_v19 = vand.u32 4294901760, %v6790_v49  ;;  %v6889_v2 = vand.u32 4294901760, %v16112_v15 }
 0x8da   : > { %v5008_v58 = vand.u32 4294901760, %v5007_v57 }
 0x8dc   : > { %v5009_v27 = vsub.f32 %v5007_v57, %v5008_v58 }
 0x8de   : > { %v5010_v56 = vand.u32 4294901760, %v5009_v27  ;;  %v16136_v27 = vpack.c.bf16 %v6804_v41, %v6801_v0 }
 0x8e0   : > { %13244 = vmatmul.mubr.f32.vlgmr.msra.gmra.mrb[10].mxu1 %v5010_v56 }
 0x8e1   : > { %13247 = vmatpush3.msra.mxu1 %v5021_v43  ;;  %13248 = vmatprep.mubr.msk.f32.mxu1 %vm15025_vm1, %v15026_v38  ;;  %v6890_v43 = vsub.f32 %v16112_v15, %v6889_v2 }
 0x8e2   : > { %13251 = vmatprep.subr.mxu1 %v15026_v38 }
 0x8e8   : > { %13249 = vmatmul.mubr.f32.vlgmr.msra.gmra.mrb[10].mxu1 %v5006_v35 }
 0x8e9   : > { %13252 = vmatpush3.msra.mxu1 %v5018_v55  ;;  %13253 = vmatprep.mubr.msk.f32.mxu1 %vm15025_vm1, %v15026_v38 }
 0x8ea   : > { %13256 = vmatprep.subr.mxu1 %v15026_v38 }
 0x8f0   : > { %13254 = vmatmul.mubr.f32.vlgmr.msra.gmra.mrb[10].mxu1 %v5007_v57  ;;  %v5908_v57 = vsub.f32 %v16105_v45, %v5907_v12 }
 0x8f1   : > { %13257 = vmatpush3.msra.mxu1 %v4941_v51  ;;  %13258 = vmatprep.mubr.msk.f32.mxu1 %vm15025_vm1, %v15026_v38 }
 0x8f2   : > { %13261 = vmatprep.subr.mxu1 %v15026_v38 }
 0x8f8   : > { %13259 = vmatmul.mubr.f32.vlgmr.msra.gmra.mrb[10].mxu1 %v5008_v58  ;;  %v6301_v58 = vand.u32 4294901760, %v16077_v6 }
 0x8f9   : > { %13262 = vmatpush3.msra.mxu1 %v5019_v39  ;;  %13263 = vmatprep.mubr.msk.f32.mxu1 %vm15025_vm1, %v15026_v38  ;;  %v16126_v39 = vsub.f32 %v6792_v50, %v6810_v26 }
 0x8fa   : > { %13266 = vmatprep.subr.mxu1 %v15026_v38 }
 0x900   : > { %13264 = vmatmul.mubr.f32.vlgmr.msra.gmra.mrb[10].mxu1 %v5006_v35 }
 0x901   : > { %13267 = vmatpush3.msra.mxu1 %v4941_v51  ;;  %13268 = vmatprep.mubr.msk.f32.mxu1 %vm15025_vm1, %v15026_v38  ;;  %v16110_v51 = vsub.f32 %v6786_v53, %v6801_v0 }
 0x902   : > { %13276 = vmatprep.subr.mxu1 %v15026_v38 }
 0x903   : > { %v6882_v55 = vand.u32 4294901760, %v16110_v51  ;;  %v14172_v50 = vpack.c.bf16 %v16112_v15, %v16110_v51 }
 0x905   : > { %v6883_v56 = vsub.f32 %v16110_v51, %v6882_v55 }
 0x908   : > { %13269 = vmatmul.mubr.f32.vlgmr.msra.gmra.mrb[10].mxu1 %v5006_v35  ;;  %v16124_v35 = vsub.f32 %v6790_v49, %v6807_v19 }
 0x909   : > { %13278 = vmatprep.mubr.msk.f32.mxu1 %vm15025_vm1, %v15026_v38  ;;  %13277 = vmatpush3.msra.mxu1 %v5471_v1  ;;  %v6307_v1 = vand.u32 4294901760, %v16083_v10 }
 0x90a   : > { %13286 = vmatprep.subr.mxu1 %v15026_v38  ;;  %v6896_v42 = vand.u32 4294901760, %v16124_v35 }
 0x90b   : > { %v16179_v14 = vsub.f32 %v16083_v10, %v6307_v1  ;;  %v16191_v10 = vpack.c.bf16 %v6304_v37, %v6301_v58  ;;  %v16208_v0 = vpack.c.bf16 %v6310_v5, %v6307_v1  ;;  %v16255_v37 = vpop.permute.xlu1 %6297 }
 0x90f   : > { %v7286_v51 = vpop.permute.xlu1 %7285 }
 0x9db   : > { %v5382_v16 = vpop.f32.mrb[10].mxu1 }
 0x9dc   : > { %v5388_v17 = vsel %vm2044_vm2, %v5382_v16, 0  ;;  %v13270_v20 = vpop.f32.mrb[11].mxu1  ;;  %v6884_v16 = vand.u32 4294901760, %v6883_v56  ;;  %v16257_v56 = vpop.permute.xlu0 %6797 }
 0x9dd   : > { %v5456_v21 = vand.u32 4294901760, %v5388_v17 }
 0x9df   : > { %v5457_v29 = vsub.f32 %v5388_v17, %v5456_v21  ;;  %13279 = vmatmul.mubr.f32.vlgmr.msra.gmra.mrb[12].mxu1 %v5456_v21  ;;  %v6891_v17 = vand.u32 4294901760, %v6890_v43  ;;  %v14184_v43 = vpack.c.bf16 %v6889_v2, %v6882_v55  ;;  %v7301_v2 = vand.u32 4294901760, %v7286_v51 }
 0x9e0   : > { %13287 = vmatpush3.msra.mxu1 %v5391_v59  ;;  %13288 = vmatprep.mubr.msk.f32.mxu1 %vm15025_vm1, %v15026_v38  ;;  %v7288_v15 = vpop.permute.xlu0 %7287 }
 0x9e1   : > { %v5458_v7 = vand.u32 4294901760, %v5457_v29  ;;  %13296 = vmatprep.subr.mxu1 %v15026_v38 }
 0x9e3   : > { %v5459_v40 = vsub.f32 %v5457_v29, %v5458_v7  ;;  %13289 = vmatmul.mubr.f32.vlgmr.msra.gmra.mrb[14].mxu1 %v5458_v7  ;;  %v14166_v7 = vpack.c.bf16 %v6891_v17, %v6884_v16 }
 0x9e4   : > { %13297 = vmatpush3.msra.mxu1 %v5391_v59  ;;  %13298 = vmatprep.mubr.msk.f32.mxu1 %vm15025_vm1, %v15026_v38  ;;  %v6903_v59 = vand.u32 4294901760, %v16126_v39 }
 0x9e5   : > { %v5460_v46 = vand.u32 4294901760, %v5459_v40  ;;  %13306 = vmatprep.subr.mxu1 %v15026_v38  ;;  %v6396_v40 = vand.u32 4294901760, %v16179_v14 }
 0x9e6   : > { %v6904_v32 = vsub.f32 %v16126_v39, %v6903_v59 }
 0x9e7   : > { %13274 = vmatmul.mubr.f32.vlgmr.msra.gmra.mrb[8].mxu0 %v5460_v46  ;;  %13299 = vmatmul.mubr.f32.vlgmr.msra.gmra.mrb[16].mxu1 %v5456_v21  ;;  %v6397_v46 = vsub.f32 %v16179_v14, %v6396_v40 }
 0x9e8   : > { %13282 = vmatpush3.msra.mxu0 %v5468_v60  ;;  %13283 = vmatprep.mubr.msk.f32.mxu0 %vm15025_vm1, %v15026_v38  ;;  %v5909_v60 = vand.u32 4294901760, %v5908_v57  ;;  %v6905_v48 = vand.u32 4294901760, %v6904_v32 }
 0x9e9   : > { %13307 = vmatpush3.msra.mxu1 %v5920_v47  ;;  %13308 = vmatprep.mubr.msk.f32.mxu1 %vm15025_vm1, %v15026_v38  ;;  %v6398_v47 = vand.u32 4294901760, %v6397_v46 }
 0x9ea   : > { %13291 = vmatprep.subr.mxu0 %v15026_v38  ;;  %13316 = vmatprep.subr.mxu1 %v15026_v38 }
 0x9eb   : > { %13284 = vmatmul.mubr.f32.vlgmr.msra.gmra.mrb[10].mxu0 %v5457_v29  ;;  %13309 = vmatmul.mubr.f32.vlgmr.msra.gmra.mrb[18].mxu1 %v16096_v30  ;;  %v16182_v29 = vsub.f32 %v16088_v24, %v6310_v5 }
 0x9ec   : > { %13292 = vmatpush3.msra.mxu0 %v5469_v61  ;;  %13293 = vmatprep.mubr.msk.f32.mxu0 %vm15025_vm1, %v15026_v38  ;;  %v16153_v61 = vsub.f32 %v16077_v6, %v6301_v58  ;;  %v6897_v6 = vsub.f32 %v16124_v35, %v6896_v42 }
 0x9ed   : > { %13317 = vmatpush3.msra.mxu1 %v16081_v9  ;;  %13318 = vmatprep.mubr.msk.f32.mxu1 %vm15025_vm1, %v15026_v38  ;;  %v14139_v58 = vpack.c.bf16 %v16182_v29, %v16179_v14 }
 0x9ee   : > { %13326 = vmatprep.subr.mxu1 %v15026_v38  ;;  %13301 = vmatprep.subr.mxu0 %v15026_v38  ;;  %v6382_v20 = vand.u32 4294901760, %v16153_v61  ;;  %v6898_v53 = vand.u32 4294901760, %v6897_v6  ;;  %v14136_v57 = vpack.c.bf16 %v16156_v62, %v16153_v61 }
 0x9ef   : > { %13294 = vmatmul.mubr.f32.vlgmr.msra.gmra.mrb[12].mxu0 %v5456_v21  ;;  %13319 = vmatmul.mubr.f32.vlgmr.msra.gmra.mrb[20].mxu1 %v5907_v12  ;;  %v6389_v21 = vand.u32 4294901760, %v16156_v62 }
 0x9f0   : > { %13327 = vmatpush3.msra.mxu1 %v16081_v9  ;;  %13302 = vmatpush3.msra.mxu0 %v16081_v9  ;;  %v16162_v9 = vpack.c.bf16 %v6810_v26, %v6807_v19  ;;  %v6383_v24 = vsub.f32 %v16153_v61, %v6382_v20  ;;  %v14175_v26 = vpack.c.bf16 %v16126_v39, %v16124_v35  ;;  %v7304_v35 = vand.u32 4294901760, %v7288_v15  ;;  %v7290_v39 = vpop.permute.xlu1 %7289 }
 0x9f1   : > { %13303 = vmatprep.mubr.msk.f32.mxu0 %vm15025_vm1, %v15026_v38  ;;  %13328 = vmatprep.mubr.msk.f32.mxu1 %vm15025_vm1, %v15026_v38  ;;  %v6390_v36 = vsub.f32 %v16156_v62, %v6389_v21  ;;  %v14148_v55 = vpack.c.bf16 %v6389_v21, %v6382_v20  ;;  %v7381_v61 = vsub.f32 %v7286_v51, %v7301_v2  ;;  %v7307_v62 = vand.u32 4294901760, %v7290_v39 }
 0x9f2   : > { %14159 = vmatprep.subr.bf16.mxu1 %v15024_v18  ;;  %13311 = vmatprep.subr.mxu0 %v15026_v38  ;;  %v6384_v41 = vand.u32 4294901760, %v6383_v24  ;;  %v14196_v32 = vpack.c.bf16 %v7304_v35, %v7301_v2 }
 0x9f3   : > { %13304 = vmatmul.mubr.f32.vlgmr.msra.gmra.mrb[14].mxu0 %v5909_v60  ;;  %13329 = vmatmul.mubr.f32.vlgmr.msra.gmra.mrb[22].mxu1 %v16096_v30  ;;  %v14187_v60 = vpack.c.bf16 %v6903_v59, %v6896_v42  ;;  %v7292_v42 = vpop.permute.xlu0 %7291  ;;  %v7382_v5 = vand.u32 4294901760, %v7381_v61  ;;  %v7395_v17 = vsub.f32 %v7290_v39, %v7307_v62 }
 0x9f4   : > { %14161 = vmatpush3.bf16.msra.mxu1 %v16136_v27  ;;  %13312 = vmatpush3.msra.mxu0 %v16086_v13  ;;  %v6403_v13 = vand.u32 4294901760, %v16182_v29  ;;  %v7310_v1 = vand.u32 4294901760, %v7292_v42 }
 0x9f5   : > { %13313 = vmatprep.mubr.msk.f32.mxu0 %vm15025_vm1, %v15026_v38  ;;  %14162 = vmatprep.subr.bf16.mxu1 %v15024_v18  ;;  %v7383_v6 = vsub.f32 %v7381_v61, %v7382_v5  ;;  %v7396_v21 = vand.u32 4294901760, %v7395_v17 }
 0x9f6   : > { %13321 = vmatprep.subr.mxu0 %v15026_v38  ;;  %13405 = vmatprep.mubr.msk.f32.mxu1 %vm15025_vm1, %v15026_v38  ;;  %v14151_v59 = vpack.c.bf16 %v6403_v13, %v6396_v40 }
 0x9f7   : > { %13314 = vmatmul.mubr.f32.vlgmr.msra.gmra.mrb[16].mxu0 %v16105_v45  ;;  %v6391_v45 = vand.u32 4294901760, %v6390_v36 }
 0x9f8   : > { %14164 = vmatpush3.bf16.msra.mxu1 %v16162_v9  ;;  %13322 = vmatpush3.msra.mxu0 %v5918_v28  ;;  %v14169_v28 = vpack.c.bf16 %v6905_v48, %v6898_v53  ;;  %v7397_v48 = vsub.f32 %v7395_v17, %v7396_v21 }
 0x9f9   : > { %13323 = vmatprep.mubr.msk.f32.mxu0 %vm15025_vm1, %v15026_v38  ;;  %14123 = vmatprep.subr.bf16.mxu0 %v15024_v18  ;;  %v14130_v19 = vpack.c.bf16 %v6391_v45, %v6384_v41 }
 0x9fa   : > { %14165 = vmatprep.subr.bf16.mxu1 %v15024_v18  ;;  %v7398_v24 = vand.u32 4294901760, %v7397_v48 }
 0x9fb   : > { %13406 = vmatmul.mubr.f32.vlgmr.msra.gmra.mrb[24].mxu1 %v15505_v4  ;;  %13324 = vmatmul.mubr.f32.vlgmr.msra.gmra.mrb[18].mxu0 %v16096_v30  ;;  %v6404_v30 = vsub.f32 %v16182_v29, %v6403_v13  ;;  %v7384_v29 = vand.u32 4294901760, %v7383_v6 }
 0x9fc   : > { %14125 = vmatpush3.bf16.msra.mxu0 %v16191_v10  ;;  %14167 = vmatpush3.bf16.msra.mxu1 %v14166_v7  ;;  %v14199_v7 = vpack.c.bf16 %v7310_v1, %v7307_v62 }
 0x9fd   : > { %14126 = vmatprep.subr.bf16.mxu0 %v15024_v18  ;;  %14168 = vmatprep.subr.bf16.mxu1 %v15024_v18  ;;  %v6405_v49 = vand.u32 4294901760, %v6404_v30 }
 0x9fe   : > { %13339 = vmatprep.mubr.msk.f32.mxu0 %vm15025_vm1, %v15026_v38  ;;  %13416 = vmatprep.mubr.msk.f32.mxu1 %vm15025_vm1, %v15026_v38 }
 0x9ff   : > { %v14133_v12 = vpack.c.bf16 %v6405_v49, %v6398_v47 }
 0xa00   : > { %14128 = vmatpush3.bf16.msra.mxu0 %v16208_v0  ;;  %14170 = vmatpush3.bf16.msra.mxu1 %v14169_v28 }
 0xa01   : > { %14129 = vmatprep.subr.bf16.mxu0 %v15024_v18  ;;  %14171 = vmatprep.subr.bf16.mxu1 %v15024_v18 }
 0xa03   : > { %13340 = vmatmul.mubr.f32.vlgmr.msra.gmra.mrb[20].mxu0 %v15505_v4  ;;  %13417 = vmatmul.mubr.f32.vlgmr.msra.gmra.mrb[24].mxu1 %v15495_v31 }
 0xa04   : > { %14131 = vmatpush3.bf16.msra.mxu0 %v14130_v19  ;;  %14173 = vmatpush3.bf16.msra.mxu1 %v14172_v50 }
 0xa05   : > { %14132 = vmatprep.subr.bf16.mxu0 %v15024_v18  ;;  %14174 = vmatprep.subr.bf16.mxu1 %v15024_v18 }
 0xa06   : > { %13350 = vmatprep.mubr.msk.f32.mxu0 %vm15025_vm1, %v15026_v38  ;;  %13427 = vmatprep.mubr.msk.f32.mxu1 %vm15025_vm1, %v15026_v38 }
 0xa08   : > { %14134 = vmatpush3.bf16.msra.mxu0 %v14133_v12  ;;  %14176 = vmatpush3.bf16.msra.mxu1 %v14175_v26 }
 0xa09   : > { %14135 = vmatprep.subr.bf16.mxu0 %v15024_v18  ;;  %14177 = vmatprep.subr.bf16.mxu1 %v15024_v18 }
 0xa0b   : > { %13351 = vmatmul.mubr.f32.vlgmr.msra.gmra.mrb[20].mxu0 %v15495_v31  ;;  %13428 = vmatmul.mubr.f32.vlgmr.msra.gmra.mrb[24].mxu1 %v15498_v33 }
 0xa0c   : > { %14137 = vmatpush3.bf16.msra.mxu0 %v14136_v57  ;;  %14179 = vmatpush3.bf16.msra.mxu1 %v16136_v27 }
 0xa0d   : > { %14138 = vmatprep.subr.bf16.mxu0 %v15024_v18  ;;  %14180 = vmatprep.subr.bf16.mxu1 %v15024_v18 }
 0xa0e   : > { %13361 = vmatprep.mubr.msk.f32.mxu0 %vm15025_vm1, %v15026_v38  ;;  %13438 = vmatprep.mubr.msk.f32.mxu1 %vm15025_vm1, %v15026_v38 }
 0xa10   : > { %14140 = vmatpush3.bf16.msra.mxu0 %v14139_v58  ;;  %14182 = vmatpush3.bf16.msra.mxu1 %v16162_v9 }
 0xa11   : > { %14141 = vmatprep.subr.bf16.mxu0 %v15024_v18  ;;  %14183 = vmatprep.subr.bf16.mxu1 %v15024_v18 }
 0xa13   : > { %13362 = vmatmul.mubr.f32.vlgmr.msra.gmra.mrb[20].mxu0 %v15498_v33  ;;  %13439 = vmatmul.mubr.f32.vlgmr.msra.gmra.mrb[24].mxu1 %v15501_v34 }
 0xa14   : > { %14143 = vmatpush3.bf16.msra.mxu0 %v16191_v10  ;;  %14185 = vmatpush3.bf16.msra.mxu1 %v14184_v43 }
 0xa15   : > { %14144 = vmatprep.subr.bf16.mxu0 %v15024_v18  ;;  %14186 = vmatprep.subr.bf16.mxu1 %v15024_v18 }
 0xa16   : > { %13372 = vmatprep.mubr.msk.f32.mxu0 %vm15025_vm1, %v15026_v38  ;;  %13449 = vmatprep.mubr.msk.f32.mxu1 %vm15025_vm1, %v15026_v38 }
 0xa18   : > { %14146 = vmatpush3.bf16.msra.mxu0 %v16208_v0  ;;  %14188 = vmatpush3.bf16.msra.mxu1 %v14187_v60 }
 0xa19   : > { %14147 = vmatprep.subr.bf16.mxu0 %v15024_v18  ;;  %14189 = vmatprep.subr.bf16.mxu1 %v15024_v18 }
 0xa1b   : > { %13373 = vmatmul.mubr.f32.vlgmr.msra.gmra.mrb[20].mxu0 %v15501_v34  ;;  %13450 = vmatmul.mubr.f32.vlgmr.msra.gmra.mrb[24].mxu1 %v15495_v31 }
 0xa1c   : > { %14149 = vmatpush3.bf16.msra.mxu0 %v14148_v55  ;;  %14191 = vmatpush3.bf16.msra.mxu1 %v16136_v27  ;;  %v7388_v27 = vsub.f32 %v7288_v15, %v7304_v35 }
 0xa1d   : > { %14150 = vmatprep.subr.bf16.mxu0 %v15024_v18  ;;  %14192 = vmatprep.subr.bf16.mxu1 %v15024_v18 }
 0xa1e   : > { %13383 = vmatprep.mubr.msk.f32.mxu0 %vm15025_vm1, %v15026_v38  ;;  %13460 = vmatprep.mubr.msk.f32.mxu1 %vm15025_vm1, %v15026_v38  ;;  %v7389_v16 = vand.u32 4294901760, %v7388_v27  ;;  %v14208_v28 = vpack.c.bf16 %v7388_v27, %v7381_v61 }
 0xa20   : > { %14152 = vmatpush3.bf16.msra.mxu0 %v14151_v59  ;;  %14194 = vmatpush3.bf16.msra.mxu1 %v16162_v9  ;;  %v7402_v9 = vsub.f32 %v7292_v42, %v7310_v1  ;;  %v7390_v20 = vsub.f32 %v7388_v27, %v7389_v16  ;;  %v14220_v41 = vpack.c.bf16 %v7389_v16, %v7382_v5 }
 0xa21   : > { %14153 = vmatprep.subr.bf16.mxu0 %v15024_v18  ;;  %13529 = vmatprep.subr.mxu1 %v15026_v38 }
 0xa22   : > { %v7403_v14 = vand.u32 4294901760, %v7402_v9  ;;  %v7391_v53 = vand.u32 4294901760, %v7390_v20 }
 0xa23   : > { %13384 = vmatmul.mubr.f32.vlgmr.msra.gmra.mrb[20].mxu0 %v15495_v31  ;;  %13461 = vmatmul.mubr.f32.vlgmr.msra.gmra.mrb[24].mxu1 %v15495_v31 }
 0xa24   : > { %14155 = vmatpush3.bf16.msra.mxu0 %v16191_v10  ;;  %13394 = vmatprep.mubr.msk.f32.mxu0 %vm15025_vm1, %v15026_v38  ;;  %v7404_v10 = vsub.f32 %v7402_v9, %v7403_v14  ;;  %v14202_v40 = vpack.c.bf16 %v7391_v53, %v7384_v29  ;;  %v14223_v45 = vpack.c.bf16 %v7403_v14, %v7396_v21 }
 0xa25   : > { %14156 = vmatprep.subr.bf16.mxu0 %v15024_v18  ;;  %13531 = vmatprep.mubr.msk.f32.mxu1 %vm15025_vm1, %v15026_v38 }
 0xa26   : > { %v7405_v36 = vand.u32 4294901760, %v7404_v10 }
 0xa28   : > { %14158 = vmatpush3.bf16.msra.mxu0 %v16208_v0  ;;  %v14205_v13 = vpack.c.bf16 %v7405_v36, %v7398_v24  ;;  %v14211_v0 = vpack.c.bf16 %v7402_v9, %v7395_v17 }
 0xa29   : > { %14195 = vmatprep.subr.bf16.mxu0 %v15024_v18 }
 0xa2b   : > { %13395 = vmatmul.mubr.f32.vlgmr.msra.gmra.mrb[20].mxu0 %v15495_v31 }
 0xa2c   : > { %14197 = vmatpush3.bf16.msra.mxu0 %v14196_v32  ;;  %13471 = vmatprep.mubr.msk.f32.mxu0 %vm15025_vm1, %v15026_v38 }
 0xa2d   : > { %14198 = vmatprep.subr.bf16.mxu0 %v15024_v18 }
 0xa30   : > { %14200 = vmatpush3.bf16.msra.mxu0 %v14199_v7 }
 0xa31   : > { %14201 = vmatprep.subr.bf16.mxu0 %v15024_v18 }
 0xa33   : > { %13472 = vmatmul.mubr.f32.vlgmr.msra.gmra.mrb[22].mxu0 %v15505_v4 }
 0xa34   : > { %14203 = vmatpush3.bf16.msra.mxu0 %v14202_v40  ;;  %13482 = vmatprep.mubr.msk.f32.mxu0 %vm15025_vm1, %v15026_v38 }
 0xa35   : > { %14204 = vmatprep.subr.bf16.mxu0 %v15024_v18 }
 0xa38   : > { %14206 = vmatpush3.bf16.msra.mxu0 %v14205_v13 }
 0xa39   : > { %14207 = vmatprep.subr.bf16.mxu0 %v15024_v18 }
 0xa3b   : > { %13483 = vmatmul.mubr.f32.vlgmr.msra.gmra.mrb[22].mxu0 %v15495_v31 }
 0xa3c   : > { %14209 = vmatpush3.bf16.msra.mxu0 %v14208_v28  ;;  %13493 = vmatprep.mubr.msk.f32.mxu0 %vm15025_vm1, %v15026_v38 }
 0xa3d   : > { %14210 = vmatprep.subr.bf16.mxu0 %v15024_v18 }
 0xa40   : > { %14212 = vmatpush3.bf16.msra.mxu0 %v14211_v0 }
 0xa41   : > { %14213 = vmatprep.subr.bf16.mxu0 %v15024_v18 }
 0xa43   : > { %13494 = vmatmul.mubr.f32.vlgmr.msra.gmra.mrb[22].mxu0 %v15498_v33 }
 0xa44   : > { %14215 = vmatpush3.bf16.msra.mxu0 %v14196_v32  ;;  %13504 = vmatprep.mubr.msk.f32.mxu0 %vm15025_vm1, %v15026_v38 }
 0xa45   : > { %14216 = vmatprep.subr.bf16.mxu0 %v15024_v18 }
 0xa48   : > { %14218 = vmatpush3.bf16.msra.mxu0 %v14199_v7 }
 0xa49   : > { %14219 = vmatprep.subr.bf16.mxu0 %v15024_v18 }
 0xa4b   : > { %13505 = vmatmul.mubr.f32.vlgmr.msra.gmra.mrb[22].mxu0 %v15501_v34 }
 0xa4c   : > { %14221 = vmatpush3.bf16.msra.mxu0 %v14220_v41  ;;  %13515 = vmatprep.mubr.msk.f32.mxu0 %vm15025_vm1, %v15026_v38 }
 0xa4d   : > { %14222 = vmatprep.subr.bf16.mxu0 %v15024_v18 }
 0xa50   : > { %14224 = vmatpush3.bf16.msra.mxu0 %v14223_v45 }
 0xa51   : > { %14225 = vmatprep.subr.bf16.mxu0 %v15024_v18 }
 0xa53   : > { %13516 = vmatmul.mubr.f32.vlgmr.msra.gmra.mrb[22].mxu0 %v15495_v31 }
 0xa54   : > { %14227 = vmatpush3.bf16.msra.mxu0 %v14196_v32  ;;  %13526 = vmatprep.mubr.msk.f32.mxu0 %vm15025_vm1, %v15026_v38 }
 0xa55   : > { %14228 = vmatprep.subr.bf16.mxu0 %v15024_v18 }
 0xa58   : > { %14230 = vmatpush3.bf16.msra.mxu0 %v14199_v7 }
 0xa59   : > { %13589 = vmatprep.subr.mxu0 %v15026_v38 }
 0xa5b   : > { %13527 = vmatmul.mubr.f32.vlgmr.msra.gmra.mrb[22].mxu0 %v15495_v31 }
 0xa5c   : > { %13591 = vmatprep.mubr.msk.f32.mxu0 %vm15025_vm1, %v15026_v38 }
 0xab2   : > { %v5538_v46 = vpop.f32.mrb[12].mxu1 }
 0xab3   : > { %v13280_v30 = vpop.f32.mrb[13].mxu1 }
 0xab6   : > { %v5686_v47 = vpop.f32.mrb[14].mxu1 }
 0xab7   : > { %v13290_v49 = vpop.f32.mrb[15].mxu1 }
 0xaba   : > { %v5462_v50 = vpop.f32.mrb[8].mxu0  ;;  %v5832_v19 = vpop.f32.mrb[16].mxu1 }
 0xabb   : > { %v5539_v26 = vadd.f32 %v5538_v46, %v5462_v50  ;;  %v13275_v12 = vpop.f32.mrb[9].mxu0  ;;  %v13300_v57 = vpop.f32.mrb[17].mxu1 }
 0xabe   : > { %v5612_v58 = vpop.f32.mrb[10].mxu0  ;;  %v5987_v43 = vpop.f32.mrb[18].mxu1 }
 0xabf   : > { %v5613_v60 = vadd.f32 %v5612_v58, %v5539_v26  ;;  %v13285_v51 = vpop.f32.mrb[11].mxu0  ;;  %v13310_v15 = vpop.f32.mrb[19].mxu1 }
 0xac1   : > { %v5687_v55 = vadd.f32 %v5686_v47, %v5613_v60 }
 0xac2   : > { %v5760_v2 = vpop.f32.mrb[12].mxu0  ;;  %v6135_v35 = vpop.f32.mrb[20].mxu1 }
 0xac3   : > { %v5761_v39 = vadd.f32 %v5760_v2, %v5687_v55  ;;  %v13295_v42 = vpop.f32.mrb[13].mxu0  ;;  %v13320_v59 = vpop.f32.mrb[21].mxu1 }
 0xac5   : > { %v5833_v61 = vadd.f32 %v5832_v19, %v5761_v39  ;;  %v14698_v39 = vld [vmem:[#allocation7] ss:$0 sm:$0xff] }
 0xac6   : > { %v5911_v27 = vpop.f32.mrb[14].mxu0  ;;  %v6281_v62 = vpop.f32.mrb[22].mxu1 }
 0xac7   : > { %v5912_v1 = vadd.f32 %v5911_v27, %v5833_v61  ;;  %v13305_v5 = vpop.f32.mrb[15].mxu0  ;;  %v13330_v16 = vpop.f32.mrb[23].mxu1  ;;  %v4936_v61 = vadd.f32 %v16048_v3, %v15713_v63  ;;  %v8699_v63 = vld [vmem:[%s16849_s20 + $0x10] sm:$0xff] }
 0xac8   : > { %v8704_v3 = vand.u32 4294901760, %v8699_v63 }
 0xac9   : > { %v5988_v17 = vadd.f32 %v5987_v43, %v5912_v1 }
 0xaca   : > { %v6061_v9 = vpop.f32.mrb[16].mxu0  ;;  %13590 = vmatpush3.msra.mxu0 %v8704_v3 }
 0xacb   : > { %v6062_v6 = vadd.f32 %v6061_v9, %v5988_v17  ;;  %v13315_v32 = vpop.f32.mrb[17].mxu0  ;;  %13599 = vmatprep.subr.mxu0 %v15026_v38 }
 0xacd   : > { %v6136_v20 = vadd.f32 %v6135_v35, %v6062_v6  ;;  %v16368_v35 = vld [vmem:[#allocation13] ss:$0 sm:$0xff] }
 0xace   : > { %v6209_v21 = vpop.f32.mrb[18].mxu0 }
 0xacf   : > { %v6210_v14 = vadd.f32 %v6209_v21, %v6136_v20  ;;  %v13325_v29 = vpop.f32.mrb[19].mxu0 }
 0xad0   : > { %v16420_v29 = vsub.f32 %v8699_v63, %v8704_v3 }
 0xad1   : > { %v16342_v53 = vadd.f32 %v6281_v62, %v6210_v14 }
 0xaf6   : > { %v7281_v48 = vpop.f32.mrb[24].mxu1 }
 0xaf7   : > { %v14346_v7 = vadd.f32 %v7281_v48, %v16257_v56  ;;  %v13462_v10 = vpop.f32.mrb[25].mxu1  ;;  %v8782_v48 = vand.u32 4294901760, %v16420_v29 }
 0xaf9   : > { %v7789_v24 = vsel %vm2044_vm2, %v14346_v7, 0  ;;  %v8783_v7 = vsub.f32 %v16420_v29, %v8782_v48 }
 0xafa   : > { %v7792_v36 = vand.u32 4294901760, %v7789_v24 }
 0xafb   : > { %v8784_v10 = vand.u32 4294901760, %v8783_v7 }
 0xafc   : > { %13530 = vmatpush3.xpose.msra.mxu1 %v7792_v36  ;;  %v7869_v13 = vsub.f32 %v7789_v24, %v7792_v36 }
 0xafd   : > { %13534 = vmatprep.subr.mxu1 %v15026_v38 }
 0xafe   : > { %v6781_v40 = vpop.f32.mrb[20].mxu0  ;;  %v7870_v46 = vand.u32 4294901760, %v7869_v13 }
 0xaff   : > { %v14345_v28 = vadd.f32 %v6781_v40, %v16255_v37  ;;  %v13396_v0 = vpop.f32.mrb[21].mxu0 }
 0xb00   : > { %v7871_v49 = vsub.f32 %v7869_v13, %v7870_v46 }
 0xb01   : > { %v7786_v41 = vsel %vm2044_vm2, %v14345_v28, 0 }
 0xb02   : > { %v7857_v45 = vand.u32 4294901760, %v7786_v41  ;;  %v7872_v19 = vand.u32 4294901760, %v7871_v49 }
 0xb04   : > { %v7858_v30 = vsub.f32 %v7786_v41, %v7857_v45 }
 0xb06   : > { %v7859_v47 = vand.u32 4294901760, %v7858_v30 }
 0xb08   : > { %v7860_v56 = vsub.f32 %v7858_v30, %v7859_v47 }
 0xb0a   : > { %v7861_v50 = vand.u32 4294901760, %v7860_v56 }
 0xb0c   : > { %13532 = vmatmul.mubr.f32.vlgmr.msra.gmra.mrb[26].mxu1 %v7861_v50 }
 0xb0d   : > { %13535 = vmatpush3.xpose.msra.mxu1 %v7872_v19  ;;  %13536 = vmatprep.mubr.msk.f32.mxu1 %vm15025_vm1, %v15026_v38 }
 0xb0e   : > { %13539 = vmatprep.subr.mxu1 %v15026_v38 }
 0xb14   : > { %13537 = vmatmul.mubr.f32.vlgmr.msra.gmra.mrb[26].mxu1 %v7857_v45 }
 0xb15   : > { %13540 = vmatpush3.xpose.msra.mxu1 %v7869_v13  ;;  %13541 = vmatprep.mubr.msk.f32.mxu1 %vm15025_vm1, %v15026_v38 }
 0xb16   : > { %13544 = vmatprep.subr.mxu1 %v15026_v38 }
 0xb1c   : > { %13542 = vmatmul.mubr.f32.vlgmr.msra.gmra.mrb[26].mxu1 %v7858_v30 }
 0xb1d   : > { %13545 = vmatpush3.xpose.msra.mxu1 %v7792_v36  ;;  %13546 = vmatprep.mubr.msk.f32.mxu1 %vm15025_vm1, %v15026_v38 }
 0xb1e   : > { %13549 = vmatprep.subr.mxu1 %v15026_v38 }
 0xb24   : > { %13547 = vmatmul.mubr.f32.vlgmr.msra.gmra.mrb[26].mxu1 %v7859_v47 }
 0xb25   : > { %13550 = vmatpush3.xpose.msra.mxu1 %v7870_v46  ;;  %13551 = vmatprep.mubr.msk.f32.mxu1 %vm15025_vm1, %v15026_v38 }
 0xb26   : > { %13554 = vmatprep.subr.mxu1 %v15026_v38 }
 0xb2c   : > { %13552 = vmatmul.mubr.f32.vlgmr.msra.gmra.mrb[26].mxu1 %v7857_v45 }
 0xb2d   : > { %13555 = vmatpush3.xpose.msra.mxu1 %v7792_v36  ;;  %13556 = vmatprep.mubr.msk.f32.mxu1 %vm15025_vm1, %v15026_v38 }
 0xb2e   : > { %v7781_v37 = vpop.f32.mrb[22].mxu0  ;;  %13559 = vmatprep.subr.mxu1 %v15026_v38 }
 0xb2f   : > { %v13528_v26 = vpop.f32.mrb[23].mxu0 }
 0xb34   : > { %13557 = vmatmul.mubr.f32.vlgmr.msra.gmra.mrb[26].mxu1 %v7857_v45 }
 0xb35   : > { %13561 = vmatprep.mubr.msk.f32.mxu1 %vm15025_vm1, %v15026_v38 }
 0xc07   : > { %v8233_v12 = vpop.f32.mrb[26].mxu1 }
 0xc08   : > { %v8237_v57 = vmul.f32 0.35355338, %v8233_v12  ;;  %v13558_v58 = vpop.f32.mrb[27].mxu1 }
 0xc0a   : > { %v8238_v43 = vsel %vm2044_vm2, %v8237_v57, -inf }
 0xc0b   : > { %8239 = vmax.xlane.f32.xlu1 %v8238_v43 }
 0xc1c   : > { %9150 = vrot.lane.b32.xlu1 %v16008_v44, %s15029_s28  ;;  %v14699_v44 = vld [vmem:[#allocation11] sm:$0xff] }
 0xc20   : > { %9152 = vrot.lane.b32.xlu1 %v16004_v52, %s15029_s28  ;;  %v14700_v52 = vld [vmem:[#allocation10] ss:$0 sm:$0xff] }
 0xc24   : > { %9156 = vrot.lane.b32.xlu1 %v16012_v54, %s15029_s28  ;;  %v14702_v54 = vld [vmem:[#allocation11 + $0x8] sm:$0xff] }
 0xc28   : > { %9652 = vrot.lane.b32.xlu1 %v16020_v8, %s15029_s28 }
 0xc2c   : > { %9656 = vrot.lane.b32.xlu1 %v16028_v22, %s15029_s28 }
 0xc30   : > { %9662 = vrot.lane.b32.xlu1 %v14700_v52, %s15029_s28 }
 0xc34   : > { %10152 = vrot.lane.b32.xlu1 %v14702_v54, %s15029_s28 }
 0xc98   : > { %v8240_v60 = vpop.xlane.xlu1 %8239 }
 0xc99   : > { %v8241_v51 = vsub.f32 %v8237_v57, %v8240_v60 }
 0xc9b   : > { %v8242_v15 = vmul.f32 1.442695, %v8241_v51 }
 0xc9c   : > { %v16428_v24 = vpop.permute.xlu1 %9150 }
 0xc9d   : > { %14681 = vpow2.f32 %v8242_v15  ;;  %v9166_v15 = vand.u32 4294901760, %v16428_v24 }
 0xca0   : > { %v16430_v36 = vpop.permute.xlu1 %9152 }
 0xca4   : > { %v16432_v40 = vpop.permute.xlu1 %9156 }
 0xca7   : > { %v14682_v55 = vpop.eup %14681 }
 0xca8   : > { %v8244_v2 = vsel %vm2044_vm2, %v14682_v55, 0.0  ;;  %v9653_v28 = vpop.permute.xlu1 %9652 }
 0xca9   : > { %8245 = vadd.xlane.f32.xlu0 %v8244_v2  ;;  %v9669_v41 = vand.u32 4294901760, %v9653_v28  ;;  %v9169_v2 = vand.u32 4294901760, %v16430_v36 }
 0xcab   : > { %v16436_v49 = vsub.f32 %v9653_v28, %v9669_v41 }
 0xcac   : > { %v9657_v46 = vpop.permute.xlu1 %9656 }
 0xcad   : > { %v9754_v58 = vand.u32 4294901760, %v16436_v49 }
 0xcaf   : > { %v9755_v52 = vsub.f32 %v16436_v49, %v9754_v58 }
 0xcbf   : > { %7297 = vrot.lane.b32.xlu0 %v16368_v35, %s15028_s26  ;;  %s15030_s26 = smov [#allocation15]  }
 0xcc0   : > { %s14907_s19 = sshll.u32 %s15030_s26, 4  ;;  %s14908_s19 = int_to_ptr.vmem [resolvable:$false] %s14907_s19 }
 0xcc1   : > { %s14909_s0 = scalar_lea.vmem %s14908_s19, 256  ;;  %p14910_p1 = scmp.lt.s32.totalorder %s12060_s18, %s14908_s19 }
 0xcc2   : > { %p14911_p3 = scmp.lt.s32.totalorder %s14909_s0, %s14903_s25 }
 0xcc3   : > { %9154 = vrot.lane.b32.xlu0 %v16016_v25, %s15029_s28  ;;  %v14701_v25 = vld [vmem:[#allocation11 + $0x10] sm:$0xff] }
 0xcc4   : > { %p14912_p2 = por %p14911_p3, %p14910_p1 }
 0xcc6   : > { %p14913_p0 = pnand %p14912_p2, %p14906_p13 }
 0xcc7   : > { %9650 = vrot.lane.b32.xlu0 %v16024_v11, %s15029_s28  ;;  %v14703_v11 = vld [vmem:[#allocation11 + $0x18] sm:$0xff] }
 0xcc8   : > { %10156 = vrot.lane.b32.xlu1 %v14703_v11, %s15029_s28 }
 0xccb   : > { %9654 = vrot.lane.b32.xlu0 %v16032_v23, %s15029_s28 }
 0xccf   : > { %9162 = vrot.lane.b32.xlu0 %v14698_v39, %s15029_s28 }
 0xcd3   : > { %10150 = vrot.lane.b32.xlu0 %v14699_v44, %s15029_s28 }
 0xcd7   : > { %10154 = vrot.lane.b32.xlu0 %v14701_v25, %s15029_s28 }
 0xd36   : > { %v8246_v8 = vpop.xlane.xlu0 %8245 }
 0xd37   : > { %14683 = vrcp.f32 %v8246_v8  ;;  %v16465_v8 = vsub.f32 %v16428_v24, %v9166_v15 }
 0xd3a   : > { %v7298_v23 = vpop.permute.xlu0 %7297 }
 0xd3b   : > { %v14347_v42 = vadd.f32 %v7781_v37, %v7298_v23  ;;  %v9675_v37 = vand.u32 4294901760, %v9657_v46 }
 0xd3d   : > { %v8254_v22 = vand.u32 4294901760, %v14347_v42  ;;  %v16445_v60 = vsub.f32 %v9657_v46, %v9675_v37 }
 0xd3e   : > { %v16434_v13 = vpop.permute.xlu0 %9154 }
 0xd3f   : > { %13560 = vmatpush3.msra.mxu1 %v8254_v22  ;;  %v8331_v62 = vsub.f32 %v14347_v42, %v8254_v22  ;;  %v9768_v54 = vand.u32 4294901760, %v16445_v60  ;;  %v16469_v42 = vsub.f32 %v16430_v36, %v9169_v2 }
 0xd40   : > { %13564 = vmatprep.subr.mxu1 %v15026_v38 }
 0xd41   : > { %v14684_v59 = vpop.eup %14683  ;;  %v8332_v17 = vand.u32 4294901760, %v8331_v62 }
 0xd42   : > { %v8248_v27 = vmul.f32 %v14684_v59, %v14682_v55  ;;  %v9651_v0 = vpop.permute.xlu0 %9650  ;;  %v9172_v59 = vand.u32 4294901760, %v16434_v13 }
 0xd43   : > { %v8333_v32 = vsub.f32 %v8331_v62, %v8332_v17  ;;  %v9666_v45 = vand.u32 4294901760, %v9651_v0 }
 0xd44   : > { %v16397_v1 = vadd.f32 %v8248_v27, %v4936_v61  ;;  %v8251_v5 = vsel %vm2044_vm2, %v8248_v27, 0  ;;  %v9756_v27 = vand.u32 4294901760, %v9755_v52 }
 0xd45   : > { %v8319_v16 = vand.u32 4294901760, %v8251_v5  ;;  %v8334_v14 = vand.u32 4294901760, %v8333_v32  ;;  %v16439_v19 = vsub.f32 %v9651_v0, %v9666_v45  ;;  %v16452_v44 = vpack.c.bf16 %v9669_v41, %v9666_v45 }
 0xd46   : > { %v9655_v30 = vpop.permute.xlu0 %9654  ;;  %v16492_v32 = vsub.f32 %v16434_v13, %v9172_v59 }
 0xd47   : > { %v8320_v9 = vsub.f32 %v8251_v5, %v8319_v16  ;;  %v9672_v26 = vand.u32 4294901760, %v9655_v30  ;;  %v9747_v43 = vand.u32 4294901760, %v16439_v19  ;;  %v9769_v5 = vsub.f32 %v16445_v60, %v9768_v54 }
 0xd48   : > { %v14280_v45 = vpack.c.bf16 %v16436_v49, %v16439_v19 }
 0xd49   : > { %v8321_v6 = vand.u32 4294901760, %v8320_v9  ;;  %v16447_v51 = vsub.f32 %v9655_v30, %v9672_v26  ;;  %v9748_v25 = vsub.f32 %v16439_v19, %v9747_v43  ;;  %v16473_v61 = vpack.c.bf16 %v9675_v37, %v9672_v26  ;;  %v16563_v37 = vpop.permute.xlu1 %9662 }
 0xd4a   : > { %v16565_v26 = vpop.permute.xlu0 %9162 }
 0xd4b   : > { %v8322_v20 = vsub.f32 %v8320_v9, %v8321_v6  ;;  %v9761_v11 = vand.u32 4294901760, %v16447_v51  ;;  %v14283_v30 = vpack.c.bf16 %v16445_v60, %v16447_v51 }
 0xd4d   : > { %v8323_v21 = vand.u32 4294901760, %v8322_v20  ;;  %v9770_v20 = vand.u32 4294901760, %v9769_v5  ;;  %v10153_v49 = vpop.permute.xlu1 %10152 }
 0xd4e   : > { %v10151_v19 = vpop.permute.xlu0 %10150 }
 0xd4f   : > { %13562 = vmatmul.mubr.f32.vlgmr.msra.gmra.mrb[28].mxu1 %v8323_v21  ;;  %v10166_v60 = vand.u32 4294901760, %v10151_v19 }
 0xd50   : > { %13565 = vmatpush3.msra.mxu1 %v8334_v14  ;;  %13566 = vmatprep.mubr.msk.f32.mxu1 %vm15025_vm1, %v15026_v38 }
 0xd51   : > { %13569 = vmatprep.subr.mxu1 %v15026_v38 }
 0xd57   : > { %13567 = vmatmul.mubr.f32.vlgmr.msra.gmra.mrb[28].mxu1 %v8319_v16 }
 0xd58   : > { %13570 = vmatpush3.msra.mxu1 %v8331_v62  ;;  %13571 = vmatprep.mubr.msk.f32.mxu1 %vm15025_vm1, %v15026_v38  ;;  %v9749_v62 = vand.u32 4294901760, %v9748_v25 }
 0xd59   : > { %13574 = vmatprep.subr.mxu1 %v15026_v38 }
 0xd5a   : > { %v14274_v14 = vpack.c.bf16 %v9756_v27, %v9749_v62 }
 0xd5f   : > { %13572 = vmatmul.mubr.f32.vlgmr.msra.gmra.mrb[28].mxu1 %v8320_v9  ;;  %v9254_v9 = vand.u32 4294901760, %v16469_v42 }
 0xd60   : > { %13575 = vmatpush3.msra.mxu1 %v8254_v22  ;;  %13576 = vmatprep.mubr.msk.f32.mxu1 %vm15025_vm1, %v15026_v38 }
 0xd61   : > { %13579 = vmatprep.subr.mxu1 %v15026_v38  ;;  %v9255_v7 = vsub.f32 %v16469_v42, %v9254_v9 }
 0xd63   : > { %v9256_v36 = vand.u32 4294901760, %v9255_v7 }
 0xd67   : > { %13577 = vmatmul.mubr.f32.vlgmr.msra.gmra.mrb[28].mxu1 %v8321_v6 }
 0xd68   : > { %13580 = vmatpush3.msra.mxu1 %v8332_v17  ;;  %13581 = vmatprep.mubr.msk.f32.mxu1 %vm15025_vm1, %v15026_v38  ;;  %v9247_v17 = vand.u32 4294901760, %v16465_v8 }
 0xd69   : > { %13584 = vmatprep.subr.mxu1 %v15026_v38 }
 0xd6a   : > { %v9248_v63 = vsub.f32 %v16465_v8, %v9247_v17 }
 0xd6c   : > { %v9249_v24 = vand.u32 4294901760, %v9248_v63 }
 0xd6e   : > { %v14238_v46 = vpack.c.bf16 %v9256_v36, %v9249_v24 }
 0xd6f   : > { %13582 = vmatmul.mubr.f32.vlgmr.msra.gmra.mrb[28].mxu1 %v8319_v16 }
 0xd70   : > { %13585 = vmatpush3.msra.mxu1 %v8254_v22  ;;  %13586 = vmatprep.mubr.msk.f32.mxu1 %vm15025_vm1, %v15026_v38  ;;  %v9175_v22 = vand.u32 4294901760, %v16432_v40 }
 0xd71   : > { %13594 = vmatprep.subr.mxu1 %v15026_v38 }
 0xd72   : > { %v16489_v6 = vsub.f32 %v16432_v40, %v9175_v22  ;;  %v16521_v13 = vpack.c.bf16 %v9175_v22, %v9172_v59 }
 0xd77   : > { %13587 = vmatmul.mubr.f32.vlgmr.msra.gmra.mrb[28].mxu1 %v8319_v16  ;;  %v9762_v16 = vsub.f32 %v16447_v51, %v9761_v11  ;;  %v10157_v51 = vpop.permute.xlu1 %10156 }
 0xd78   : > { %13596 = vmatprep.mubr.msk.f32.mxu1 %vm15025_vm1, %v15026_v38  ;;  %13595 = vmatpush3.msra.mxu1 %v8784_v10  ;;  %v9268_v10 = vand.u32 4294901760, %v16489_v6 }
 0xd79   : > { %13604 = vmatprep.subr.mxu1 %v15026_v38  ;;  %v9763_v21 = vand.u32 4294901760, %v9762_v16 }
 0xd7a   : > { %v9269_v40 = vsub.f32 %v16489_v6, %v9268_v10 }
 0xd7c   : > { %v9270_v0 = vand.u32 4294901760, %v9269_v40 }
 0xe4a   : > { %v8695_v47 = vpop.f32.mrb[28].mxu1 }
 0xe4b   : > { %v8701_v56 = vsel %vm2044_vm2, %v8695_v47, 0  ;;  %v13588_v50 = vpop.f32.mrb[29].mxu1 }
 0xe4c   : > { %v8769_v12 = vand.u32 4294901760, %v8701_v56  ;;  %v14247_v50 = vpack.c.bf16 %v16489_v6, %v16492_v32 }
 0xe4e   : > { %v8770_v57 = vsub.f32 %v8701_v56, %v8769_v12  ;;  %13597 = vmatmul.mubr.f32.vlgmr.msra.gmra.mrb[30].mxu1 %v8769_v12  ;;  %v14244_v56 = vpack.c.bf16 %v16469_v42, %v16465_v8 }
 0xe4f   : > { %13605 = vmatpush3.msra.mxu1 %v8704_v3  ;;  %13606 = vmatprep.mubr.msk.f32.mxu1 %vm15025_vm1, %v15026_v38 }
 0xe50   : > { %v8771_v55 = vand.u32 4294901760, %v8770_v57  ;;  %13614 = vmatprep.subr.mxu1 %v15026_v38 }
 0xe52   : > { %v8772_v39 = vsub.f32 %v8770_v57, %v8771_v55  ;;  %13607 = vmatmul.mubr.f32.vlgmr.msra.gmra.mrb[32].mxu1 %v8771_v55 }
 0xe53   : > { %13615 = vmatpush3.msra.mxu1 %v8704_v3  ;;  %13616 = vmatprep.mubr.msk.f32.mxu1 %vm15025_vm1, %v15026_v38  ;;  %v16506_v3 = vpack.c.bf16 %v9169_v2, %v9166_v15  ;;  %v10155_v15 = vpop.permute.xlu0 %10154 }
 0xe54   : > { %v8773_v23 = vand.u32 4294901760, %v8772_v39  ;;  %14267 = vmatprep.subr.bf16.mxu1 %v15024_v18  ;;  %v10246_v39 = vsub.f32 %v10151_v19, %v10166_v60  ;;  %v10172_v52 = vand.u32 4294901760, %v10155_v15 }
 0xe56   : > { %13592 = vmatmul.mubr.f32.vlgmr.msra.gmra.mrb[24].mxu0 %v8773_v23  ;;  %13617 = vmatmul.mubr.f32.vlgmr.msra.gmra.mrb[34].mxu1 %v8769_v12  ;;  %v10260_v8 = vsub.f32 %v10155_v15, %v10172_v52 }
 0xe57   : > { %14269 = vmatpush3.bf16.msra.mxu1 %v16452_v44  ;;  %13600 = vmatpush3.msra.mxu0 %v16420_v29  ;;  %v9261_v29 = vand.u32 4294901760, %v16492_v32 }
 0xe58   : > { %13601 = vmatprep.mubr.msk.f32.mxu0 %vm15025_vm1, %v15026_v38  ;;  %14270 = vmatprep.subr.bf16.mxu1 %v15024_v18 }
 0xe59   : > { %13609 = vmatprep.subr.mxu0 %v15026_v38  ;;  %13693 = vmatprep.mubr.msk.f32.mxu1 %vm15025_vm1, %v15026_v38  ;;  %v9262_v28 = vsub.f32 %v16492_v32, %v9261_v29  ;;  %v14259_v55 = vpack.c.bf16 %v9268_v10, %v9261_v29 }
 0xe5a   : > { %13602 = vmatmul.mubr.f32.vlgmr.msra.gmra.mrb[26].mxu0 %v8770_v57  ;;  %v14295_v57 = vpack.c.bf16 %v9768_v54, %v9761_v11  ;;  %v10247_v54 = vand.u32 4294901760, %v10246_v39 }
 0xe5b   : > { %14272 = vmatpush3.bf16.msra.mxu1 %v16473_v61  ;;  %13610 = vmatpush3.msra.mxu0 %v8782_v48  ;;  %v14277_v48 = vpack.c.bf16 %v9770_v20, %v9763_v21  ;;  %v9263_v41 = vand.u32 4294901760, %v9262_v28 }
 0xe5c   : > { %13611 = vmatprep.mubr.msk.f32.mxu0 %vm15025_vm1, %v15026_v38  ;;  %14231 = vmatprep.subr.bf16.mxu0 %v15024_v18  ;;  %v10248_v22 = vsub.f32 %v10246_v39, %v10247_v54 }
 0xe5d   : > { %14273 = vmatprep.subr.bf16.mxu1 %v15024_v18  ;;  %v14241_v47 = vpack.c.bf16 %v9270_v0, %v9263_v41 }
 0xe5e   : > { %13694 = vmatmul.mubr.f32.vlgmr.msra.gmra.mrb[36].mxu1 %v15505_v4  ;;  %13612 = vmatmul.mubr.f32.vlgmr.msra.gmra.mrb[28].mxu0 %v8769_v12  ;;  %v14292_v12 = vpack.c.bf16 %v9754_v58, %v9747_v43  ;;  %v14256_v58 = vpack.c.bf16 %v9254_v9, %v9247_v17  ;;  %v10169_v43 = vand.u32 4294901760, %v10153_v49  ;;  %v10249_v62 = vand.u32 4294901760, %v10248_v22 }
 0xe5f   : > { %14233 = vmatpush3.bf16.msra.mxu0 %v16506_v3  ;;  %14275 = vmatpush3.bf16.msra.mxu1 %v14274_v14 }
 0xe60   : > { %14234 = vmatprep.subr.bf16.mxu0 %v15024_v18  ;;  %14276 = vmatprep.subr.bf16.mxu1 %v15024_v18  ;;  %v10253_v2 = vsub.f32 %v10153_v49, %v10169_v43  ;;  %v14304_v42 = vpack.c.bf16 %v10169_v43, %v10166_v60 }
 0xe61   : > { %13627 = vmatprep.mubr.msk.f32.mxu0 %vm15025_vm1, %v15026_v38  ;;  %13704 = vmatprep.mubr.msk.f32.mxu1 %vm15025_vm1, %v15026_v38 }
 0xe62   : > { %v10254_v25 = vand.u32 4294901760, %v10253_v2  ;;  %v14316_v21 = vpack.c.bf16 %v10253_v2, %v10246_v39 }
 0xe63   : > { %14236 = vmatpush3.bf16.msra.mxu0 %v16521_v13  ;;  %14278 = vmatpush3.bf16.msra.mxu1 %v14277_v48 }
 0xe64   : > { %14237 = vmatprep.subr.bf16.mxu0 %v15024_v18  ;;  %14279 = vmatprep.subr.bf16.mxu1 %v15024_v18  ;;  %v10255_v23 = vsub.f32 %v10253_v2, %v10254_v25 }
 0xe66   : > { %13628 = vmatmul.mubr.f32.vlgmr.msra.gmra.mrb[30].mxu0 %v15505_v4  ;;  %13705 = vmatmul.mubr.f32.vlgmr.msra.gmra.mrb[36].mxu1 %v15495_v31  ;;  %v10256_v27 = vand.u32 4294901760, %v10255_v23 }
 0xe67   : > { %14239 = vmatpush3.bf16.msra.mxu0 %v14238_v46  ;;  %14281 = vmatpush3.bf16.msra.mxu1 %v14280_v45 }
 0xe68   : > { %14240 = vmatprep.subr.bf16.mxu0 %v15024_v18  ;;  %14282 = vmatprep.subr.bf16.mxu1 %v15024_v18  ;;  %v14310_v32 = vpack.c.bf16 %v10256_v27, %v10249_v62 }
 0xe69   : > { %13638 = vmatprep.mubr.msk.f32.mxu0 %vm15025_vm1, %v15026_v38  ;;  %13715 = vmatprep.mubr.msk.f32.mxu1 %vm15025_vm1, %v15026_v38 }
 0xe6b   : > { %14242 = vmatpush3.bf16.msra.mxu0 %v14241_v47  ;;  %14284 = vmatpush3.bf16.msra.mxu1 %v14283_v30 }
 0xe6c   : > { %14243 = vmatprep.subr.bf16.mxu0 %v15024_v18  ;;  %14285 = vmatprep.subr.bf16.mxu1 %v15024_v18 }
 0xe6e   : > { %13639 = vmatmul.mubr.f32.vlgmr.msra.gmra.mrb[30].mxu0 %v15495_v31  ;;  %13716 = vmatmul.mubr.f32.vlgmr.msra.gmra.mrb[36].mxu1 %v15498_v33 }
 0xe6f   : > { %14245 = vmatpush3.bf16.msra.mxu0 %v14244_v56  ;;  %14287 = vmatpush3.bf16.msra.mxu1 %v16452_v44 }
 0xe70   : > { %14246 = vmatprep.subr.bf16.mxu0 %v15024_v18  ;;  %14288 = vmatprep.subr.bf16.mxu1 %v15024_v18 }
 0xe71   : > { %13649 = vmatprep.mubr.msk.f32.mxu0 %vm15025_vm1, %v15026_v38  ;;  %13726 = vmatprep.mubr.msk.f32.mxu1 %vm15025_vm1, %v15026_v38 }
 0xe73   : > { %14248 = vmatpush3.bf16.msra.mxu0 %v14247_v50  ;;  %14290 = vmatpush3.bf16.msra.mxu1 %v16473_v61 }
 0xe74   : > { %14249 = vmatprep.subr.bf16.mxu0 %v15024_v18  ;;  %14291 = vmatprep.subr.bf16.mxu1 %v15024_v18 }
 0xe76   : > { %13650 = vmatmul.mubr.f32.vlgmr.msra.gmra.mrb[30].mxu0 %v15498_v33  ;;  %13727 = vmatmul.mubr.f32.vlgmr.msra.gmra.mrb[36].mxu1 %v15501_v34 }
 0xe77   : > { %14251 = vmatpush3.bf16.msra.mxu0 %v16506_v3  ;;  %14293 = vmatpush3.bf16.msra.mxu1 %v14292_v12 }
 0xe78   : > { %14252 = vmatprep.subr.bf16.mxu0 %v15024_v18  ;;  %14294 = vmatprep.subr.bf16.mxu1 %v15024_v18 }
 0xe79   : > { %13660 = vmatprep.mubr.msk.f32.mxu0 %vm15025_vm1, %v15026_v38  ;;  %13737 = vmatprep.mubr.msk.f32.mxu1 %vm15025_vm1, %v15026_v38 }
 0xe7b   : > { %14254 = vmatpush3.bf16.msra.mxu0 %v16521_v13  ;;  %14296 = vmatpush3.bf16.msra.mxu1 %v14295_v57 }
 0xe7c   : > { %14255 = vmatprep.subr.bf16.mxu0 %v15024_v18  ;;  %14297 = vmatprep.subr.bf16.mxu1 %v15024_v18 }
 0xe7e   : > { %13661 = vmatmul.mubr.f32.vlgmr.msra.gmra.mrb[30].mxu0 %v15501_v34  ;;  %13738 = vmatmul.mubr.f32.vlgmr.msra.gmra.mrb[36].mxu1 %v15495_v31 }
 0xe7f   : > { %14257 = vmatpush3.bf16.msra.mxu0 %v14256_v58  ;;  %14299 = vmatpush3.bf16.msra.mxu1 %v16452_v44  ;;  %v10175_v44 = vand.u32 4294901760, %v10157_v51 }
 0xe80   : > { %14258 = vmatprep.subr.bf16.mxu0 %v15024_v18  ;;  %14300 = vmatprep.subr.bf16.mxu1 %v15024_v18 }
 0xe81   : > { %13671 = vmatprep.mubr.msk.f32.mxu0 %vm15025_vm1, %v15026_v38  ;;  %13748 = vmatprep.mubr.msk.f32.mxu1 %vm15025_vm1, %v15026_v38  ;;  %v10267_v11 = vsub.f32 %v10157_v51, %v10175_v44  ;;  %v14307_v16 = vpack.c.bf16 %v10175_v44, %v10172_v52 }
 0xe83   : > { %14260 = vmatpush3.bf16.msra.mxu0 %v14259_v55  ;;  %14302 = vmatpush3.bf16.msra.mxu1 %v16473_v61  ;;  %v10268_v59 = vand.u32 4294901760, %v10267_v11  ;;  %v10261_v61 = vand.u32 4294901760, %v10260_v8  ;;  %v14319_v14 = vpack.c.bf16 %v10267_v11, %v10260_v8 }
 0xe84   : > { %14261 = vmatprep.subr.bf16.mxu0 %v15024_v18  ;;  %13817 = vmatprep.subr.mxu1 %v15026_v38 }
 0xe85   : > { %v10269_v5 = vsub.f32 %v10267_v11, %v10268_v59  ;;  %v10262_v17 = vsub.f32 %v10260_v8, %v10261_v61  ;;  %v14331_v63 = vpack.c.bf16 %v10268_v59, %v10261_v61 }
 0xe86   : > { %13672 = vmatmul.mubr.f32.vlgmr.msra.gmra.mrb[30].mxu0 %v15495_v31  ;;  %13749 = vmatmul.mubr.f32.vlgmr.msra.gmra.mrb[36].mxu1 %v15495_v31 }
 0xe87   : > { %14263 = vmatpush3.bf16.msra.mxu0 %v16506_v3  ;;  %13682 = vmatprep.mubr.msk.f32.mxu0 %vm15025_vm1, %v15026_v38  ;;  %v10270_v9 = vand.u32 4294901760, %v10269_v5  ;;  %v10263_v6 = vand.u32 4294901760, %v10262_v17 }
 0xe88   : > { %14264 = vmatprep.subr.bf16.mxu0 %v15024_v18  ;;  %13819 = vmatprep.mubr.msk.f32.mxu1 %vm15025_vm1, %v15026_v38 }
 0xe89   : > { %v14313_v20 = vpack.c.bf16 %v10270_v9, %v10263_v6 }
 0xe8b   : > { %14266 = vmatpush3.bf16.msra.mxu0 %v16521_v13 }
 0xe8c   : > { %14303 = vmatprep.subr.bf16.mxu0 %v15024_v18 }
 0xe8e   : > { %13683 = vmatmul.mubr.f32.vlgmr.msra.gmra.mrb[30].mxu0 %v15495_v31 }
 0xe8f   : > { %14305 = vmatpush3.bf16.msra.mxu0 %v14304_v42  ;;  %13759 = vmatprep.mubr.msk.f32.mxu0 %vm15025_vm1, %v15026_v38 }
 0xe90   : > { %14306 = vmatprep.subr.bf16.mxu0 %v15024_v18 }
 0xe93   : > { %14308 = vmatpush3.bf16.msra.mxu0 %v14307_v16 }
 0xe94   : > { %14309 = vmatprep.subr.bf16.mxu0 %v15024_v18 }
 0xe96   : > { %13760 = vmatmul.mubr.f32.vlgmr.msra.gmra.mrb[32].mxu0 %v15505_v4  ;;  %v14328_v4 = vpack.c.bf16 %v10254_v25, %v10247_v54 }
 0xe97   : > { %14311 = vmatpush3.bf16.msra.mxu0 %v14310_v32  ;;  %13770 = vmatprep.mubr.msk.f32.mxu0 %vm15025_vm1, %v15026_v38 }
 0xe98   : > { %14312 = vmatprep.subr.bf16.mxu0 %v15024_v18 }
 0xe9b   : > { %14314 = vmatpush3.bf16.msra.mxu0 %v14313_v20 }
 0xe9c   : > { %14315 = vmatprep.subr.bf16.mxu0 %v15024_v18 }
 0xe9e   : > { %13771 = vmatmul.mubr.f32.vlgmr.msra.gmra.mrb[32].mxu0 %v15495_v31 }
 0xe9f   : > { %14317 = vmatpush3.bf16.msra.mxu0 %v14316_v21  ;;  %13781 = vmatprep.mubr.msk.f32.mxu0 %vm15025_vm1, %v15026_v38 }
 0xea0   : > { %14318 = vmatprep.subr.bf16.mxu0 %v15024_v18 }
 0xea3   : > { %14320 = vmatpush3.bf16.msra.mxu0 %v14319_v14 }
 0xea4   : > { %14321 = vmatprep.subr.bf16.mxu0 %v15024_v18 }
 0xea6   : > { %13782 = vmatmul.mubr.f32.vlgmr.msra.gmra.mrb[32].mxu0 %v15498_v33 }
 0xea7   : > { %14323 = vmatpush3.bf16.msra.mxu0 %v14304_v42  ;;  %13792 = vmatprep.mubr.msk.f32.mxu0 %vm15025_vm1, %v15026_v38 }
 0xea8   : > { %14324 = vmatprep.subr.bf16.mxu0 %v15024_v18 }
 0xeab   : > { %14326 = vmatpush3.bf16.msra.mxu0 %v14307_v16 }
 0xeac   : > { %14327 = vmatprep.subr.bf16.mxu0 %v15024_v18 }
 0xeae   : > { %13793 = vmatmul.mubr.f32.vlgmr.msra.gmra.mrb[32].mxu0 %v15501_v34 }
 0xeaf   : > { %14329 = vmatpush3.bf16.msra.mxu0 %v14328_v4  ;;  %13803 = vmatprep.mubr.msk.f32.mxu0 %vm15025_vm1, %v15026_v38 }
 0xeb0   : > { %14330 = vmatprep.subr.bf16.mxu0 %v15024_v18 }
 0xeb3   : > { %14332 = vmatpush3.bf16.msra.mxu0 %v14331_v63 }
 0xeb4   : > { %14333 = vmatprep.subr.bf16.mxu0 %v15024_v18 }
 0xeb6   : > { %13804 = vmatmul.mubr.f32.vlgmr.msra.gmra.mrb[32].mxu0 %v15495_v31 }
 0xeb7   : > { %14335 = vmatpush3.bf16.msra.mxu0 %v14304_v42  ;;  %13814 = vmatprep.mubr.msk.f32.mxu0 %vm15025_vm1, %v15026_v38 }
 0xeb8   : > { %14336 = vmatprep.subr.bf16.mxu0 %v15024_v18 }
 0xebb   : > { %14338 = vmatpush3.bf16.msra.mxu0 %v14307_v16 }
 0xebc   : > { %13877 = vmatprep.subr.mxu0 %v15026_v38 }
 0xebe   : > { %13815 = vmatmul.mubr.f32.vlgmr.msra.gmra.mrb[32].mxu0 %v15495_v31 }
 0xebf   : > { %13879 = vmatprep.mubr.msk.f32.mxu0 %vm15025_vm1, %v15026_v38 }
 0xf21   : > { %v8851_v33 = vpop.f32.mrb[30].mxu1 }
 0xf22   : > { %v13598_v34 = vpop.f32.mrb[31].mxu1 }
 0xf25   : > { %v8999_v3 = vpop.f32.mrb[32].mxu1 }
 0xf26   : > { %v13608_v7 = vpop.f32.mrb[33].mxu1 }
 0xf29   : > { %v8775_v10 = vpop.f32.mrb[24].mxu0  ;;  %v9145_v29 = vpop.f32.mrb[34].mxu1 }
 0xf2a   : > { %v8852_v48 = vadd.f32 %v8851_v33, %v8775_v10  ;;  %v13593_v24 = vpop.f32.mrb[25].mxu0  ;;  %v13618_v36 = vpop.f32.mrb[35].mxu1 }
 0xf2d   : > { %v8925_v40 = vpop.f32.mrb[26].mxu0 }
 0xf2e   : > { %v8926_v13 = vadd.f32 %v8925_v40, %v8852_v48  ;;  %v13603_v18 = vpop.f32.mrb[27].mxu0 }
 0xf30   : > { %v9000_v28 = vadd.f32 %v8999_v3, %v8926_v13 }
 0xf31   : > { %v9073_v0 = vpop.f32.mrb[28].mxu0 }
 0xf32   : > { %v9074_v41 = vadd.f32 %v9073_v0, %v9000_v28  ;;  %v13613_v45 = vpop.f32.mrb[29].mxu0 }
 0xf34   : > { %v9146_v31 = vadd.f32 %v9145_v29, %v9074_v41 }
 0xf36   : > { %v16651_v46 = vadd.f32 %v9146_v31, %v16342_v53 }
 0xf59   : > { %v10146_v30 = vpop.f32.mrb[36].mxu1 }
 0xf5a   : > { %v14349_v47 = vadd.f32 %v10146_v30, %v16563_v37  ;;  %v13750_v56 = vpop.f32.mrb[37].mxu1 }
 0xf5c   : > { %v10654_v50 = vsel %vm2044_vm2, %v14349_v47, 0 }
 0xf5d   : > { %v10657_v12 = vand.u32 4294901760, %v10654_v50 }
 0xf5f   : > { %13818 = vmatpush3.xpose.msra.mxu1 %v10657_v12  ;;  %v10734_v49 = vsub.f32 %v10654_v50, %v10657_v12 }
 0xf60   : > { %13822 = vmatprep.subr.mxu1 %v15026_v38 }
 0xf61   : > { %v9646_v57 = vpop.f32.mrb[30].mxu0  ;;  %v10735_v53 = vand.u32 4294901760, %v10734_v49 }
 0xf62   : > { %v14348_v19 = vadd.f32 %v9646_v57, %v16565_v26  ;;  %v13684_v58 = vpop.f32.mrb[31].mxu0 }
 0xf63   : > { %v10736_v55 = vsub.f32 %v10734_v49, %v10735_v53 }
 0xf64   : > { %v10651_v43 = vsel %vm2044_vm2, %v14348_v19, 0 }
 0xf65   : > { %v10722_v60 = vand.u32 4294901760, %v10651_v43  ;;  %v10737_v39 = vand.u32 4294901760, %v10736_v55 }
 0xf67   : > { %v10723_v51 = vsub.f32 %v10651_v43, %v10722_v60 }
 0xf69   : > { %v10724_v15 = vand.u32 4294901760, %v10723_v51 }
 0xf6b   : > { %v10725_v37 = vsub.f32 %v10723_v51, %v10724_v15 }
 0xf6d   : > { %v10726_v2 = vand.u32 4294901760, %v10725_v37 }
 0xf6f   : > { %13820 = vmatmul.mubr.f32.vlgmr.msra.gmra.mrb[38].mxu1 %v10726_v2 }
 0xf70   : > { %13823 = vmatpush3.xpose.msra.mxu1 %v10737_v39  ;;  %13824 = vmatprep.mubr.msk.f32.mxu1 %vm15025_vm1, %v15026_v38 }
 0xf71   : > { %13827 = vmatprep.subr.mxu1 %v15026_v38 }
 0xf77   : > { %13825 = vmatmul.mubr.f32.vlgmr.msra.gmra.mrb[38].mxu1 %v10722_v60 }
 0xf78   : > { %13828 = vmatpush3.xpose.msra.mxu1 %v10734_v49  ;;  %13829 = vmatprep.mubr.msk.f32.mxu1 %vm15025_vm1, %v15026_v38 }
 0xf79   : > { %13832 = vmatprep.subr.mxu1 %v15026_v38 }
 0xf7f   : > { %13830 = vmatmul.mubr.f32.vlgmr.msra.gmra.mrb[38].mxu1 %v10723_v51 }
 0xf80   : > { %13833 = vmatpush3.xpose.msra.mxu1 %v10657_v12  ;;  %13834 = vmatprep.mubr.msk.f32.mxu1 %vm15025_vm1, %v15026_v38 }
 0xf81   : > { %13837 = vmatprep.subr.mxu1 %v15026_v38 }
 0xf87   : > { %13835 = vmatmul.mubr.f32.vlgmr.msra.gmra.mrb[38].mxu1 %v10724_v15 }
 0xf88   : > { %13838 = vmatpush3.xpose.msra.mxu1 %v10735_v53  ;;  %13839 = vmatprep.mubr.msk.f32.mxu1 %vm15025_vm1, %v15026_v38 }
 0xf89   : > { %13842 = vmatprep.subr.mxu1 %v15026_v38 }
 0xf8f   : > { %13840 = vmatmul.mubr.f32.vlgmr.msra.gmra.mrb[38].mxu1 %v10722_v60 }
 0xf90   : > { %13843 = vmatpush3.xpose.msra.mxu1 %v10657_v12  ;;  %13844 = vmatprep.mubr.msk.f32.mxu1 %vm15025_vm1, %v15026_v38 }
 0xf91   : > { %v10646_v26 = vpop.f32.mrb[32].mxu0  ;;  %13847 = vmatprep.subr.mxu1 %v15026_v38 }
 0xf92   : > { %v13816_v44 = vpop.f32.mrb[33].mxu0 }
 0xf97   : > { %13845 = vmatmul.mubr.f32.vlgmr.msra.gmra.mrb[38].mxu1 %v10722_v60 }
 0xf98   : > { %13849 = vmatprep.mubr.msk.f32.mxu1 %vm15025_vm1, %v15026_v38 }
0x106a   : > { %v11098_v52 = vpop.f32.mrb[38].mxu1 }
0x106b   : > { %v11102_v25 = vmul.f32 0.35355338, %v11098_v52  ;;  %v13846_v54 = vpop.f32.mrb[39].mxu1 }
0x106d   : > { %v11103_v11 = vsel %vm2044_vm2, %v11102_v25, -inf }
0x106e   : > { %11104 = vmax.xlane.f32.xlu0 %v11103_v11 }
0x1084   : > { %10162 = vrot.lane.b32.xlu0 %v16368_v35, %s15029_s28  ;;  %s16725_s28 = scalar_lea.hbm %s16850_s9, %s16824_s3 }
0x10fb   : > { %v11105_v8 = vpop.xlane.xlu0 %11104 }
0x10fc   : > { %v11106_v23 = vsub.f32 %v11102_v25, %v11105_v8 }
0x10fe   : > { %v11107_v42 = vmul.f32 1.442695, %v11106_v23 }
0x10ff   : > { %v10163_v22 = vpop.permute.xlu0 %10162 }
0x1100   : > { %14685 = vpow2.f32 %v11107_v42  ;;  %v14350_v59 = vadd.f32 %v10646_v26, %v10163_v22 }
0x1102   : > { %v11119_v61 = vand.u32 4294901760, %v14350_v59 }
0x1104   : > { %13848 = vmatpush3.msra.mxu1 %v11119_v61  ;;  %v11196_v35 = vsub.f32 %v14350_v59, %v11119_v61 }
0x1105   : > { %13852 = vmatprep.subr.mxu1 %v15026_v38 }
0x1106   : > { %v11197_v20 = vand.u32 4294901760, %v11196_v35 }
0x1108   : > { %v11198_v63 = vsub.f32 %v11196_v35, %v11197_v20 }
0x110a   : > { %v14686_v27 = vpop.eup %14685  ;;  %v11199_v3 = vand.u32 4294901760, %v11198_v63 }
0x110b   : > { %v11109_v62 = vsel %vm2044_vm2, %v14686_v27, 0.0 }
0x110c   : > { %11110 = vadd.xlane.f32.xlu1 %v11109_v62 }
0x1199   : > { %v11111_v5 = vpop.xlane.xlu1 %11110 }
0x119a   : > { %14687 = vrcp.f32 %v11111_v5 }
0x11a4   : > { %v14688_v16 = vpop.eup %14687 }
0x11a5   : > { %v11113_v17 = vmul.f32 %v14688_v16, %v14686_v27 }
0x11a7   : > { %v11114_v9 = vadd.f32 %v11113_v17, %v16397_v1  ;;  %v11116_v6 = vsel %vm2044_vm2, %v11113_v17, 0  ;;  %v11564_v1 = vld [vmem:[%s16849_s20 + $0x18] sm:$0xff] }
0x11a8   : > { %v11184_v32 = vand.u32 4294901760, %v11116_v6  ;;  %v11569_v7 = vand.u32 4294901760, %v11564_v1 }
0x11a9   : > { %v12025_v21 = vmul.f32 0.25, %v11114_v9 }
0x11aa   : > { %v11185_v14 = vsub.f32 %v11116_v6, %v11184_v32  ;;  %v11646_v10 = vsub.f32 %v11564_v1, %v11569_v7  ;;  %13878 = vmatpush3.msra.mxu0 %v11569_v7 }
0x11ab   : > { %12026 = vst.msk [vmem:[%s520_s11] sm:$0xff] %vm2044_vm2, %v12025_v21  ;;  %13887 = vmatprep.subr.mxu0 %v15026_v38 }
0x11ac   : > { %v11186_v4 = vand.u32 4294901760, %v11185_v14  ;;  %v11647_v29 = vand.u32 4294901760, %v11646_v10 }
0x11ae   : > { %v11187_v33 = vsub.f32 %v11185_v14, %v11186_v4  ;;  %v11648_v48 = vsub.f32 %v11646_v10, %v11647_v29 }
0x11b0   : > { %v11188_v34 = vand.u32 4294901760, %v11187_v33  ;;  %v11649_v24 = vand.u32 4294901760, %v11648_v48 }
0x11b2   : > { %13850 = vmatmul.mubr.f32.vlgmr.msra.gmra.mrb[40].mxu1 %v11188_v34 }
0x11b3   : > { %13853 = vmatpush3.msra.mxu1 %v11199_v3  ;;  %13854 = vmatprep.mubr.msk.f32.mxu1 %vm15025_vm1, %v15026_v38 }
0x11b4   : > { %13857 = vmatprep.subr.mxu1 %v15026_v38 }
0x11ba   : > { %13855 = vmatmul.mubr.f32.vlgmr.msra.gmra.mrb[40].mxu1 %v11184_v32 }
0x11bb   : > { %13858 = vmatpush3.msra.mxu1 %v11196_v35  ;;  %13859 = vmatprep.mubr.msk.f32.mxu1 %vm15025_vm1, %v15026_v38 }
0x11bc   : > { %13862 = vmatprep.subr.mxu1 %v15026_v38 }
0x11c2   : > { %13860 = vmatmul.mubr.f32.vlgmr.msra.gmra.mrb[40].mxu1 %v11185_v14 }
0x11c3   : > { %13863 = vmatpush3.msra.mxu1 %v11119_v61  ;;  %13864 = vmatprep.mubr.msk.f32.mxu1 %vm15025_vm1, %v15026_v38 }
0x11c4   : > { %13867 = vmatprep.subr.mxu1 %v15026_v38 }
0x11ca   : > { %13865 = vmatmul.mubr.f32.vlgmr.msra.gmra.mrb[40].mxu1 %v11186_v4 }
0x11cb   : > { %13868 = vmatpush3.msra.mxu1 %v11197_v20  ;;  %13869 = vmatprep.mubr.msk.f32.mxu1 %vm15025_vm1, %v15026_v38 }
0x11cc   : > { %13872 = vmatprep.subr.mxu1 %v15026_v38 }
0x11d2   : > { %13870 = vmatmul.mubr.f32.vlgmr.msra.gmra.mrb[40].mxu1 %v11184_v32 }
0x11d3   : > { %13873 = vmatpush3.msra.mxu1 %v11119_v61  ;;  %13874 = vmatprep.mubr.msk.f32.mxu1 %vm15025_vm1, %v15026_v38 }
0x11d4   : > { %13882 = vmatprep.subr.mxu1 %v15026_v38 }
0x11da   : > { %13875 = vmatmul.mubr.f32.vlgmr.msra.gmra.mrb[40].mxu1 %v11184_v32 }
0x11db   : > { %13884 = vmatprep.mubr.msk.f32.mxu1 %vm15025_vm1, %v15026_v38  ;;  %13883 = vmatpush3.msra.mxu1 %v11649_v24 }
0x11dc   : > { %13892 = vmatprep.subr.mxu1 %v15026_v38 }
0x12ad   : > { %v11560_v36 = vpop.f32.mrb[40].mxu1 }
0x12ae   : > { %v11566_v40 = vsel %vm2044_vm2, %v11560_v36, 0  ;;  %v13876_v13 = vpop.f32.mrb[41].mxu1 }
0x12af   : > { %v11634_v18 = vand.u32 4294901760, %v11566_v40 }
0x12b1   : > { %v11635_v28 = vsub.f32 %v11566_v40, %v11634_v18  ;;  %13885 = vmatmul.mubr.f32.vlgmr.msra.gmra.mrb[42].mxu1 %v11634_v18 }
0x12b2   : > { %13893 = vmatpush3.msra.mxu1 %v11569_v7  ;;  %13894 = vmatprep.mubr.msk.f32.mxu1 %vm15025_vm1, %v15026_v38 }
0x12b3   : > { %v11636_v0 = vand.u32 4294901760, %v11635_v28  ;;  %13902 = vmatprep.subr.mxu1 %v15026_v38 }
0x12b5   : > { %v11637_v41 = vsub.f32 %v11635_v28, %v11636_v0  ;;  %13895 = vmatmul.mubr.f32.vlgmr.msra.gmra.mrb[44].mxu1 %v11636_v0 }
0x12b6   : > { %13903 = vmatpush3.msra.mxu1 %v11569_v7  ;;  %13904 = vmatprep.mubr.msk.f32.mxu1 %vm15025_vm1, %v15026_v38 }
0x12b7   : > { %v11638_v45 = vand.u32 4294901760, %v11637_v41 }
0x12b9   : > { %13880 = vmatmul.mubr.f32.vlgmr.msra.gmra.mrb[34].mxu0 %v11638_v45  ;;  %13905 = vmatmul.mubr.f32.vlgmr.msra.gmra.mrb[46].mxu1 %v11634_v18 }
0x12ba   : > { %13888 = vmatpush3.msra.mxu0 %v11646_v10  ;;  %13889 = vmatprep.mubr.msk.f32.mxu0 %vm15025_vm1, %v15026_v38 }
0x12bb   : > { %13897 = vmatprep.subr.mxu0 %v15026_v38 }
0x12bd   : > { %13890 = vmatmul.mubr.f32.vlgmr.msra.gmra.mrb[36].mxu0 %v11635_v28 }
0x12be   : > { %13898 = vmatpush3.msra.mxu0 %v11647_v29  ;;  %13899 = vmatprep.mubr.msk.f32.mxu0 %vm15025_vm1, %v15026_v38 }
0x12c1   : > { %13900 = vmatmul.mubr.f32.vlgmr.msra.gmra.mrb[38].mxu0 %v11634_v18 }
0x12c2   : > { %14916 = shalt.err (!%p14913_p0)
}
0x12c3   : > { %s14917_s11 = scalar_lea.hbm %s16725_s28, 128  ;;  %s14921_s26 = scalar_lea.hbm %s16850_s9, 256 }
0x12c4   : > { %p14918_p4 = scmp.ne.s32.totalorder %s16725_s28, %s14917_s11  ;;  %p14922_p8 = scmp.lt.u32.totalorder %s16725_s28, %s16850_s9 }
0x12c5   : > { %p14923_p5 = scmp.lt.u32.totalorder %s14921_s26, %s14917_s11  ;;  %p14925_p6 = scmp.lt.u32.totalorder %s14917_s11, %s16725_s28 }
0x12c6   : > { %p14919_p10 = pnand %p14918_p4, %p16851_p9 }
0x12c7   : > { %p14924_p7 = por %p14923_p5, %p14922_p8 }
0x12c8   : > { %p14920_p11 = pneg %p14919_p10 }
0x12c9   : > { %p14926_p12 = por %p14925_p6, %p14924_p7 }
0x12cb   : > { %p14927_p13 = pnand %p14926_p12, %p14920_p11 }
0x12cd   : > { %14930 = shalt.err (!%p14927_p13)
}
0x12ce   : > { %14578 = dma.vmem_to_hbm [thread:$0]  (%p16851_p9), %s12060_s18, 128, %s16725_s28, %s12033_s16  }
0x12cf   : > { %s16852_s28 = sld [smem:[#allocation26_spill]]  ;;  %s513_s18 = scalar_lea.vmem [#allocation14], %s15361_s14 }
0x12d0   : > { %s12046_s16 = sshll.u32 %s513_s18, 4  ;;  %s16853_s25 = scalar_lea.vmem [#allocation2], %s15361_s14  ;;  %s16761_s16 = int_to_ptr.vmem [resolvable:$true] %s12046_s16 }
0x12d1   : > { %v14704_v26 = vld [vmem:[%s16853_s25] sm:$0xff]  ;;  %s16854_s11 = sshll.u32 %s15118_s27, 7  ;;  %s16855_s26 = sld [smem:[#allocation27_spill]] }
0x12d2   : > { %s12028_s0 = scalar_lea.sflag [#allocation4], %s15358_s15  ;;  %s14931_s3 = scalar_lea.vmem %s16761_s16, 128 }
0x12d3   : > { %p14932_p1 = scmp.ne.s32.totalorder %s16761_s16, %s14931_s3  ;;  %s15031_s14 = smov [#allocation14]  }
0x12d4   : > { %s14935_s27 = sshll.u32 %s15031_s14, 4  ;;  %s14936_s27 = int_to_ptr.vmem [resolvable:$false] %s14935_s27 }
0x12d5   : > { %v12244_v37 = vld [vmem:[%s16852_s28] ss:$0 sm:$0xff]  ;;  %p14933_p3 = pnand %p14932_p1, %p16851_p9  ;;  %s14937_s28 = scalar_lea.vmem %s14936_s27, 256 }
0x12d6   : > { %p14938_p0 = scmp.lt.s32.totalorder %s16761_s16, %s14936_s27  ;;  %p14939_p4 = scmp.lt.s32.totalorder %s14937_s28, %s14931_s3 }
0x12d7   : > { %s16759_s19 = scalar_lea.hbm %s16855_s26, %s16854_s11  ;;  %p14934_p2 = pneg %p14933_p3 }
0x12d8   : > { %p14940_p10 = por %p14939_p4, %p14938_p0 }
0x12da   : > { %p14941_p11 = pnand %p14940_p10, %p14934_p2 }
0x1384   : > { %v11716_v38 = vpop.f32.mrb[42].mxu1 }
0x1385   : > { %v13886_v31 = vpop.f32.mrb[43].mxu1 }
0x1388   : > { %v11864_v30 = vpop.f32.mrb[44].mxu1 }
0x1389   : > { %v13896_v47 = vpop.f32.mrb[45].mxu1 }
0x138c   : > { %v11640_v56 = vpop.f32.mrb[34].mxu0  ;;  %v12010_v50 = vpop.f32.mrb[46].mxu1 }
0x138d   : > { %v11717_v12 = vadd.f32 %v11716_v38, %v11640_v56  ;;  %v13881_v57 = vpop.f32.mrb[35].mxu0  ;;  %v13906_v49 = vpop.f32.mrb[47].mxu1 }
0x1390   : > { %v11790_v19 = vpop.f32.mrb[36].mxu0 }
0x1391   : > { %v11791_v58 = vadd.f32 %v11790_v19, %v11717_v12  ;;  %v13891_v43 = vpop.f32.mrb[37].mxu0 }
0x1393   : > { %v11865_v60 = vadd.f32 %v11864_v30, %v11791_v58 }
0x1394   : > { %v11938_v53 = vpop.f32.mrb[38].mxu0 }
0x1395   : > { %v11939_v51 = vadd.f32 %v11938_v53, %v11865_v60  ;;  %v13901_v15 = vpop.f32.mrb[39].mxu0 }
0x1397   : > { %v12011_v55 = vadd.f32 %v12010_v50, %v11939_v51 }
0x1399   : > { %v12014_v2 = vadd.f32 %v12011_v55, %v16651_v46 }
0x139b   : > { %v12022_v39 = vadd.f32 %v12244_v37, %v12014_v2 }
0x139d   : > { %v12023_v44 = vadd.f32 %v14704_v26, %v12022_v39 }
0x139f   : > { %12024 = vst.msk [vmem:[%s513_s18] sm:$0xff] %vm524_vm0, %v12023_v44 }
0x13a0   : > { %14944 = shalt.err (!%p14941_p11)
}
0x13a1   : > { %s14945_s15 = scalar_lea.hbm %s16759_s19, 128  ;;  %s14949_s11 = scalar_lea.hbm %s16855_s26, 256 }
0x13a2   : > { %p14946_p8 = scmp.ne.s32.totalorder %s16759_s19, %s14945_s15  ;;  %p14950_p6 = scmp.lt.u32.totalorder %s16759_s19, %s16855_s26 }
0x13a3   : > { %p14951_p12 = scmp.lt.u32.totalorder %s14949_s11, %s14945_s15  ;;  %p14953_p1 = scmp.lt.u32.totalorder %s14945_s15, %s16759_s19 }
0x13a4   : > { %p14947_p5 = pnand %p14946_p8, %p16851_p9 }
0x13a5   : > { %p14952_p13 = por %p14951_p12, %p14950_p6 }
0x13a6   : > { %p14948_p7 = pneg %p14947_p5 }
0x13a7   : > { %p14954_p3 = por %p14953_p1, %p14952_p13 }
0x13a9   : > { %p14955_p2 = pnand %p14954_p3, %p14948_p7 }
0x13ab   : > { %14958 = shalt.err (!%p14955_p2)
}
0x13ac   : > { %14577 = dma.vmem_to_hbm [thread:$0]  (%p16851_p9), %s16761_s16, 128, %s16759_s19, %s12028_s0  }
0x13ad PF: > { %s12071_s3 = sand.u32 1, %s15001_s21   ;;  %p16856_p0 = scmp.ne.s32.totalorder %s16839_s12, 0 }
0x13ae   : > { %p16857_p4 = scmp.ge.s32.totalorder %s15013_s24, 2  ;;  %s12072_s14 = scalar_lea.sflag [#allocation4], %s12071_s3 }
0x13b0   : > { %p14605_p10 = pnand %p16857_p4, %p16856_p0 }
0x13b2   : > { %14992 = dma.done.wait (!%p14605_p10), %s12072_s14, 128  }
0x13b3   : > { %14994 = vsyncadd (!%p14605_p10), %s12072_s14, 4294967168  ;;  %s12081_s27 = scalar_lea.sflag [#allocation16], %s12071_s3 }
0x13b4   : > { %14996 = dma.done.wait (!%p14605_p10), %s12081_s27, 128  }
0x13b5   : > { %14998 = vsyncadd (!%p14605_p10), %s12081_s27, 4294967168  ;;  %p32_p9 = scmp.ge.s32.totalorder %s15282_s13, 4   ;;  %s16858_s21 = smov %s15005_s22 }
0x13b6   : > { %s16859_s22 = smov %s15009_s23  ;;  %s16860_s23 = smov %s15293_s17 }
0x13b7   : > { %s16861_s24 = smov %s15282_s13  ;;  %34 = sbr.rel (!%p32_p9) target bundleno = 17 (0x11), region = 150 }
0x13be   :  { %12086 = vsyncpa [#allocation3], 1 }
0x13bf   :  { %12088 = vsyncpa [#allocation3 + $0x1], 1 }
0x13c0   :  { %12089 = vsyncpa [#allocation6], 1 }
0x13c1   :  { %12090 = vsyncpa [#allocation9], 1 }
0x13c2   :  { %12091 = vsyncpa [#allocation12], 1 }
0x13c3   :  { %12092 = vsyncpa [#allocation4], 1 }
0x13c4   :  { %12094 = vsyncpa [#allocation4 + $0x1], 1 }
0x13c5   :  { %12095 = vsyncpa [#allocation16], 1 }
0x13c6   :  { %12097 = vsyncpa [#allocation16 + $0x1], 1 }

</bundles_post_ra>
